<compile_context>
chip_gen: v5e
topology: v5e:2x2
jax: 0.10.0
libtpu: 0.0.40
codegen_flags: <defaults>
</compile_context>

<pallas_src>
import math
import functools

import jax
import jax.numpy as jnp
from jax import lax
from jax.experimental import pallas as pl
from jax.experimental.pallas import tpu as pltpu


def _dwres_block_kernel(x_ref, dww1_ref, dwb1_ref, pww1_ref, pwb1_ref, g1_ref, bt1_ref,
                        dww2_ref, dwb2_ref, pww2_ref, pwb2_ref, g2_ref, bt2_ref, A_ref,
                        o_ref, xpad_ref, y_ref, *,
                        H, W, C, SH, eps, inv_n, compute_dtype):
    cdt = compute_dtype
    WP = W + 16                       # padded width; interior starts at column 8
    n_strips = H // SH

    # --- Halo-only zeroing. The interior is fully overwritten by every
    # dw-conv stage, so it never needs clearing. Re-done every grid step:
    # cheap (O((H+W)*C)) and correct under megacore splitting of the batch
    # grid (each TensorCore has its own private scratch). ---
    zrow = jnp.zeros((1, 1, WP, C), cdt)
    xpad_ref[:, 0:1, :, :] = zrow                    # top halo row
    xpad_ref[:, H + 1:H + 2, :, :] = zrow            # bottom halo row
    zcol = jnp.zeros((1, H, 8, C), cdt)
    xpad_ref[:, 1:H + 1, 0:8, :] = zcol              # covers left halo column 7
    xpad_ref[:, 1:H + 1, W + 8:WP, :] = zcol         # covers right halo column W+8

    A = A_ref[...]                                   # (C, C) group membership (0/1), f32

    def dw_pw_stage(v4, dww_ref, dwb_ref, pww_ref, pwb_ref):
        """v4: (1, H, W, C) f32 -> depthwise3x3 + pointwise1x1, result (H*W, C) f32."""
        # Sublane-aligned interior store (W/sublane offset 8).
        xpad_ref[:, 1:H + 1, 8:8 + W, :] = v4.astype(cdt)
        dww = dww_ref[...]                            # (3, 3, C)    compute dtype
        dwb = dwb_ref[...].astype(jnp.float32)        # (1, C)       f32
        pww = pww_ref[...]                            # (Cin, Cout)  compute dtype
        pwb = pwb_ref[...].astype(jnp.float32)        # (1, C)       f32
        bias4 = jnp.broadcast_to(dwb.reshape(1, 1, 1, C), (1, SH, W, C))  # hoisted

        # Row strips: bounded accumulator + immediate MXU matmul per strip.
        for s in range(n_strips):
            r0 = s * SH
            acc = bias4                                                   # f32
            for dh in range(3):
                for dw in range(3):
                    win = xpad_ref[:, r0 + dh:r0 + dh + SH, dw + 7:dw + 7 + W, :]
                    acc = acc + win * dww[dh, dw, :]   # cdt multiply, f32 accumulate
            a2 = acc.reshape(SH * W, C)
            z = jnp.dot(a2.astype(cdt), pww,
                        preferred_element_type=jnp.float32) + pwb         # (SH*W, C) f32
            y_ref[s * SH * W:(s + 1) * SH * W, :] = z
        return y_ref[...]

    def group_norm(v2, g_ref, b_ref):
        s = jnp.sum(v2, axis=0, keepdims=True)                    # (1, C)
        ss = jnp.sum(v2 * v2, axis=0, keepdims=True)              # (1, C)
        gs = jnp.dot(s, A, preferred_element_type=jnp.float32)    # group sums -> per channel
        gss = jnp.dot(ss, A, preferred_element_type=jnp.float32)
        mean = gs * inv_n
        var = jnp.maximum(gss * inv_n - mean * mean, 0.0)         # cancellation guard
        scale = lax.rsqrt(var + eps) * g_ref[...]                 # EUP rsqrt
        shift = b_ref[...] - mean * scale
        return v2 * scale + shift                                 # fused epilogue

    x4 = x_ref[...].astype(jnp.float32)                           # (1, H, W, C)

    # --- basic(x) ---
    y = dw_pw_stage(x4, dww1_ref, dwb1_ref, pww1_ref, pwb1_ref)
    y = jnp.maximum(group_norm(y, g1_ref, bt1_ref), 0.0)          # GroupNorm + ReLU
    y = dw_pw_stage(y.reshape(1, H, W, C), dww2_ref, dwb2_ref, pww2_ref, pwb2_ref)
    y = group_norm(y, g2_ref, bt2_ref)

    # --- ReLU(x + basic(x)) ---
    out = jnp.maximum(x4.reshape(H * W, C) + y, 0.0)
    o_ref[...] = out.reshape(1, H, W, C).astype(o_ref.dtype)


def depthwise_residual_block(x_nchw, params, *, groups, eps=1e-5,
                             compute_dtype=jnp.float32):
    """x_nchw: (B, C, H, W) f32. params: PyTorch-shaped weights. Returns (B, C, H, W) f32.

    compute_dtype=float32: exact (use on v5e). compute_dtype=bfloat16: bf16 taps +
    bf16 MXU with f32 accumulation (v6e/v7x performance variant).
    """
    B, C, H, W = x_nchw.shape
    assert C % groups == 0
    cdt = jnp.dtype(compute_dtype)

    # Layout plumbing on the host: NCHW -> NHWC (C on lanes); weights into the
    # kernel-native layouts (dw: (3,3,C); pw: (Cin, Cout) -> canonical K,N contraction).
    x = jnp.transpose(x_nchw, (0, 2, 3, 1)).astype(jnp.float32)              # (B, H, W, C)
    dw1 = jnp.transpose(params['dw1_w'][:, 0], (1, 2, 0)).astype(cdt)        # (3, 3, C)
    dw2 = jnp.transpose(params['dw2_w'][:, 0], (1, 2, 0)).astype(cdt)
    pw1 = jnp.transpose(params['pw1_w'][:, :, 0, 0], (1, 0)).astype(cdt)     # (Cin, Cout)
    pw2 = jnp.transpose(params['pw2_w'][:, :, 0, 0], (1, 0)).astype(cdt)

    def row(v):
        return v.reshape(1, C).astype(jnp.float32)

    # Group-membership matrix: A[c, c'] = 1 iff channels c, c' share a group.
    gid = jnp.arange(C) // (C // groups)
    A = (gid[:, None] == gid[None, :]).astype(jnp.float32)                   # (C, C)

    SH = 8 if H % 8 == 0 else H                                              # strip height
    kernel = functools.partial(_dwres_block_kernel, H=H, W=W, C=C, SH=SH,
                               eps=float(eps),
                               inv_n=1.0 / float((C // groups) * H * W),
                               compute_dtype=cdt)

    full3 = lambda b: (0, 0, 0)
    full2 = lambda b: (0, 0)
    img = lambda b: (b, 0, 0, 0)

    # Per-step VMEM budget -> explicit scoped limit (capped at 64 MiB so it is
    # valid on every generation including v7x).
    act = H * W * C * 4
    est = (4 * act                                        # x + out blocks, double-buffered
           + (H + 2) * (W + 16) * C * cdt.itemsize        # xpad scratch
           + act                                          # y scratch
           + 2 * (2 * (9 * C + C * C) * cdt.itemsize + (8 * C + C * C) * 4)  # params
           + 6 * act)                                     # headroom for value temporaries
    vmem_limit = int(min(64 * 1024 * 1024, max(32 * 1024 * 1024, 2 * est)))

    flops = int(B * (2 * 2 * 9 * H * W * C          # two depthwise 3x3 convs
                     + 2 * 2 * H * W * C * C        # two pointwise 1x1 convs
                     + 12 * H * W * C))             # norm / act / residual epilogue
    bytes_accessed = int(4 * 2 * B * H * W * C
                         + 2 * (9 * C + C * C) * cdt.itemsize
                         + (8 * C + C * C) * 4)

    out_nhwc = pl.pallas_call(
        kernel,
        out_shape=jax.ShapeDtypeStruct((B, H, W, C), jnp.float32),
        grid=(B,),
        in_specs=[
            pl.BlockSpec((1, H, W, C), img),        # x
            pl.BlockSpec((3, 3, C), full3),         # dw1 weight
            pl.BlockSpec((1, C), full2),            # dw1 bias
            pl.BlockSpec((C, C), full2),            # pw1 weight (Cin, Cout)
            pl.BlockSpec((1, C), full2),            # pw1 bias
            pl.BlockSpec((1, C), full2),            # gn1 gamma
            pl.BlockSpec((1, C), full2),            # gn1 beta
            pl.BlockSpec((3, 3, C), full3),         # dw2 weight
            pl.BlockSpec((1, C), full2),            # dw2 bias
            pl.BlockSpec((C, C), full2),            # pw2 weight (Cin, Cout)
            pl.BlockSpec((1, C), full2),            # pw2 bias
            pl.BlockSpec((1, C), full2),            # gn2 gamma
            pl.BlockSpec((1, C), full2),            # gn2 beta
            pl.BlockSpec((C, C), full2),            # group-membership matrix
        ],
        out_specs=pl.BlockSpec((1, H, W, C), img),
        scratch_shapes=[
            pltpu.VMEM((1, H + 2, W + 16, C), cdt),     # zero-padded image (aligned interior)
            pltpu.VMEM((H * W, C), jnp.float32),        # conv+pw activation buffer
        ],
        compiler_params=pltpu.CompilerParams(dimension_semantics=("parallel",),
                                             vmem_limit_bytes=vmem_limit),
        cost_estimate=pl.CostEstimate(flops=flops, transcendentals=int(2 * B * C),
                                      bytes_accessed=bytes_accessed),
    )(x, dw1, row(params['dw1_b']), pw1, row(params['pw1_b']),
      row(params['gn1_w']), row(params['gn1_b']),
      dw2, row(params['dw2_b']), pw2, row(params['pw2_b']),
      row(params['gn2_w']), row(params['gn2_b']), A)

    return jnp.transpose(out_nhwc, (0, 3, 1, 2))


def _reference(x, p, *, groups, eps=1e-5):
    """Pure-JAX (lax.conv) reference mirroring the PyTorch forward, NCHW."""
    C = x.shape[1]

    def dw(v, w, b):   # w: (C, 1, 3, 3), depthwise (groups=C), padding=1
        y = lax.conv_general_dilated(v, w, (1, 1), ((1, 1), (1, 1)),
                                     dimension_numbers=('NCHW', 'OIHW', 'NCHW'),
                                     feature_group_count=C)
        return y + b[None, :, None, None]

    def pw(v, w, b):   # w: (C, C, 1, 1)
        y = lax.conv_general_dilated(v, w, (1, 1), 'VALID',
                                     dimension_numbers=('NCHW', 'OIHW', 'NCHW'))
        return y + b[None, :, None, None]

    def gn(v, g, b):
        B, Cc, H, W = v.shape
        vr = v.reshape(B, groups, Cc // groups, H, W)
        m = vr.mean(axis=(2, 3, 4), keepdims=True)
        var = vr.var(axis=(2, 3, 4), keepdims=True)
        vn = ((vr - m) / jnp.sqrt(var + eps)).reshape(B, Cc, H, W)
        return vn * g[None, :, None, None] + b[None, :, None, None]

    y = dw(x, p['dw1_w'], p['dw1_b'])
    y = pw(y, p['pw1_w'], p['pw1_b'])
    y = gn(y, p['gn1_w'], p['gn1_b'])
    y = jax.nn.relu(y)
    y = dw(y, p['dw2_w'], p['dw2_b'])
    y = pw(y, p['pw2_w'], p['pw2_b'])
    y = gn(y, p['gn2_w'], p['gn2_b'])
    return jax.nn.relu(x + y)


if __name__ == "__main__":
    key = jax.random.PRNGKey(0)
    ks = jax.random.split(key, 13)

    B, C, H, W = 2, 32, 16, 16
    groups = 32 if C > 32 else C // 2          # matches native_norm('group', C)

    def rnd(k, shape, scale):
        return scale * jax.random.normal(k, shape, dtype=jnp.float32)

    x = jax.random.normal(ks[0], (B, C, H, W), dtype=jnp.float32)
    params = {
        'dw1_w': rnd(ks[1], (C, 1, 3, 3), 0.2),
        'dw1_b': rnd(ks[2], (C,), 0.1),
        'pw1_w': rnd(ks[3], (C, C, 1, 1), 1.0 / math.sqrt(C)),
        'pw1_b': rnd(ks[4], (C,), 0.1),
        'gn1_w': 1.0 + rnd(ks[5], (C,), 0.1),
        'gn1_b': rnd(ks[6], (C,), 0.1),
        'dw2_w': rnd(ks[7], (C, 1, 3, 3), 0.2),
        'dw2_b': rnd(ks[8], (C,), 0.1),
        'pw2_w': rnd(ks[9], (C, C, 1, 1), 1.0 / math.sqrt(C)),
        'pw2_b': rnd(ks[10], (C,), 0.1),
        'gn2_w': 1.0 + rnd(ks[11], (C,), 0.1),
        'gn2_b': rnd(ks[12], (C,), 0.1),
    }

    ref = _reference(x, params, groups=groups)

    # f32 path (exact; also the recommended path on v5e).
    out_f32 = jax.block_until_ready(depthwise_residual_block(x, params, groups=groups))
    assert out_f32.shape == (B, C, H, W)
    err32 = float(jnp.max(jnp.abs(out_f32 - ref)))
    assert jnp.allclose(out_f32, ref, atol=2e-3, rtol=2e-3), \
        f"f32 mismatch vs reference, max_err={err32}"

    # bf16 MXU/VPU path (v6e/v7x performance variant; f32 accumulation).
    # Looser tolerance because bf16 rounding compounds through both stages.
    out_bf16 = jax.block_until_ready(
        depthwise_residual_block(x, params, groups=groups, compute_dtype=jnp.bfloat16))
    errbf = float(jnp.max(jnp.abs(out_bf16 - ref)))
    assert jnp.allclose(out_bf16, ref, atol=2.5e-1, rtol=1e-1), \
        f"bf16 mismatch vs reference, max_err={errbf}"

    print("KERNEL_OK")
</pallas_src>

<mosaic_0001>
module attributes {stable_mosaic.version = 11 : i64} {
  func.func @_dwres_block_kernel(%arg0: i32, %arg1: memref<1x16x16x32xf32, #tpu.memory_space<vmem>>, %arg2: memref<3x3x32xf32, #tpu.memory_space<vmem>>, %arg3: memref<1x32xf32, #tpu.memory_space<vmem>>, %arg4: memref<32x32xf32, #tpu.memory_space<vmem>>, %arg5: memref<1x32xf32, #tpu.memory_space<vmem>>, %arg6: memref<1x32xf32, #tpu.memory_space<vmem>>, %arg7: memref<1x32xf32, #tpu.memory_space<vmem>>, %arg8: memref<3x3x32xf32, #tpu.memory_space<vmem>>, %arg9: memref<1x32xf32, #tpu.memory_space<vmem>>, %arg10: memref<32x32xf32, #tpu.memory_space<vmem>>, %arg11: memref<1x32xf32, #tpu.memory_space<vmem>>, %arg12: memref<1x32xf32, #tpu.memory_space<vmem>>, %arg13: memref<1x32xf32, #tpu.memory_space<vmem>>, %arg14: memref<32x32xf32, #tpu.memory_space<vmem>>, %arg15: memref<1x16x16x32xf32, #tpu.memory_space<vmem>>, %arg16: memref<1x18x32x32xf32, #tpu.memory_space<vmem>>, %arg17: memref<256x32xf32, #tpu.memory_space<vmem>>) attributes {dimension_semantics = [#tpu.dimension_semantics<parallel>], iteration_bounds = array<i64: 2>, scalar_prefetch = 0 : i64, scratch_operands = 2 : i64, tpu.core_type = #tpu.core_type<tc>, window_params = [{transform_indices = @transform_0, window_bounds = array<i64: 1, 16, 16, 32>}, {pipeline_mode = #tpu.pipeline_mode<synchronous>, transform_indices = @transform_1, window_bounds = array<i64: 3, 3, 32>}, {pipeline_mode = #tpu.pipeline_mode<synchronous>, transform_indices = @transform_2, window_bounds = array<i64: 1, 32>}, {pipeline_mode = #tpu.pipeline_mode<synchronous>, transform_indices = @transform_3, window_bounds = array<i64: 32, 32>}, {pipeline_mode = #tpu.pipeline_mode<synchronous>, transform_indices = @transform_4, window_bounds = array<i64: 1, 32>}, {pipeline_mode = #tpu.pipeline_mode<synchronous>, transform_indices = @transform_5, window_bounds = array<i64: 1, 32>}, {pipeline_mode = #tpu.pipeline_mode<synchronous>, transform_indices = @transform_6, window_bounds = array<i64: 1, 32>}, {pipeline_mode = #tpu.pipeline_mode<synchronous>, transform_indices = @transform_7, window_bounds = array<i64: 3, 3, 32>}, {pipeline_mode = #tpu.pipeline_mode<synchronous>, transform_indices = @transform_8, window_bounds = array<i64: 1, 32>}, {pipeline_mode = #tpu.pipeline_mode<synchronous>, transform_indices = @transform_9, window_bounds = array<i64: 32, 32>}, {pipeline_mode = #tpu.pipeline_mode<synchronous>, transform_indices = @transform_10, window_bounds = array<i64: 1, 32>}, {pipeline_mode = #tpu.pipeline_mode<synchronous>, transform_indices = @transform_11, window_bounds = array<i64: 1, 32>}, {pipeline_mode = #tpu.pipeline_mode<synchronous>, transform_indices = @transform_12, window_bounds = array<i64: 1, 32>}, {pipeline_mode = #tpu.pipeline_mode<synchronous>, transform_indices = @transform_13, window_bounds = array<i64: 32, 32>}, {transform_indices = @transform_14, window_bounds = array<i64: 1, 16, 16, 32>}]} {
    %cst = arith.constant 0.000000e+00 : f32
    %0 = vector.broadcast %cst : f32 to vector<1x1x32x32xf32>
    %c0 = arith.constant 0 : index
    %c0_0 = arith.constant 0 : index
    %c0_1 = arith.constant 0 : index
    %c0_2 = arith.constant 0 : index
    %1 = vector.load %arg16[%c0, %c0_0, %c0_1, %c0_2] : memref<1x18x32x32xf32, #tpu.memory_space<vmem>>, vector<1x1x32x32xf32>
    tpu.vector_store %arg16[%c0, %c0_0, %c0_1, %c0_2], %0 {strides = array<i32>} : memref<1x18x32x32xf32, #tpu.memory_space<vmem>>, vector<1x1x32x32xf32>,
    %c0_3 = arith.constant 0 : index
    %c17 = arith.constant 17 : index
    %c0_4 = arith.constant 0 : index
    %c0_5 = arith.constant 0 : index
    %2 = vector.load %arg16[%c0_3, %c17, %c0_4, %c0_5] : memref<1x18x32x32xf32, #tpu.memory_space<vmem>>, vector<1x1x32x32xf32>
    tpu.vector_store %arg16[%c0_3, %c17, %c0_4, %c0_5], %0 {strides = array<i32>} : memref<1x18x32x32xf32, #tpu.memory_space<vmem>>, vector<1x1x32x32xf32>,
    %cst_6 = arith.constant 0.000000e+00 : f32
    %3 = vector.broadcast %cst_6 : f32 to vector<1x16x8x32xf32>
    %c0_7 = arith.constant 0 : index
    %c1 = arith.constant 1 : index
    %c0_8 = arith.constant 0 : index
    %c0_9 = arith.constant 0 : index
    %4 = vector.load %arg16[%c0_7, %c1, %c0_8, %c0_9] : memref<1x18x32x32xf32, #tpu.memory_space<vmem>>, vector<1x16x8x32xf32>
    tpu.vector_store %arg16[%c0_7, %c1, %c0_8, %c0_9], %3 {strides = array<i32>} : memref<1x18x32x32xf32, #tpu.memory_space<vmem>>, vector<1x16x8x32xf32>,
    %c0_10 = arith.constant 0 : index
    %c1_11 = arith.constant 1 : index
    %c24 = arith.constant 24 : index
    %c0_12 = arith.constant 0 : index
    %5 = vector.load %arg16[%c0_10, %c1_11, %c24, %c0_12] : memref<1x18x32x32xf32, #tpu.memory_space<vmem>>, vector<1x16x8x32xf32>
    tpu.vector_store %arg16[%c0_10, %c1_11, %c24, %c0_12], %3 {strides = array<i32>} : memref<1x18x32x32xf32, #tpu.memory_space<vmem>>, vector<1x16x8x32xf32>,
    %c0_13 = arith.constant 0 : index
    %c0_14 = arith.constant 0 : index
    %6 = vector.load %arg14[%c0_13, %c0_14] : memref<32x32xf32, #tpu.memory_space<vmem>>, vector<32x32xf32>
    %c0_15 = arith.constant 0 : index
    %c0_16 = arith.constant 0 : index
    %c0_17 = arith.constant 0 : index
    %c0_18 = arith.constant 0 : index
    %7 = vector.load %arg1[%c0_15, %c0_16, %c0_17, %c0_18] : memref<1x16x16x32xf32, #tpu.memory_space<vmem>>, vector<1x16x16x32xf32>
    %c0_19 = arith.constant 0 : index
    %c1_20 = arith.constant 1 : index
    %c8 = arith.constant 8 : index
    %c0_21 = arith.constant 0 : index
    %8 = vector.load %arg16[%c0_19, %c1_20, %c8, %c0_21] : memref<1x18x32x32xf32, #tpu.memory_space<vmem>>, vector<1x16x16x32xf32>
    tpu.vector_store %arg16[%c0_19, %c1_20, %c8, %c0_21], %7 {strides = array<i32>} : memref<1x18x32x32xf32, #tpu.memory_space<vmem>>, vector<1x16x16x32xf32>,
    %c0_22 = arith.constant 0 : index
    %c0_23 = arith.constant 0 : index
    %c0_24 = arith.constant 0 : index
    %9 = vector.load %arg2[%c0_22, %c0_23, %c0_24] : memref<3x3x32xf32, #tpu.memory_space<vmem>>, vector<3x3x32xf32>
    %c0_25 = arith.constant 0 : index
    %c0_26 = arith.constant 0 : index
    %10 = vector.load %arg3[%c0_25, %c0_26] : memref<1x32xf32, #tpu.memory_space<vmem>>, vector<1x32xf32>
    %c0_27 = arith.constant 0 : index
    %c0_28 = arith.constant 0 : index
    %11 = vector.load %arg4[%c0_27, %c0_28] : memref<32x32xf32, #tpu.memory_space<vmem>>, vector<32x32xf32>
    %c0_29 = arith.constant 0 : index
    %c0_30 = arith.constant 0 : index
    %12 = vector.load %arg5[%c0_29, %c0_30] : memref<1x32xf32, #tpu.memory_space<vmem>>, vector<1x32xf32>
    %13 = vector.shape_cast %10 : vector<1x32xf32> to vector<1x1x1x32xf32>
    %14 = vector.shape_cast %13 : vector<1x1x1x32xf32> to vector<1x1x1x32xf32>
    %15 = vector.broadcast %14 : vector<1x1x1x32xf32> to vector<1x8x16x32xf32>
    %c0_31 = arith.constant 0 : index
    %c0_32 = arith.constant 0 : index
    %c7 = arith.constant 7 : index
    %c0_33 = arith.constant 0 : index
    %16 = vector.load %arg16[%c0_31, %c0_32, %c7, %c0_33] : memref<1x18x32x32xf32, #tpu.memory_space<vmem>>, vector<1x8x16x32xf32>
    %17 = vector.extract_strided_slice %9 {offsets = [0, 0, 0], sizes = [1, 1, 32], strides = [1, 1, 1]} : vector<3x3x32xf32> to vector<1x1x32xf32>
    %18 = vector.shape_cast %17 : vector<1x1x32xf32> to vector<32xf32>
    %19 = vector.shape_cast %18 : vector<32xf32> to vector<1x1x1x32xf32>
    %20 = vector.broadcast %19 : vector<1x1x1x32xf32> to vector<1x8x16x32xf32>
    %21 = arith.mulf %16, %20 : vector<1x8x16x32xf32>
    %22 = arith.addf %15, %21 : vector<1x8x16x32xf32>
    %c0_34 = arith.constant 0 : index
    %c0_35 = arith.constant 0 : index
    %c8_36 = arith.constant 8 : index
    %c0_37 = arith.constant 0 : index
    %23 = vector.load %arg16[%c0_34, %c0_35, %c8_36, %c0_37] : memref<1x18x32x32xf32, #tpu.memory_space<vmem>>, vector<1x8x16x32xf32>
    %24 = vector.extract_strided_slice %9 {offsets = [0, 1, 0], sizes = [1, 1, 32], strides = [1, 1, 1]} : vector<3x3x32xf32> to vector<1x1x32xf32>
    %25 = vector.shape_cast %24 : vector<1x1x32xf32> to vector<32xf32>
    %26 = vector.shape_cast %25 : vector<32xf32> to vector<1x1x1x32xf32>
    %27 = vector.broadcast %26 : vector<1x1x1x32xf32> to vector<1x8x16x32xf32>
    %28 = arith.mulf %23, %27 : vector<1x8x16x32xf32>
    %29 = arith.addf %22, %28 : vector<1x8x16x32xf32>
    %c0_38 = arith.constant 0 : index
    %c0_39 = arith.constant 0 : index
    %c9 = arith.constant 9 : index
    %c0_40 = arith.constant 0 : index
    %30 = vector.load %arg16[%c0_38, %c0_39, %c9, %c0_40] : memref<1x18x32x32xf32, #tpu.memory_space<vmem>>, vector<1x8x16x32xf32>
    %31 = vector.extract_strided_slice %9 {offsets = [0, 2, 0], sizes = [1, 1, 32], strides = [1, 1, 1]} : vector<3x3x32xf32> to vector<1x1x32xf32>
    %32 = vector.shape_cast %31 : vector<1x1x32xf32> to vector<32xf32>
    %33 = vector.shape_cast %32 : vector<32xf32> to vector<1x1x1x32xf32>
    %34 = vector.broadcast %33 : vector<1x1x1x32xf32> to vector<1x8x16x32xf32>
    %35 = arith.mulf %30, %34 : vector<1x8x16x32xf32>
    %36 = arith.addf %29, %35 : vector<1x8x16x32xf32>
    %c0_41 = arith.constant 0 : index
    %c1_42 = arith.constant 1 : index
    %c7_43 = arith.constant 7 : index
    %c0_44 = arith.constant 0 : index
    %37 = vector.load %arg16[%c0_41, %c1_42, %c7_43, %c0_44] : memref<1x18x32x32xf32, #tpu.memory_space<vmem>>, vector<1x8x16x32xf32>
    %38 = vector.extract_strided_slice %9 {offsets = [1, 0, 0], sizes = [1, 1, 32], strides = [1, 1, 1]} : vector<3x3x32xf32> to vector<1x1x32xf32>
    %39 = vector.shape_cast %38 : vector<1x1x32xf32> to vector<32xf32>
    %40 = vector.shape_cast %39 : vector<32xf32> to vector<1x1x1x32xf32>
    %41 = vector.broadcast %40 : vector<1x1x1x32xf32> to vector<1x8x16x32xf32>
    %42 = arith.mulf %37, %41 : vector<1x8x16x32xf32>
    %43 = arith.addf %36, %42 : vector<1x8x16x32xf32>
    %c0_45 = arith.constant 0 : index
    %c1_46 = arith.constant 1 : index
    %c8_47 = arith.constant 8 : index
    %c0_48 = arith.constant 0 : index
    %44 = vector.load %arg16[%c0_45, %c1_46, %c8_47, %c0_48] : memref<1x18x32x32xf32, #tpu.memory_space<vmem>>, vector<1x8x16x32xf32>
    %45 = vector.extract_strided_slice %9 {offsets = [1, 1, 0], sizes = [1, 1, 32], strides = [1, 1, 1]} : vector<3x3x32xf32> to vector<1x1x32xf32>
    %46 = vector.shape_cast %45 : vector<1x1x32xf32> to vector<32xf32>
    %47 = vector.shape_cast %46 : vector<32xf32> to vector<1x1x1x32xf32>
    %48 = vector.broadcast %47 : vector<1x1x1x32xf32> to vector<1x8x16x32xf32>
    %49 = arith.mulf %44, %48 : vector<1x8x16x32xf32>
    %50 = arith.addf %43, %49 : vector<1x8x16x32xf32>
    %c0_49 = arith.constant 0 : index
    %c1_50 = arith.constant 1 : index
    %c9_51 = arith.constant 9 : index
    %c0_52 = arith.constant 0 : index
    %51 = vector.load %arg16[%c0_49, %c1_50, %c9_51, %c0_52] : memref<1x18x32x32xf32, #tpu.memory_space<vmem>>, vector<1x8x16x32xf32>
    %52 = vector.extract_strided_slice %9 {offsets = [1, 2, 0], sizes = [1, 1, 32], strides = [1, 1, 1]} : vector<3x3x32xf32> to vector<1x1x32xf32>
    %53 = vector.shape_cast %52 : vector<1x1x32xf32> to vector<32xf32>
    %54 = vector.shape_cast %53 : vector<32xf32> to vector<1x1x1x32xf32>
    %55 = vector.broadcast %54 : vector<1x1x1x32xf32> to vector<1x8x16x32xf32>
    %56 = arith.mulf %51, %55 : vector<1x8x16x32xf32>
    %57 = arith.addf %50, %56 : vector<1x8x16x32xf32>
    %c0_53 = arith.constant 0 : index
    %c2 = arith.constant 2 : index
    %c7_54 = arith.constant 7 : index
    %c0_55 = arith.constant 0 : index
    %58 = vector.load %arg16[%c0_53, %c2, %c7_54, %c0_55] : memref<1x18x32x32xf32, #tpu.memory_space<vmem>>, vector<1x8x16x32xf32>
    %59 = vector.extract_strided_slice %9 {offsets = [2, 0, 0], sizes = [1, 1, 32], strides = [1, 1, 1]} : vector<3x3x32xf32> to vector<1x1x32xf32>
    %60 = vector.shape_cast %59 : vector<1x1x32xf32> to vector<32xf32>
    %61 = vector.shape_cast %60 : vector<32xf32> to vector<1x1x1x32xf32>
    %62 = vector.broadcast %61 : vector<1x1x1x32xf32> to vector<1x8x16x32xf32>
    %63 = arith.mulf %58, %62 : vector<1x8x16x32xf32>
    %64 = arith.addf %57, %63 : vector<1x8x16x32xf32>
    %c0_56 = arith.constant 0 : index
    %c2_57 = arith.constant 2 : index
    %c8_58 = arith.constant 8 : index
    %c0_59 = arith.constant 0 : index
    %65 = vector.load %arg16[%c0_56, %c2_57, %c8_58, %c0_59] : memref<1x18x32x32xf32, #tpu.memory_space<vmem>>, vector<1x8x16x32xf32>
    %66 = vector.extract_strided_slice %9 {offsets = [2, 1, 0], sizes = [1, 1, 32], strides = [1, 1, 1]} : vector<3x3x32xf32> to vector<1x1x32xf32>
    %67 = vector.shape_cast %66 : vector<1x1x32xf32> to vector<32xf32>
    %68 = vector.shape_cast %67 : vector<32xf32> to vector<1x1x1x32xf32>
    %69 = vector.broadcast %68 : vector<1x1x1x32xf32> to vector<1x8x16x32xf32>
    %70 = arith.mulf %65, %69 : vector<1x8x16x32xf32>
    %71 = arith.addf %64, %70 : vector<1x8x16x32xf32>
    %c0_60 = arith.constant 0 : index
    %c2_61 = arith.constant 2 : index
    %c9_62 = arith.constant 9 : index
    %c0_63 = arith.constant 0 : index
    %72 = vector.load %arg16[%c0_60, %c2_61, %c9_62, %c0_63] : memref<1x18x32x32xf32, #tpu.memory_space<vmem>>, vector<1x8x16x32xf32>
    %73 = vector.extract_strided_slice %9 {offsets = [2, 2, 0], sizes = [1, 1, 32], strides = [1, 1, 1]} : vector<3x3x32xf32> to vector<1x1x32xf32>
    %74 = vector.shape_cast %73 : vector<1x1x32xf32> to vector<32xf32>
    %75 = vector.shape_cast %74 : vector<32xf32> to vector<1x1x1x32xf32>
    %76 = vector.broadcast %75 : vector<1x1x1x32xf32> to vector<1x8x16x32xf32>
    %77 = arith.mulf %72, %76 : vector<1x8x16x32xf32>
    %78 = arith.addf %71, %77 : vector<1x8x16x32xf32>
    %79 = vector.shape_cast %78 : vector<1x8x16x32xf32> to vector<128x32xf32>
    %cst_64 = arith.constant dense<0.000000e+00> : vector<128x32xf32>
    %80 = tpu.matmul %79, %11, %cst_64 {dimension_numbers = #tpu.dot_dimension_numbers<[1], [0], [0], [1], [0, 0, 1, 1], [], []>} : vector<128x32xf32>, vector<32x32xf32>, vector<128x32xf32> -> vector<128x32xf32>
    %81 = vector.broadcast %12 : vector<1x32xf32> to vector<128x32xf32>
    %82 = arith.addf %80, %81 : vector<128x32xf32>
    %c0_65 = arith.constant 0 : index
    %c0_66 = arith.constant 0 : index
    %83 = vector.load %arg17[%c0_65, %c0_66] : memref<256x32xf32, #tpu.memory_space<vmem>>, vector<128x32xf32>
    tpu.vector_store %arg17[%c0_65, %c0_66], %82 {strides = array<i32>} : memref<256x32xf32, #tpu.memory_space<vmem>>, vector<128x32xf32>,
    %c0_67 = arith.constant 0 : index
    %c8_68 = arith.constant 8 : index
    %c7_69 = arith.constant 7 : index
    %c0_70 = arith.constant 0 : index
    %84 = vector.load %arg16[%c0_67, %c8_68, %c7_69, %c0_70] : memref<1x18x32x32xf32, #tpu.memory_space<vmem>>, vector<1x8x16x32xf32>
    %85 = vector.extract_strided_slice %9 {offsets = [0, 0, 0], sizes = [1, 1, 32], strides = [1, 1, 1]} : vector<3x3x32xf32> to vector<1x1x32xf32>
    %86 = vector.shape_cast %85 : vector<1x1x32xf32> to vector<32xf32>
    %87 = vector.shape_cast %86 : vector<32xf32> to vector<1x1x1x32xf32>
    %88 = vector.broadcast %87 : vector<1x1x1x32xf32> to vector<1x8x16x32xf32>
    %89 = arith.mulf %84, %88 : vector<1x8x16x32xf32>
    %90 = arith.addf %15, %89 : vector<1x8x16x32xf32>
    %c0_71 = arith.constant 0 : index
    %c8_72 = arith.constant 8 : index
    %c8_73 = arith.constant 8 : index
    %c0_74 = arith.constant 0 : index
    %91 = vector.load %arg16[%c0_71, %c8_72, %c8_73, %c0_74] : memref<1x18x32x32xf32, #tpu.memory_space<vmem>>, vector<1x8x16x32xf32>
    %92 = vector.extract_strided_slice %9 {offsets = [0, 1, 0], sizes = [1, 1, 32], strides = [1, 1, 1]} : vector<3x3x32xf32> to vector<1x1x32xf32>
    %93 = vector.shape_cast %92 : vector<1x1x32xf32> to vector<32xf32>
    %94 = vector.shape_cast %93 : vector<32xf32> to vector<1x1x1x32xf32>
    %95 = vector.broadcast %94 : vector<1x1x1x32xf32> to vector<1x8x16x32xf32>
    %96 = arith.mulf %91, %95 : vector<1x8x16x32xf32>
    %97 = arith.addf %90, %96 : vector<1x8x16x32xf32>
    %c0_75 = arith.constant 0 : index
    %c8_76 = arith.constant 8 : index
    %c9_77 = arith.constant 9 : index
    %c0_78 = arith.constant 0 : index
    %98 = vector.load %arg16[%c0_75, %c8_76, %c9_77, %c0_78] : memref<1x18x32x32xf32, #tpu.memory_space<vmem>>, vector<1x8x16x32xf32>
    %99 = vector.extract_strided_slice %9 {offsets = [0, 2, 0], sizes = [1, 1, 32], strides = [1, 1, 1]} : vector<3x3x32xf32> to vector<1x1x32xf32>
    %100 = vector.shape_cast %99 : vector<1x1x32xf32> to vector<32xf32>
    %101 = vector.shape_cast %100 : vector<32xf32> to vector<1x1x1x32xf32>
    %102 = vector.broadcast %101 : vector<1x1x1x32xf32> to vector<1x8x16x32xf32>
    %103 = arith.mulf %98, %102 : vector<1x8x16x32xf32>
    %104 = arith.addf %97, %103 : vector<1x8x16x32xf32>
    %c0_79 = arith.constant 0 : index
    %c9_80 = arith.constant 9 : index
    %c7_81 = arith.constant 7 : index
    %c0_82 = arith.constant 0 : index
    %105 = vector.load %arg16[%c0_79, %c9_80, %c7_81, %c0_82] : memref<1x18x32x32xf32, #tpu.memory_space<vmem>>, vector<1x8x16x32xf32>
    %106 = vector.extract_strided_slice %9 {offsets = [1, 0, 0], sizes = [1, 1, 32], strides = [1, 1, 1]} : vector<3x3x32xf32> to vector<1x1x32xf32>
    %107 = vector.shape_cast %106 : vector<1x1x32xf32> to vector<32xf32>
    %108 = vector.shape_cast %107 : vector<32xf32> to vector<1x1x1x32xf32>
    %109 = vector.broadcast %108 : vector<1x1x1x32xf32> to vector<1x8x16x32xf32>
    %110 = arith.mulf %105, %109 : vector<1x8x16x32xf32>
    %111 = arith.addf %104, %110 : vector<1x8x16x32xf32>
    %c0_83 = arith.constant 0 : index
    %c9_84 = arith.constant 9 : index
    %c8_85 = arith.constant 8 : index
    %c0_86 = arith.constant 0 : index
    %112 = vector.load %arg16[%c0_83, %c9_84, %c8_85, %c0_86] : memref<1x18x32x32xf32, #tpu.memory_space<vmem>>, vector<1x8x16x32xf32>
    %113 = vector.extract_strided_slice %9 {offsets = [1, 1, 0], sizes = [1, 1, 32], strides = [1, 1, 1]} : vector<3x3x32xf32> to vector<1x1x32xf32>
    %114 = vector.shape_cast %113 : vector<1x1x32xf32> to vector<32xf32>
    %115 = vector.shape_cast %114 : vector<32xf32> to vector<1x1x1x32xf32>
    %116 = vector.broadcast %115 : vector<1x1x1x32xf32> to vector<1x8x16x32xf32>
    %117 = arith.mulf %112, %116 : vector<1x8x16x32xf32>
    %118 = arith.addf %111, %117 : vector<1x8x16x32xf32>
    %c0_87 = arith.constant 0 : index
    %c9_88 = arith.constant 9 : index
    %c9_89 = arith.constant 9 : index
    %c0_90 = arith.constant 0 : index
    %119 = vector.load %arg16[%c0_87, %c9_88, %c9_89, %c0_90] : memref<1x18x32x32xf32, #tpu.memory_space<vmem>>, vector<1x8x16x32xf32>
    %120 = vector.extract_strided_slice %9 {offsets = [1, 2, 0], sizes = [1, 1, 32], strides = [1, 1, 1]} : vector<3x3x32xf32> to vector<1x1x32xf32>
    %121 = vector.shape_cast %120 : vector<1x1x32xf32> to vector<32xf32>
    %122 = vector.shape_cast %121 : vector<32xf32> to vector<1x1x1x32xf32>
    %123 = vector.broadcast %122 : vector<1x1x1x32xf32> to vector<1x8x16x32xf32>
    %124 = arith.mulf %119, %123 : vector<1x8x16x32xf32>
    %125 = arith.addf %118, %124 : vector<1x8x16x32xf32>
    %c0_91 = arith.constant 0 : index
    %c10 = arith.constant 10 : index
    %c7_92 = arith.constant 7 : index
    %c0_93 = arith.constant 0 : index
    %126 = vector.load %arg16[%c0_91, %c10, %c7_92, %c0_93] : memref<1x18x32x32xf32, #tpu.memory_space<vmem>>, vector<1x8x16x32xf32>
    %127 = vector.extract_strided_slice %9 {offsets = [2, 0, 0], sizes = [1, 1, 32], strides = [1, 1, 1]} : vector<3x3x32xf32> to vector<1x1x32xf32>
    %128 = vector.shape_cast %127 : vector<1x1x32xf32> to vector<32xf32>
    %129 = vector.shape_cast %128 : vector<32xf32> to vector<1x1x1x32xf32>
    %130 = vector.broadcast %129 : vector<1x1x1x32xf32> to vector<1x8x16x32xf32>
    %131 = arith.mulf %126, %130 : vector<1x8x16x32xf32>
    %132 = arith.addf %125, %131 : vector<1x8x16x32xf32>
    %c0_94 = arith.constant 0 : index
    %c10_95 = arith.constant 10 : index
    %c8_96 = arith.constant 8 : index
    %c0_97 = arith.constant 0 : index
    %133 = vector.load %arg16[%c0_94, %c10_95, %c8_96, %c0_97] : memref<1x18x32x32xf32, #tpu.memory_space<vmem>>, vector<1x8x16x32xf32>
    %134 = vector.extract_strided_slice %9 {offsets = [2, 1, 0], sizes = [1, 1, 32], strides = [1, 1, 1]} : vector<3x3x32xf32> to vector<1x1x32xf32>
    %135 = vector.shape_cast %134 : vector<1x1x32xf32> to vector<32xf32>
    %136 = vector.shape_cast %135 : vector<32xf32> to vector<1x1x1x32xf32>
    %137 = vector.broadcast %136 : vector<1x1x1x32xf32> to vector<1x8x16x32xf32>
    %138 = arith.mulf %133, %137 : vector<1x8x16x32xf32>
    %139 = arith.addf %132, %138 : vector<1x8x16x32xf32>
    %c0_98 = arith.constant 0 : index
    %c10_99 = arith.constant 10 : index
    %c9_100 = arith.constant 9 : index
    %c0_101 = arith.constant 0 : index
    %140 = vector.load %arg16[%c0_98, %c10_99, %c9_100, %c0_101] : memref<1x18x32x32xf32, #tpu.memory_space<vmem>>, vector<1x8x16x32xf32>
    %141 = vector.extract_strided_slice %9 {offsets = [2, 2, 0], sizes = [1, 1, 32], strides = [1, 1, 1]} : vector<3x3x32xf32> to vector<1x1x32xf32>
    %142 = vector.shape_cast %141 : vector<1x1x32xf32> to vector<32xf32>
    %143 = vector.shape_cast %142 : vector<32xf32> to vector<1x1x1x32xf32>
    %144 = vector.broadcast %143 : vector<1x1x1x32xf32> to vector<1x8x16x32xf32>
    %145 = arith.mulf %140, %144 : vector<1x8x16x32xf32>
    %146 = arith.addf %139, %145 : vector<1x8x16x32xf32>
    %147 = vector.shape_cast %146 : vector<1x8x16x32xf32> to vector<128x32xf32>
    %cst_102 = arith.constant dense<0.000000e+00> : vector<128x32xf32>
    %148 = tpu.matmul %147, %11, %cst_102 {dimension_numbers = #tpu.dot_dimension_numbers<[1], [0], [0], [1], [0, 0, 1, 1], [], []>} : vector<128x32xf32>, vector<32x32xf32>, vector<128x32xf32> -> vector<128x32xf32>
    %149 = vector.broadcast %12 : vector<1x32xf32> to vector<128x32xf32>
    %150 = arith.addf %148, %149 : vector<128x32xf32>
    %c128 = arith.constant 128 : index
    %c0_103 = arith.constant 0 : index
    %151 = vector.load %arg17[%c128, %c0_103] : memref<256x32xf32, #tpu.memory_space<vmem>>, vector<128x32xf32>
    tpu.vector_store %arg17[%c128, %c0_103], %150 {strides = array<i32>} : memref<256x32xf32, #tpu.memory_space<vmem>>, vector<128x32xf32>,
    %c0_104 = arith.constant 0 : index
    %c0_105 = arith.constant 0 : index
    %152 = vector.load %arg17[%c0_104, %c0_105] : memref<256x32xf32, #tpu.memory_space<vmem>>, vector<256x32xf32>
    %cst_106 = arith.constant dense<0.000000e+00> : vector<32xf32>
    %153 = vector.multi_reduction <add>, %152, %cst_106 [0] : vector<256x32xf32> to vector<32xf32>
    %154 = vector.shape_cast %153 : vector<32xf32> to vector<1x32xf32>
    %155 = arith.mulf %152, %152 : vector<256x32xf32>
    %cst_107 = arith.constant dense<0.000000e+00> : vector<32xf32>
    %156 = vector.multi_reduction <add>, %155, %cst_107 [0] : vector<256x32xf32> to vector<32xf32>
    %157 = vector.shape_cast %156 : vector<32xf32> to vector<1x32xf32>
    %cst_108 = arith.constant dense<0.000000e+00> : vector<1x32xf32>
    %158 = tpu.matmul %154, %6, %cst_108 {dimension_numbers = #tpu.dot_dimension_numbers<[1], [0], [0], [1], [0, 0, 1, 1], [], []>} : vector<1x32xf32>, vector<32x32xf32>, vector<1x32xf32> -> vector<1x32xf32>
    %cst_109 = arith.constant dense<0.000000e+00> : vector<1x32xf32>
    %159 = tpu.matmul %157, %6, %cst_109 {dimension_numbers = #tpu.dot_dimension_numbers<[1], [0], [0], [1], [0, 0, 1, 1], [], []>} : vector<1x32xf32>, vector<32x32xf32>, vector<1x32xf32> -> vector<1x32xf32>
    %cst_110 = arith.constant 0.001953125 : f32
    %160 = vector.broadcast %cst_110 : f32 to vector<1x32xf32>
    %161 = arith.mulf %158, %160 : vector<1x32xf32>
    %cst_111 = arith.constant 0.001953125 : f32
    %162 = vector.broadcast %cst_111 : f32 to vector<1x32xf32>
    %163 = arith.mulf %159, %162 : vector<1x32xf32>
    %164 = arith.mulf %161, %161 : vector<1x32xf32>
    %165 = arith.subf %163, %164 : vector<1x32xf32>
    %cst_112 = arith.constant 0.000000e+00 : f32
    %166 = vector.broadcast %cst_112 : f32 to vector<1x32xf32>
    %167 = arith.maximumf %165, %166 : vector<1x32xf32>
    %cst_113 = arith.constant 9.99999974E-6 : f32
    %168 = vector.broadcast %cst_113 : f32 to vector<1x32xf32>
    %169 = arith.addf %167, %168 : vector<1x32xf32>
    %170 = math.rsqrt %169 : vector<1x32xf32>
    %c0_114 = arith.constant 0 : index
    %c0_115 = arith.constant 0 : index
    %171 = vector.load %arg6[%c0_114, %c0_115] : memref<1x32xf32, #tpu.memory_space<vmem>>, vector<1x32xf32>
    %172 = arith.mulf %170, %171 : vector<1x32xf32>
    %c0_116 = arith.constant 0 : index
    %c0_117 = arith.constant 0 : index
    %173 = vector.load %arg7[%c0_116, %c0_117] : memref<1x32xf32, #tpu.memory_space<vmem>>, vector<1x32xf32>
    %174 = arith.mulf %161, %172 : vector<1x32xf32>
    %175 = arith.subf %173, %174 : vector<1x32xf32>
    %176 = vector.broadcast %172 : vector<1x32xf32> to vector<256x32xf32>
    %177 = arith.mulf %152, %176 : vector<256x32xf32>
    %178 = vector.broadcast %175 : vector<1x32xf32> to vector<256x32xf32>
    %179 = arith.addf %177, %178 : vector<256x32xf32>
    %cst_118 = arith.constant 0.000000e+00 : f32
    %180 = vector.broadcast %cst_118 : f32 to vector<256x32xf32>
    %181 = arith.maximumf %179, %180 : vector<256x32xf32>
    %182 = vector.shape_cast %181 : vector<256x32xf32> to vector<1x16x16x32xf32>
    %c0_119 = arith.constant 0 : index
    %c1_120 = arith.constant 1 : index
    %c8_121 = arith.constant 8 : index
    %c0_122 = arith.constant 0 : index
    %183 = vector.load %arg16[%c0_119, %c1_120, %c8_121, %c0_122] : memref<1x18x32x32xf32, #tpu.memory_space<vmem>>, vector<1x16x16x32xf32>
    tpu.vector_store %arg16[%c0_119, %c1_120, %c8_121, %c0_122], %182 {strides = array<i32>} : memref<1x18x32x32xf32, #tpu.memory_space<vmem>>, vector<1x16x16x32xf32>,
    %c0_123 = arith.constant 0 : index
    %c0_124 = arith.constant 0 : index
    %c0_125 = arith.constant 0 : index
    %184 = vector.load %arg8[%c0_123, %c0_124, %c0_125] : memref<3x3x32xf32, #tpu.memory_space<vmem>>, vector<3x3x32xf32>
    %c0_126 = arith.constant 0 : index
    %c0_127 = arith.constant 0 : index
    %185 = vector.load %arg9[%c0_126, %c0_127] : memref<1x32xf32, #tpu.memory_space<vmem>>, vector<1x32xf32>
    %c0_128 = arith.constant 0 : index
    %c0_129 = arith.constant 0 : index
    %186 = vector.load %arg10[%c0_128, %c0_129] : memref<32x32xf32, #tpu.memory_space<vmem>>, vector<32x32xf32>
    %c0_130 = arith.constant 0 : index
    %c0_131 = arith.constant 0 : index
    %187 = vector.load %arg11[%c0_130, %c0_131] : memref<1x32xf32, #tpu.memory_space<vmem>>, vector<1x32xf32>
    %188 = vector.shape_cast %185 : vector<1x32xf32> to vector<1x1x1x32xf32>
    %189 = vector.shape_cast %188 : vector<1x1x1x32xf32> to vector<1x1x1x32xf32>
    %190 = vector.broadcast %189 : vector<1x1x1x32xf32> to vector<1x8x16x32xf32>
    %c0_132 = arith.constant 0 : index
    %c0_133 = arith.constant 0 : index
    %c7_134 = arith.constant 7 : index
    %c0_135 = arith.constant 0 : index
    %191 = vector.load %arg16[%c0_132, %c0_133, %c7_134, %c0_135] : memref<1x18x32x32xf32, #tpu.memory_space<vmem>>, vector<1x8x16x32xf32>
    %192 = vector.extract_strided_slice %184 {offsets = [0, 0, 0], sizes = [1, 1, 32], strides = [1, 1, 1]} : vector<3x3x32xf32> to vector<1x1x32xf32>
    %193 = vector.shape_cast %192 : vector<1x1x32xf32> to vector<32xf32>
    %194 = vector.shape_cast %193 : vector<32xf32> to vector<1x1x1x32xf32>
    %195 = vector.broadcast %194 : vector<1x1x1x32xf32> to vector<1x8x16x32xf32>
    %196 = arith.mulf %191, %195 : vector<1x8x16x32xf32>
    %197 = arith.addf %190, %196 : vector<1x8x16x32xf32>
    %c0_136 = arith.constant 0 : index
    %c0_137 = arith.constant 0 : index
    %c8_138 = arith.constant 8 : index
    %c0_139 = arith.constant 0 : index
    %198 = vector.load %arg16[%c0_136, %c0_137, %c8_138, %c0_139] : memref<1x18x32x32xf32, #tpu.memory_space<vmem>>, vector<1x8x16x32xf32>
    %199 = vector.extract_strided_slice %184 {offsets = [0, 1, 0], sizes = [1, 1, 32], strides = [1, 1, 1]} : vector<3x3x32xf32> to vector<1x1x32xf32>
    %200 = vector.shape_cast %199 : vector<1x1x32xf32> to vector<32xf32>
    %201 = vector.shape_cast %200 : vector<32xf32> to vector<1x1x1x32xf32>
    %202 = vector.broadcast %201 : vector<1x1x1x32xf32> to vector<1x8x16x32xf32>
    %203 = arith.mulf %198, %202 : vector<1x8x16x32xf32>
    %204 = arith.addf %197, %203 : vector<1x8x16x32xf32>
    %c0_140 = arith.constant 0 : index
    %c0_141 = arith.constant 0 : index
    %c9_142 = arith.constant 9 : index
    %c0_143 = arith.constant 0 : index
    %205 = vector.load %arg16[%c0_140, %c0_141, %c9_142, %c0_143] : memref<1x18x32x32xf32, #tpu.memory_space<vmem>>, vector<1x8x16x32xf32>
    %206 = vector.extract_strided_slice %184 {offsets = [0, 2, 0], sizes = [1, 1, 32], strides = [1, 1, 1]} : vector<3x3x32xf32> to vector<1x1x32xf32>
    %207 = vector.shape_cast %206 : vector<1x1x32xf32> to vector<32xf32>
    %208 = vector.shape_cast %207 : vector<32xf32> to vector<1x1x1x32xf32>
    %209 = vector.broadcast %208 : vector<1x1x1x32xf32> to vector<1x8x16x32xf32>
    %210 = arith.mulf %205, %209 : vector<1x8x16x32xf32>
    %211 = arith.addf %204, %210 : vector<1x8x16x32xf32>
    %c0_144 = arith.constant 0 : index
    %c1_145 = arith.constant 1 : index
    %c7_146 = arith.constant 7 : index
    %c0_147 = arith.constant 0 : index
    %212 = vector.load %arg16[%c0_144, %c1_145, %c7_146, %c0_147] : memref<1x18x32x32xf32, #tpu.memory_space<vmem>>, vector<1x8x16x32xf32>
    %213 = vector.extract_strided_slice %184 {offsets = [1, 0, 0], sizes = [1, 1, 32], strides = [1, 1, 1]} : vector<3x3x32xf32> to vector<1x1x32xf32>
    %214 = vector.shape_cast %213 : vector<1x1x32xf32> to vector<32xf32>
    %215 = vector.shape_cast %214 : vector<32xf32> to vector<1x1x1x32xf32>
    %216 = vector.broadcast %215 : vector<1x1x1x32xf32> to vector<1x8x16x32xf32>
    %217 = arith.mulf %212, %216 : vector<1x8x16x32xf32>
    %218 = arith.addf %211, %217 : vector<1x8x16x32xf32>
    %c0_148 = arith.constant 0 : index
    %c1_149 = arith.constant 1 : index
    %c8_150 = arith.constant 8 : index
    %c0_151 = arith.constant 0 : index
    %219 = vector.load %arg16[%c0_148, %c1_149, %c8_150, %c0_151] : memref<1x18x32x32xf32, #tpu.memory_space<vmem>>, vector<1x8x16x32xf32>
    %220 = vector.extract_strided_slice %184 {offsets = [1, 1, 0], sizes = [1, 1, 32], strides = [1, 1, 1]} : vector<3x3x32xf32> to vector<1x1x32xf32>
    %221 = vector.shape_cast %220 : vector<1x1x32xf32> to vector<32xf32>
    %222 = vector.shape_cast %221 : vector<32xf32> to vector<1x1x1x32xf32>
    %223 = vector.broadcast %222 : vector<1x1x1x32xf32> to vector<1x8x16x32xf32>
    %224 = arith.mulf %219, %223 : vector<1x8x16x32xf32>
    %225 = arith.addf %218, %224 : vector<1x8x16x32xf32>
    %c0_152 = arith.constant 0 : index
    %c1_153 = arith.constant 1 : index
    %c9_154 = arith.constant 9 : index
    %c0_155 = arith.constant 0 : index
    %226 = vector.load %arg16[%c0_152, %c1_153, %c9_154, %c0_155] : memref<1x18x32x32xf32, #tpu.memory_space<vmem>>, vector<1x8x16x32xf32>
    %227 = vector.extract_strided_slice %184 {offsets = [1, 2, 0], sizes = [1, 1, 32], strides = [1, 1, 1]} : vector<3x3x32xf32> to vector<1x1x32xf32>
    %228 = vector.shape_cast %227 : vector<1x1x32xf32> to vector<32xf32>
    %229 = vector.shape_cast %228 : vector<32xf32> to vector<1x1x1x32xf32>
    %230 = vector.broadcast %229 : vector<1x1x1x32xf32> to vector<1x8x16x32xf32>
    %231 = arith.mulf %226, %230 : vector<1x8x16x32xf32>
    %232 = arith.addf %225, %231 : vector<1x8x16x32xf32>
    %c0_156 = arith.constant 0 : index
    %c2_157 = arith.constant 2 : index
    %c7_158 = arith.constant 7 : index
    %c0_159 = arith.constant 0 : index
    %233 = vector.load %arg16[%c0_156, %c2_157, %c7_158, %c0_159] : memref<1x18x32x32xf32, #tpu.memory_space<vmem>>, vector<1x8x16x32xf32>
    %234 = vector.extract_strided_slice %184 {offsets = [2, 0, 0], sizes = [1, 1, 32], strides = [1, 1, 1]} : vector<3x3x32xf32> to vector<1x1x32xf32>
    %235 = vector.shape_cast %234 : vector<1x1x32xf32> to vector<32xf32>
    %236 = vector.shape_cast %235 : vector<32xf32> to vector<1x1x1x32xf32>
    %237 = vector.broadcast %236 : vector<1x1x1x32xf32> to vector<1x8x16x32xf32>
    %238 = arith.mulf %233, %237 : vector<1x8x16x32xf32>
    %239 = arith.addf %232, %238 : vector<1x8x16x32xf32>
    %c0_160 = arith.constant 0 : index
    %c2_161 = arith.constant 2 : index
    %c8_162 = arith.constant 8 : index
    %c0_163 = arith.constant 0 : index
    %240 = vector.load %arg16[%c0_160, %c2_161, %c8_162, %c0_163] : memref<1x18x32x32xf32, #tpu.memory_space<vmem>>, vector<1x8x16x32xf32>
    %241 = vector.extract_strided_slice %184 {offsets = [2, 1, 0], sizes = [1, 1, 32], strides = [1, 1, 1]} : vector<3x3x32xf32> to vector<1x1x32xf32>
    %242 = vector.shape_cast %241 : vector<1x1x32xf32> to vector<32xf32>
    %243 = vector.shape_cast %242 : vector<32xf32> to vector<1x1x1x32xf32>
    %244 = vector.broadcast %243 : vector<1x1x1x32xf32> to vector<1x8x16x32xf32>
    %245 = arith.mulf %240, %244 : vector<1x8x16x32xf32>
    %246 = arith.addf %239, %245 : vector<1x8x16x32xf32>
    %c0_164 = arith.constant 0 : index
    %c2_165 = arith.constant 2 : index
    %c9_166 = arith.constant 9 : index
    %c0_167 = arith.constant 0 : index
    %247 = vector.load %arg16[%c0_164, %c2_165, %c9_166, %c0_167] : memref<1x18x32x32xf32, #tpu.memory_space<vmem>>, vector<1x8x16x32xf32>
    %248 = vector.extract_strided_slice %184 {offsets = [2, 2, 0], sizes = [1, 1, 32], strides = [1, 1, 1]} : vector<3x3x32xf32> to vector<1x1x32xf32>
    %249 = vector.shape_cast %248 : vector<1x1x32xf32> to vector<32xf32>
    %250 = vector.shape_cast %249 : vector<32xf32> to vector<1x1x1x32xf32>
    %251 = vector.broadcast %250 : vector<1x1x1x32xf32> to vector<1x8x16x32xf32>
    %252 = arith.mulf %247, %251 : vector<1x8x16x32xf32>
    %253 = arith.addf %246, %252 : vector<1x8x16x32xf32>
    %254 = vector.shape_cast %253 : vector<1x8x16x32xf32> to vector<128x32xf32>
    %cst_168 = arith.constant dense<0.000000e+00> : vector<128x32xf32>
    %255 = tpu.matmul %254, %186, %cst_168 {dimension_numbers = #tpu.dot_dimension_numbers<[1], [0], [0], [1], [0, 0, 1, 1], [], []>} : vector<128x32xf32>, vector<32x32xf32>, vector<128x32xf32> -> vector<128x32xf32>
    %256 = vector.broadcast %187 : vector<1x32xf32> to vector<128x32xf32>
    %257 = arith.addf %255, %256 : vector<128x32xf32>
    %c0_169 = arith.constant 0 : index
    %c0_170 = arith.constant 0 : index
    %258 = vector.load %arg17[%c0_169, %c0_170] : memref<256x32xf32, #tpu.memory_space<vmem>>, vector<128x32xf32>
    tpu.vector_store %arg17[%c0_169, %c0_170], %257 {strides = array<i32>} : memref<256x32xf32, #tpu.memory_space<vmem>>, vector<128x32xf32>,
    %c0_171 = arith.constant 0 : index
    %c8_172 = arith.constant 8 : index
    %c7_173 = arith.constant 7 : index
    %c0_174 = arith.constant 0 : index
    %259 = vector.load %arg16[%c0_171, %c8_172, %c7_173, %c0_174] : memref<1x18x32x32xf32, #tpu.memory_space<vmem>>, vector<1x8x16x32xf32>
    %260 = vector.extract_strided_slice %184 {offsets = [0, 0, 0], sizes = [1, 1, 32], strides = [1, 1, 1]} : vector<3x3x32xf32> to vector<1x1x32xf32>
    %261 = vector.shape_cast %260 : vector<1x1x32xf32> to vector<32xf32>
    %262 = vector.shape_cast %261 : vector<32xf32> to vector<1x1x1x32xf32>
    %263 = vector.broadcast %262 : vector<1x1x1x32xf32> to vector<1x8x16x32xf32>
    %264 = arith.mulf %259, %263 : vector<1x8x16x32xf32>
    %265 = arith.addf %190, %264 : vector<1x8x16x32xf32>
    %c0_175 = arith.constant 0 : index
    %c8_176 = arith.constant 8 : index
    %c8_177 = arith.constant 8 : index
    %c0_178 = arith.constant 0 : index
    %266 = vector.load %arg16[%c0_175, %c8_176, %c8_177, %c0_178] : memref<1x18x32x32xf32, #tpu.memory_space<vmem>>, vector<1x8x16x32xf32>
    %267 = vector.extract_strided_slice %184 {offsets = [0, 1, 0], sizes = [1, 1, 32], strides = [1, 1, 1]} : vector<3x3x32xf32> to vector<1x1x32xf32>
    %268 = vector.shape_cast %267 : vector<1x1x32xf32> to vector<32xf32>
    %269 = vector.shape_cast %268 : vector<32xf32> to vector<1x1x1x32xf32>
    %270 = vector.broadcast %269 : vector<1x1x1x32xf32> to vector<1x8x16x32xf32>
    %271 = arith.mulf %266, %270 : vector<1x8x16x32xf32>
    %272 = arith.addf %265, %271 : vector<1x8x16x32xf32>
    %c0_179 = arith.constant 0 : index
    %c8_180 = arith.constant 8 : index
    %c9_181 = arith.constant 9 : index
    %c0_182 = arith.constant 0 : index
    %273 = vector.load %arg16[%c0_179, %c8_180, %c9_181, %c0_182] : memref<1x18x32x32xf32, #tpu.memory_space<vmem>>, vector<1x8x16x32xf32>
    %274 = vector.extract_strided_slice %184 {offsets = [0, 2, 0], sizes = [1, 1, 32], strides = [1, 1, 1]} : vector<3x3x32xf32> to vector<1x1x32xf32>
    %275 = vector.shape_cast %274 : vector<1x1x32xf32> to vector<32xf32>
    %276 = vector.shape_cast %275 : vector<32xf32> to vector<1x1x1x32xf32>
    %277 = vector.broadcast %276 : vector<1x1x1x32xf32> to vector<1x8x16x32xf32>
    %278 = arith.mulf %273, %277 : vector<1x8x16x32xf32>
    %279 = arith.addf %272, %278 : vector<1x8x16x32xf32>
    %c0_183 = arith.constant 0 : index
    %c9_184 = arith.constant 9 : index
    %c7_185 = arith.constant 7 : index
    %c0_186 = arith.constant 0 : index
    %280 = vector.load %arg16[%c0_183, %c9_184, %c7_185, %c0_186] : memref<1x18x32x32xf32, #tpu.memory_space<vmem>>, vector<1x8x16x32xf32>
    %281 = vector.extract_strided_slice %184 {offsets = [1, 0, 0], sizes = [1, 1, 32], strides = [1, 1, 1]} : vector<3x3x32xf32> to vector<1x1x32xf32>
    %282 = vector.shape_cast %281 : vector<1x1x32xf32> to vector<32xf32>
    %283 = vector.shape_cast %282 : vector<32xf32> to vector<1x1x1x32xf32>
    %284 = vector.broadcast %283 : vector<1x1x1x32xf32> to vector<1x8x16x32xf32>
    %285 = arith.mulf %280, %284 : vector<1x8x16x32xf32>
    %286 = arith.addf %279, %285 : vector<1x8x16x32xf32>
    %c0_187 = arith.constant 0 : index
    %c9_188 = arith.constant 9 : index
    %c8_189 = arith.constant 8 : index
    %c0_190 = arith.constant 0 : index
    %287 = vector.load %arg16[%c0_187, %c9_188, %c8_189, %c0_190] : memref<1x18x32x32xf32, #tpu.memory_space<vmem>>, vector<1x8x16x32xf32>
    %288 = vector.extract_strided_slice %184 {offsets = [1, 1, 0], sizes = [1, 1, 32], strides = [1, 1, 1]} : vector<3x3x32xf32> to vector<1x1x32xf32>
    %289 = vector.shape_cast %288 : vector<1x1x32xf32> to vector<32xf32>
    %290 = vector.shape_cast %289 : vector<32xf32> to vector<1x1x1x32xf32>
    %291 = vector.broadcast %290 : vector<1x1x1x32xf32> to vector<1x8x16x32xf32>
    %292 = arith.mulf %287, %291 : vector<1x8x16x32xf32>
    %293 = arith.addf %286, %292 : vector<1x8x16x32xf32>
    %c0_191 = arith.constant 0 : index
    %c9_192 = arith.constant 9 : index
    %c9_193 = arith.constant 9 : index
    %c0_194 = arith.constant 0 : index
    %294 = vector.load %arg16[%c0_191, %c9_192, %c9_193, %c0_194] : memref<1x18x32x32xf32, #tpu.memory_space<vmem>>, vector<1x8x16x32xf32>
    %295 = vector.extract_strided_slice %184 {offsets = [1, 2, 0], sizes = [1, 1, 32], strides = [1, 1, 1]} : vector<3x3x32xf32> to vector<1x1x32xf32>
    %296 = vector.shape_cast %295 : vector<1x1x32xf32> to vector<32xf32>
    %297 = vector.shape_cast %296 : vector<32xf32> to vector<1x1x1x32xf32>
    %298 = vector.broadcast %297 : vector<1x1x1x32xf32> to vector<1x8x16x32xf32>
    %299 = arith.mulf %294, %298 : vector<1x8x16x32xf32>
    %300 = arith.addf %293, %299 : vector<1x8x16x32xf32>
    %c0_195 = arith.constant 0 : index
    %c10_196 = arith.constant 10 : index
    %c7_197 = arith.constant 7 : index
    %c0_198 = arith.constant 0 : index
    %301 = vector.load %arg16[%c0_195, %c10_196, %c7_197, %c0_198] : memref<1x18x32x32xf32, #tpu.memory_space<vmem>>, vector<1x8x16x32xf32>
    %302 = vector.extract_strided_slice %184 {offsets = [2, 0, 0], sizes = [1, 1, 32], strides = [1, 1, 1]} : vector<3x3x32xf32> to vector<1x1x32xf32>
    %303 = vector.shape_cast %302 : vector<1x1x32xf32> to vector<32xf32>
    %304 = vector.shape_cast %303 : vector<32xf32> to vector<1x1x1x32xf32>
    %305 = vector.broadcast %304 : vector<1x1x1x32xf32> to vector<1x8x16x32xf32>
    %306 = arith.mulf %301, %305 : vector<1x8x16x32xf32>
    %307 = arith.addf %300, %306 : vector<1x8x16x32xf32>
    %c0_199 = arith.constant 0 : index
    %c10_200 = arith.constant 10 : index
    %c8_201 = arith.constant 8 : index
    %c0_202 = arith.constant 0 : index
    %308 = vector.load %arg16[%c0_199, %c10_200, %c8_201, %c0_202] : memref<1x18x32x32xf32, #tpu.memory_space<vmem>>, vector<1x8x16x32xf32>
    %309 = vector.extract_strided_slice %184 {offsets = [2, 1, 0], sizes = [1, 1, 32], strides = [1, 1, 1]} : vector<3x3x32xf32> to vector<1x1x32xf32>
    %310 = vector.shape_cast %309 : vector<1x1x32xf32> to vector<32xf32>
    %311 = vector.shape_cast %310 : vector<32xf32> to vector<1x1x1x32xf32>
    %312 = vector.broadcast %311 : vector<1x1x1x32xf32> to vector<1x8x16x32xf32>
    %313 = arith.mulf %308, %312 : vector<1x8x16x32xf32>
    %314 = arith.addf %307, %313 : vector<1x8x16x32xf32>
    %c0_203 = arith.constant 0 : index
    %c10_204 = arith.constant 10 : index
    %c9_205 = arith.constant 9 : index
    %c0_206 = arith.constant 0 : index
    %315 = vector.load %arg16[%c0_203, %c10_204, %c9_205, %c0_206] : memref<1x18x32x32xf32, #tpu.memory_space<vmem>>, vector<1x8x16x32xf32>
    %316 = vector.extract_strided_slice %184 {offsets = [2, 2, 0], sizes = [1, 1, 32], strides = [1, 1, 1]} : vector<3x3x32xf32> to vector<1x1x32xf32>
    %317 = vector.shape_cast %316 : vector<1x1x32xf32> to vector<32xf32>
    %318 = vector.shape_cast %317 : vector<32xf32> to vector<1x1x1x32xf32>
    %319 = vector.broadcast %318 : vector<1x1x1x32xf32> to vector<1x8x16x32xf32>
    %320 = arith.mulf %315, %319 : vector<1x8x16x32xf32>
    %321 = arith.addf %314, %320 : vector<1x8x16x32xf32>
    %322 = vector.shape_cast %321 : vector<1x8x16x32xf32> to vector<128x32xf32>
    %cst_207 = arith.constant dense<0.000000e+00> : vector<128x32xf32>
    %323 = tpu.matmul %322, %186, %cst_207 {dimension_numbers = #tpu.dot_dimension_numbers<[1], [0], [0], [1], [0, 0, 1, 1], [], []>} : vector<128x32xf32>, vector<32x32xf32>, vector<128x32xf32> -> vector<128x32xf32>
    %324 = vector.broadcast %187 : vector<1x32xf32> to vector<128x32xf32>
    %325 = arith.addf %323, %324 : vector<128x32xf32>
    %c128_208 = arith.constant 128 : index
    %c0_209 = arith.constant 0 : index
    %326 = vector.load %arg17[%c128_208, %c0_209] : memref<256x32xf32, #tpu.memory_space<vmem>>, vector<128x32xf32>
    tpu.vector_store %arg17[%c128_208, %c0_209], %325 {strides = array<i32>} : memref<256x32xf32, #tpu.memory_space<vmem>>, vector<128x32xf32>,
    %c0_210 = arith.constant 0 : index
    %c0_211 = arith.constant 0 : index
    %327 = vector.load %arg17[%c0_210, %c0_211] : memref<256x32xf32, #tpu.memory_space<vmem>>, vector<256x32xf32>
    %cst_212 = arith.constant dense<0.000000e+00> : vector<32xf32>
    %328 = vector.multi_reduction <add>, %327, %cst_212 [0] : vector<256x32xf32> to vector<32xf32>
    %329 = vector.shape_cast %328 : vector<32xf32> to vector<1x32xf32>
    %330 = arith.mulf %327, %327 : vector<256x32xf32>
    %cst_213 = arith.constant dense<0.000000e+00> : vector<32xf32>
    %331 = vector.multi_reduction <add>, %330, %cst_213 [0] : vector<256x32xf32> to vector<32xf32>
    %332 = vector.shape_cast %331 : vector<32xf32> to vector<1x32xf32>
    %cst_214 = arith.constant dense<0.000000e+00> : vector<1x32xf32>
    %333 = tpu.matmul %329, %6, %cst_214 {dimension_numbers = #tpu.dot_dimension_numbers<[1], [0], [0], [1], [0, 0, 1, 1], [], []>} : vector<1x32xf32>, vector<32x32xf32>, vector<1x32xf32> -> vector<1x32xf32>
    %cst_215 = arith.constant dense<0.000000e+00> : vector<1x32xf32>
    %334 = tpu.matmul %332, %6, %cst_215 {dimension_numbers = #tpu.dot_dimension_numbers<[1], [0], [0], [1], [0, 0, 1, 1], [], []>} : vector<1x32xf32>, vector<32x32xf32>, vector<1x32xf32> -> vector<1x32xf32>
    %cst_216 = arith.constant 0.001953125 : f32
    %335 = vector.broadcast %cst_216 : f32 to vector<1x32xf32>
    %336 = arith.mulf %333, %335 : vector<1x32xf32>
    %cst_217 = arith.constant 0.001953125 : f32
    %337 = vector.broadcast %cst_217 : f32 to vector<1x32xf32>
    %338 = arith.mulf %334, %337 : vector<1x32xf32>
    %339 = arith.mulf %336, %336 : vector<1x32xf32>
    %340 = arith.subf %338, %339 : vector<1x32xf32>
    %cst_218 = arith.constant 0.000000e+00 : f32
    %341 = vector.broadcast %cst_218 : f32 to vector<1x32xf32>
    %342 = arith.maximumf %340, %341 : vector<1x32xf32>
    %cst_219 = arith.constant 9.99999974E-6 : f32
    %343 = vector.broadcast %cst_219 : f32 to vector<1x32xf32>
    %344 = arith.addf %342, %343 : vector<1x32xf32>
    %345 = math.rsqrt %344 : vector<1x32xf32>
    %c0_220 = arith.constant 0 : index
    %c0_221 = arith.constant 0 : index
    %346 = vector.load %arg12[%c0_220, %c0_221] : memref<1x32xf32, #tpu.memory_space<vmem>>, vector<1x32xf32>
    %347 = arith.mulf %345, %346 : vector<1x32xf32>
    %c0_222 = arith.constant 0 : index
    %c0_223 = arith.constant 0 : index
    %348 = vector.load %arg13[%c0_222, %c0_223] : memref<1x32xf32, #tpu.memory_space<vmem>>, vector<1x32xf32>
    %349 = arith.mulf %336, %347 : vector<1x32xf32>
    %350 = arith.subf %348, %349 : vector<1x32xf32>
    %351 = vector.broadcast %347 : vector<1x32xf32> to vector<256x32xf32>
    %352 = arith.mulf %327, %351 : vector<256x32xf32>
    %353 = vector.broadcast %350 : vector<1x32xf32> to vector<256x32xf32>
    %354 = arith.addf %352, %353 : vector<256x32xf32>
    %355 = vector.shape_cast %7 : vector<1x16x16x32xf32> to vector<256x32xf32>
    %356 = arith.addf %355, %354 : vector<256x32xf32>
    %cst_224 = arith.constant 0.000000e+00 : f32
    %357 = vector.broadcast %cst_224 : f32 to vector<256x32xf32>
    %358 = arith.maximumf %356, %357 : vector<256x32xf32>
    %359 = vector.shape_cast %358 : vector<256x32xf32> to vector<1x16x16x32xf32>
    %c0_225 = arith.constant 0 : index
    %c0_226 = arith.constant 0 : index
    %c0_227 = arith.constant 0 : index
    %c0_228 = arith.constant 0 : index
    %360 = vector.load %arg15[%c0_225, %c0_226, %c0_227, %c0_228] : memref<1x16x16x32xf32, #tpu.memory_space<vmem>>, vector<1x16x16x32xf32>
    tpu.vector_store %arg15[%c0_225, %c0_226, %c0_227, %c0_228], %359 {strides = array<i32>} : memref<1x16x16x32xf32, #tpu.memory_space<vmem>>, vector<1x16x16x32xf32>,
    return
  }
  func.func @transform_0(%arg0: i32) -> (i32, i32, i32, i32) {
    %c0_i32 = arith.constant 0 : i32
    %c0_i32_0 = arith.constant 0 : i32
    %c0_i32_1 = arith.constant 0 : i32
    %c0_i32_2 = arith.constant 0 : i32
    return %arg0, %c0_i32, %c0_i32_0, %c0_i32_1 : i32, i32, i32, i32
  }
  func.func @transform_1(%arg0: i32) -> (i32, i32, i32) {
    %c0_i32 = arith.constant 0 : i32
    %c0_i32_0 = arith.constant 0 : i32
    %c0_i32_1 = arith.constant 0 : i32
    %c0_i32_2 = arith.constant 0 : i32
    return %c0_i32, %c0_i32_0, %c0_i32_1 : i32, i32, i32
  }
  func.func @transform_2(%arg0: i32) -> (i32, i32) {
    %c0_i32 = arith.constant 0 : i32
    %c0_i32_0 = arith.constant 0 : i32
    %c0_i32_1 = arith.constant 0 : i32
    return %c0_i32, %c0_i32_0 : i32, i32
  }
  func.func @transform_3(%arg0: i32) -> (i32, i32) {
    %c0_i32 = arith.constant 0 : i32
    %c0_i32_0 = arith.constant 0 : i32
    %c0_i32_1 = arith.constant 0 : i32
    return %c0_i32, %c0_i32_0 : i32, i32
  }
  func.func @transform_4(%arg0: i32) -> (i32, i32) {
    %c0_i32 = arith.constant 0 : i32
    %c0_i32_0 = arith.constant 0 : i32
    %c0_i32_1 = arith.constant 0 : i32
    return %c0_i32, %c0_i32_0 : i32, i32
  }
  func.func @transform_5(%arg0: i32) -> (i32, i32) {
    %c0_i32 = arith.constant 0 : i32
    %c0_i32_0 = arith.constant 0 : i32
    %c0_i32_1 = arith.constant 0 : i32
    return %c0_i32, %c0_i32_0 : i32, i32
  }
  func.func @transform_6(%arg0: i32) -> (i32, i32) {
    %c0_i32 = arith.constant 0 : i32
    %c0_i32_0 = arith.constant 0 : i32
    %c0_i32_1 = arith.constant 0 : i32
    return %c0_i32, %c0_i32_0 : i32, i32
  }
  func.func @transform_7(%arg0: i32) -> (i32, i32, i32) {
    %c0_i32 = arith.constant 0 : i32
    %c0_i32_0 = arith.constant 0 : i32
    %c0_i32_1 = arith.constant 0 : i32
    %c0_i32_2 = arith.constant 0 : i32
    return %c0_i32, %c0_i32_0, %c0_i32_1 : i32, i32, i32
  }
  func.func @transform_8(%arg0: i32) -> (i32, i32) {
    %c0_i32 = arith.constant 0 : i32
    %c0_i32_0 = arith.constant 0 : i32
    %c0_i32_1 = arith.constant 0 : i32
    return %c0_i32, %c0_i32_0 : i32, i32
  }
  func.func @transform_9(%arg0: i32) -> (i32, i32) {
    %c0_i32 = arith.constant 0 : i32
    %c0_i32_0 = arith.constant 0 : i32
    %c0_i32_1 = arith.constant 0 : i32
    return %c0_i32, %c0_i32_0 : i32, i32
  }
  func.func @transform_10(%arg0: i32) -> (i32, i32) {
    %c0_i32 = arith.constant 0 : i32
    %c0_i32_0 = arith.constant 0 : i32
    %c0_i32_1 = arith.constant 0 : i32
    return %c0_i32, %c0_i32_0 : i32, i32
  }
  func.func @transform_11(%arg0: i32) -> (i32, i32) {
    %c0_i32 = arith.constant 0 : i32
    %c0_i32_0 = arith.constant 0 : i32
    %c0_i32_1 = arith.constant 0 : i32
    return %c0_i32, %c0_i32_0 : i32, i32
  }
  func.func @transform_12(%arg0: i32) -> (i32, i32) {
    %c0_i32 = arith.constant 0 : i32
    %c0_i32_0 = arith.constant 0 : i32
    %c0_i32_1 = arith.constant 0 : i32
    return %c0_i32, %c0_i32_0 : i32, i32
  }
  func.func @transform_13(%arg0: i32) -> (i32, i32) {
    %c0_i32 = arith.constant 0 : i32
    %c0_i32_0 = arith.constant 0 : i32
    %c0_i32_1 = arith.constant 0 : i32
    return %c0_i32, %c0_i32_0 : i32, i32
  }
  func.func @transform_14(%arg0: i32) -> (i32, i32, i32, i32) {
    %c0_i32 = arith.constant 0 : i32
    %c0_i32_0 = arith.constant 0 : i32
    %c0_i32_1 = arith.constant 0 : i32
    %c0_i32_2 = arith.constant 0 : i32
    return %arg0, %c0_i32, %c0_i32_0, %c0_i32_1 : i32, i32, i32, i32
  }
}

</mosaic_0001>

<bundles_post_ra>
// kernel: tpu_custom_call.1
= control target key start
LH: loop header
LB: loop body
LE: loop exit
PB: predicated region body
PF: predicated region fallthrough
CT: control target
= control target key end

     0   :  { %s7543_s0 = inlined_call_operand.hbm [shape: f32[2,16,16,32], index: 0, kind: input, shape index: {}]   ;;  %s7544_s1 = inlined_call_operand.hbm [shape: f32[3,3,32], index: 1, kind: input, shape index: {}]   ;;  %s7545_s2 = inlined_call_operand.vmem [shape: f32[1,32], index: 2, kind: input, shape index: {}]   ;;  %s7546_s3 = inlined_call_operand.hbm [shape: f32[32,32], index: 3, kind: input, shape index: {}]   ;;  %s7547_s4 = inlined_call_operand.vmem [shape: f32[1,32], index: 4, kind: input, shape index: {}]   ;;  %s7548_s5 = inlined_call_operand.vmem [shape: f32[1,32], index: 5, kind: input, shape index: {}]   ;;  %s7549_s6 = inlined_call_operand.vmem [shape: f32[1,32], index: 6, kind: input, shape index: {}]   ;;  %s7550_s7 = inlined_call_operand.hbm [shape: f32[3,3,32], index: 7, kind: input, shape index: {}]   ;;  %s7551_s8 = inlined_call_operand.vmem [shape: f32[1,32], index: 8, kind: input, shape index: {}]   ;;  %s7552_s9 = inlined_call_operand.hbm [shape: f32[32,32], index: 9, kind: input, shape index: {}]   ;;  %s7553_s10 = inlined_call_operand.vmem [shape: f32[1,32], index: 10, kind: input, shape index: {}]   ;;  %s7554_s11 = inlined_call_operand.vmem [shape: f32[1,32], index: 11, kind: input, shape index: {}]   ;;  %s7555_s12 = inlined_call_operand.vmem [shape: f32[1,32], index: 12, kind: input, shape index: {}]   ;;  %s7556_s13 = inlined_call_operand.hbm [shape: f32[32,32], index: 13, kind: input, shape index: {}]   ;;  %s7557_s14 = inlined_call_operand.hbm [shape: f32[2,16,16,32], index: 14, kind: output, shape index: {}]  }
   0x1   :  { %7591 = sst [smem:[#allocation51_spill]] %s7544_s1 }
   0x2   :  { %7592 = sst [smem:[#allocation52_spill]] %s7546_s3 }
   0x3   :  { %7593 = sst [smem:[#allocation53_spill]] %s7550_s7 }
   0x4   :  { %7594 = sst [smem:[#allocation54_spill]] %s7552_s9 }
   0x5   :  { %7595 = sst [smem:[#allocation55_spill]] %s7554_s11 }
   0x6   :  { %7596 = sst [smem:[#allocation56_spill]] %s7555_s12 }
   0x7   :  { %7597 = sst [smem:[#allocation57_spill]] %s7556_s13 }
   0x8   :  { %7598 = sst [smem:[#allocation58_spill]] %s7557_s14 }
   0x9   :  { %19 = vsyncpa [#allocation5], 0 }
   0xa   :  { %21 = vsyncpa [#allocation5 + $0x1], 0 }
   0xb   :  { %22 = vsyncpa [#allocation8], 0 }
   0xc   :  { %23 = vsyncpa [#allocation11], 0 }
   0xd   :  { %24 = vsyncpa [#allocation14], 0 }
   0xe   :  { %25 = vsyncpa [#allocation6], 0 }
   0xf   :  { %27 = vsyncpa [#allocation6 + $0x1], 0  ;;  %s4504_s29 = smov 0   ;;  %s4506_s30 = smov 0  }
  0x10   :  { %s4508_s15 = smov 0   ;;  %s4510_s16 = smov 0  }
  0x11 LB: > { %s7599_s1 = sld [smem:[#allocation51_spill]]  ;;  %s4528_s20 = sadd.s32 4294967295, %s4415_s16   ;;  %s4415_s16 = sphi %s4510_s16, %s7687_s16   ;;  %s4411_s15 = sphi %s4508_s15, %s7686_s15   ;;  %s4407_s30 = sphi %s4506_s30, %s7685_s30   ;;  %s4403_s29 = sphi %s4504_s29, %s7684_s29  }
  0x12   : > { %p3950_p0 = scmp.ge.s32.totalorder %s4415_s16, 1  ;;  %p54_p1 = scmp.eq.s32.totalorder %s4528_s20, 0 }
  0x13   : > { %p363_p2 = scmp.lt.s32.totalorder %s4415_s16, 3  ;;  %s4417_s22 = smov [#allocation7]  }
  0x14   : > { %s376_s23 = sshll.u32 %s4417_s22, 4  ;;  %s7601_s7 = sld [smem:[#allocation53_spill]]  ;;  %s377_s23 = int_to_ptr.vmem [resolvable:$true] %s376_s23 }
  0x15   : > { %p4533_p3 = pnand %p3950_p0, %p363_p2  ;;  %s7603_s3 = sld [smem:[#allocation52_spill]] }
  0x16   : > { %s4418_s22 = smov [#allocation10]   ;;  %s4419_s14 = smov 64  }
  0x17   : > { %s374_s19 = sshll.u32 %s7599_s1, 4  ;;  %p4067_p4 = pneg %p4533_p3  ;;  %s375_s19 = int_to_ptr.hbm [resolvable:$true] %s374_s19 }
  0x18   : > { %s416_s1 = sshll.u32 %s4418_s22, 4  ;;  %s4420_s12 = smov 4   ;;  %s417_s1 = int_to_ptr.vmem [resolvable:$true] %s416_s1 }
  0x19   : > { %p4545_p6 = pnand %p4067_p4, %p54_p1  ;;  %s4421_s24 = smov [#allocation9]  }
  0x1a   : > { %s414_s26 = sshll.u32 %s7601_s7, 4  ;;  %s393_s25 = sshll.u32 %s4421_s24, 4  ;;  %s415_s26 = int_to_ptr.hbm [resolvable:$true] %s414_s26  ;;  %s394_s25 = int_to_ptr.vmem [resolvable:$true] %s393_s25 }
  0x1b   : > { %s391_s18 = sshll.u32 %s7603_s3, 4  ;;  %s7604_s9 = sld [smem:[#allocation54_spill]]  ;;  %s392_s18 = int_to_ptr.hbm [resolvable:$true] %s391_s18 }
  0x1c   : > { %4070 = dma.hbm_to_vmem [thread:$0]  (!%p4545_p6), %s375_s19, 192, %s377_s23, [#allocation8], %s4419_s14, %s4419_s14, %s4420_s12  }
  0x1d   : > { %4076 = dma.hbm_to_vmem [thread:$0]  (!%p4545_p6), %s415_s26, 192, %s417_s1, [#allocation11], %s4419_s14, %s4419_s14, %s4420_s12  }
  0x1e   : > { %s7559_s17 = smov 128   ;;  %s7560_s22 = smov 8  }
  0x1f   : > { %4073 = dma.hbm_to_vmem [thread:$0]  (!%p4545_p6), %s392_s18, 512, %s394_s25, [#allocation8], %s7559_s17, %s7559_s17, %s7560_s22  }
  0x20   : > { %s4424_s1 = smov [#allocation12]   ;;  %s7605_s13 = sld [smem:[#allocation57_spill]] }
  0x21   : > { %s431_s28 = sshll.u32 %s7604_s9, 4  ;;  %s433_s12 = sshll.u32 %s4424_s1, 4  ;;  %s432_s28 = int_to_ptr.hbm [resolvable:$true] %s431_s28  ;;  %s434_s12 = int_to_ptr.vmem [resolvable:$true] %s433_s12 }
  0x22   : > { %4079 = dma.hbm_to_vmem [thread:$0]  (!%p4545_p6), %s432_s28, 512, %s434_s12, [#allocation11], %s7559_s17, %s7559_s17, %s7560_s22  }
  0x23   : > { %s4425_s19 = smov [#allocation13]   ;;  %s3949_s26 = sadd.s32 4294967294, %s4415_s16  }
  0x24   : > { %s456_s23 = sshll.u32 %s4425_s19, 4  ;;  %s4579_s18 = sadd.s32 1, %s4415_s16   ;;  %s457_s23 = int_to_ptr.vmem [resolvable:$true] %s456_s23 }
  0x25   : > { %s40_s24 = sadd.s32 1, %s4411_s15  ;;  %s37_s25 = ssub.s32 %s4415_s16, %s4579_s18 }
  0x26   : > { %s454_s11 = sshll.u32 %s7605_s13, 4  ;;  %p47_p7 = scmp.ne.s32.totalorder %s4411_s15, %s4407_s30  ;;  %s455_s11 = int_to_ptr.hbm [resolvable:$true] %s454_s11 }
  0x27   : > { %4082 = dma.hbm_to_vmem [thread:$0]  (!%p4545_p6), %s455_s11, 512, %s457_s23, [#allocation14], %s7559_s17, %s7559_s17, %s7560_s22  }
  0x28   : > { %p38_p8 = scmp.eq.s32.totalorder %s37_s25, 0  ;;  %p48_p9 = scmp.eq.s32.totalorder %s4415_s16, 0 }
  0x29   : > { %p53_p10 = scmp.ne.s32.totalorder %s4407_s30, %s4403_s29  ;;  %p350_p11 = scmp.eq.s32.totalorder %s4528_s20, 1 }
  0x2a   : > { %s4591_s28 = scalar_select %p38_p8, %s4411_s15, %s40_s24  }
  0x2b   : > { %p4595_p12 = por %p54_p1, %p53_p10  ;;  %p4599_p13 = por %p350_p11, %p47_p7 }
  0x2c   : > { %p356_p0 = scmp.eq.s32.totalorder %s3949_s26, 1  ;;  %p49_p2 = por %p48_p9, %p47_p7 }
  0x2d   : > { %s470_s12 = sand.u32 1, %s4411_s15   ;;  %p4096_p6 = scmp.lt.s32.totalorder %s4415_s16, 2 }
  0x2e   : > { %p4604_p4 = por %p356_p0, %p53_p10  ;;  %s3957_s7 = sshll.u32 %s470_s12, 8 }
  0x2f   : > { %s4041_s11 = sshll.u32 %s4415_s16, 8  ;;  %s474_s17 = scalar_lea.vmem [#allocation4], %s3957_s7 }
  0x30   : > { %s479_s24 = scalar_lea.hbm %s7543_s0, %s4041_s11  ;;  %s482_s22 = sshll.u32 %s474_s17, 4  ;;  %s483_s22 = int_to_ptr.vmem [resolvable:$true] %s482_s22 }
  0x31   : > { %s480_s25 = sshll.u32 %s479_s24, 4  ;;  %p4613_p8 = pnand %p4096_p6, %p49_p2  ;;  %s481_s25 = int_to_ptr.hbm [resolvable:$true] %s480_s25 }
  0x32   : > { %s471_s3 = scalar_lea.sflag [#allocation5], %s470_s12  ;;  %s4307_s9 = sshra.s32 %s481_s25, 4  ;;  %s4308_s9 = int_to_ptr.hbm [resolvable:$true] %s4307_s9 }
  0x33   : > { %s4309_s13 = scalar_lea.hbm %s4308_s9, 256  ;;  %p4311_p9 = pneg %p4613_p8 }
  0x34   : > { %p4310_p7 = scmp.ne.s32.totalorder %s4308_s9, %s4309_s13  ;;  %s4314_s17 = scalar_lea.hbm %s7543_s0, 512 }
  0x35   : > { %p4315_p0 = scmp.lt.s32.totalorder %s4308_s9, %s7543_s0  ;;  %p4316_p2 = scmp.lt.s32.totalorder %s4314_s17, %s4309_s13 }
  0x36   : > { %p4312_p10 = pnand %p4311_p9, %p4310_p7 }
  0x37   : > { %p4317_p6 = por %p4316_p2, %p4315_p0 }
  0x38   : > { %p4313_p11 = pneg %p4312_p10 }
  0x3a   : > { %p4318_p5 = pnand %p4317_p6, %p4313_p11 }
  0x3c   : > { %4321 = shalt.err (!%p4318_p5)
}
  0x3d   : > { %s7610_s12 = smov 8   ;;  %s7611_s24 = smov 128  }
  0x3e   : > { %4086 = dma.hbm_to_vmem [thread:$0]  (!%p4613_p8), %s481_s25, 4096, %s483_s22, %s471_s3, %s7611_s24, %s7611_s24, %s7610_s12  }
  0x3f   : > { %494 = sbr.rel (%p4533_p3) target bundleno = 1187 (0x4a3), region = 76 }
  0x44   : > { %s4633_s11 = sand.u32 1, %s4407_s30  }
  0x45   : > { %s3961_s9 = sshll.u32 %s4633_s11, 8  ;;  %s497_s13 = scalar_lea.sflag [#allocation5], %s4633_s11 }
  0x46   : > { %s4639_s19 = scalar_lea.vmem [#allocation4], %s3961_s9 }
  0x47   : > { %4382 = dma.done.wait (%p4595_p12), %s497_s13, 4096  }
  0x48   : > { %4384 = vsyncadd (%p4595_p12), %s497_s13, 4294963200 }
  0x49   : > { %4386 = dma.done.wait (%p54_p1), [#allocation8], 704  }
  0x4a   : > { %4388 = vsyncadd (%p54_p1), [#allocation8], 4294966592 }
  0x4b   : > { %4390 = dma.done.wait (%p54_p1), [#allocation11], 704  }
  0x4c   : > { %4392 = vsyncadd (%p54_p1), [#allocation11], 4294966592 }
  0x4d   : > { %4394 = dma.done.wait (%p54_p1), [#allocation14], 512  }
  0x4e   : > { %4396 = vsyncadd (%p54_p1), [#allocation14], 4294966784  ;;  %vm571_vm0 = vcmask 261120   ;;  %v4426_v0 = vmov 0.0   ;;  %v689_v1 = vld [vmem:[#allocation9 + $0x18] sm:$0xff]  ;;  %v688_v2 = vld [vmem:[#allocation9 + $0x10] sm:$0xff] }
  0x4f   : > { %572 = vst.msk [vmem:[#allocation2] sm:$0xff] %vm571_vm0, %v4426_v0  ;;  %1199 = vmatpush.msra.mxu0 %v689_v1  ;;  %v687_v3 = vld [vmem:[#allocation9 + $0x8] sm:$0xff]  ;;  %v4672_v4 = vld [vmem:[%s4639_s19] sm:$0xff]  ;;  %v4675_v5 = vld [vmem:[%s4639_s19 + $0x8] sm:$0xff]  ;;  %1763 = vmatpush.msra.mxu1 %v689_v1  ;;  %s7652_s26 = sld [smem:[#allocation55_spill]]  ;;  %s7367_s12 = scalar_lea.vmem [#allocation15], %s3961_s9 }
  0x50   : > { %573 = vst.msk [vmem:[#allocation2 + $0x8] sm:$0xff] %vm571_vm0, %v4426_v0  ;;  %v4680_v6 = vld [vmem:[%s4639_s19 + $0x10] sm:$0xff]  ;;  %v4683_v7 = vld [vmem:[%s4639_s19 + $0x18] sm:$0xff]  ;;  %v682_v8 = vld [vmem:[#allocation7] sm:$0x7]  ;;  %s7653_s23 = sld [smem:[#allocation56_spill]] }
  0x51   : > { %574 = vst.msk [vmem:[#allocation2 + $0x10] sm:$0xff] %vm571_vm0, %v4426_v0  ;;  %1200 = vmatpush.msra.mxu0 %v688_v2  ;;  %v686_v9 = vld [vmem:[#allocation9] sm:$0xff]  ;;  %v683_v10 = vld [vmem:[#allocation7 + $0x4] sm:$0x7]  ;;  %1764 = vmatpush.msra.mxu1 %v688_v2  ;;  %v4694_v12 = vld [vmem:[%s7545_s2] ss:$0 sm:$0xff] }
  0x52   : > { %582 = vst.msk [vmem:[#allocation2 + $0x20] sm:$0xff] %vm571_vm0, %v4426_v0  ;;  %v4696_v13 = vperm.slane %v682_v8, 0  ;;  %v4700_v15 = vperm.slane %v682_v8, 1  ;;  %v4702_v17 = vperm.slane %v682_v8, 2  ;;  %v4705_v19 = vperm.slane %v683_v10, 0  ;;  %s4042_s9 = sshll.u32 %s4528_s20, 8 }
  0x53   : > { %583 = vst.msk [vmem:[#allocation2 + $0x40] sm:$0xff] %vm571_vm0, %v4426_v0  ;;  %1201 = vmatpush.msra.mxu0 %v687_v3  ;;  %1765 = vmatpush.msra.mxu1 %v687_v3  ;;  %v684_v21 = vld [vmem:[#allocation7 + $0x8] sm:$0x7]  ;;  %v4714_v25 = vperm.slane %v683_v10, 1  ;;  %v4722_v32 = vperm.slane %v683_v10, 2  ;;  %s7681_s13 = sld [smem:[#allocation58_spill]] }
  0x54   : > { %575 = vst.msk [vmem:[#allocation2 + $0x18] sm:$0xff] %vm571_vm0, %v4426_v0  ;;  %v4726_v34 = vperm.slane %v684_v21, 0  ;;  %v4740_v43 = vperm.slane %v684_v21, 1  ;;  %v4746_v45 = vperm.slane %v684_v21, 2  ;;  %s3825_s3 = sshll.u32 %s7367_s12, 4  ;;  %s3813_s22 = scalar_lea.sflag [#allocation6], %s4633_s11  ;;  %s3826_s3 = int_to_ptr.vmem [resolvable:$true] %s3825_s3 }
  0x55   : > { %577 = vst.msk [vmem:[#allocation2 + $0x220] sm:$0xff] %vm571_vm0, %v4426_v0  ;;  %1202 = vmatpush.msra.mxu0 %v686_v9  ;;  %1766 = vmatpush.msra.mxu1 %v686_v9 }
  0x56   : > { %7612 = vst [vmem:[#allocation21_spill] sm:$0xff] %v4672_v4 }
  0x57   : > { %7613 = vst [vmem:[#allocation22_spill] sm:$0xff] %v4675_v5  ;;  %v694_v11 = vld [vmem:[#allocation2 + $0x7] sm:$0xff] }
  0x58   : > { %578 = vst.msk [vmem:[#allocation2 + $0x228] sm:$0xff] %vm571_vm0, %v4426_v0  ;;  %v743_v14 = vld [vmem:[#allocation2 + $0x8] sm:$0xff]  ;;  %v711_v18 = vmul.f32 %v4696_v13, %v694_v11  ;;  %v744_v29 = vld [vmem:[#allocation2 + $0x10] sm:$0xff] }
  0x59   : > { %7614 = vst [vmem:[#allocation23_spill] sm:$0xff] %v4680_v6  ;;  %v792_v16 = vld [vmem:[#allocation2 + $0x9] sm:$0xff]  ;;  %v760_v22 = vmul.f32 %v4700_v15, %v743_v14  ;;  %v761_v38 = vmul.f32 %v4700_v15, %v744_v29  ;;  %s4357_s7 = scalar_lea.hbm %s7681_s13, 512 }
  0x5a   : > { %7615 = vst [vmem:[#allocation24_spill] sm:$0xff] %v4683_v7  ;;  %v695_v20 = vld [vmem:[#allocation2 + $0xf] sm:$0xff]  ;;  %v727_v23 = vadd.f32 %v4694_v12, %v711_v18  ;;  %v809_v24 = vmul.f32 %v4702_v17, %v792_v16 }
  0x5b   : > { %650 = vst.msk [vmem:[#allocation2 + $0x28] sm:$0xff] %vm571_vm0, %v4672_v4  ;;  %v712_v26 = vmul.f32 %v4696_v13, %v695_v20  ;;  %v793_v40 = vld [vmem:[#allocation2 + $0x11] sm:$0xff] }
  0x5c   : > { %651 = vst.msk [vmem:[#allocation2 + $0x30] sm:$0xff] %vm571_vm0, %v4675_v5  ;;  %v776_v30 = vadd.f32 %v760_v22, %v727_v23  ;;  %v810_v49 = vmul.f32 %v4702_v17, %v793_v40 }
  0x5d   : > { %652 = vst.msk [vmem:[#allocation2 + $0x48] sm:$0xff] %vm571_vm0, %v4680_v6  ;;  %v728_v37 = vadd.f32 %v4694_v12, %v712_v26 }
  0x5e   : > { %653 = vst.msk [vmem:[#allocation2 + $0x50] sm:$0xff] %vm571_vm0, %v4683_v7  ;;  %v825_v35 = vadd.f32 %v809_v24, %v776_v30 }
  0x5f   : > { %579 = vst.msk [vmem:[#allocation2 + $0x230] sm:$0xff] %vm571_vm0, %v4426_v0  ;;  %v777_v48 = vadd.f32 %v761_v38, %v728_v37  ;;  %v4820_v38 = vld [vmem:[%s4639_s19 + $0x20] sm:$0xff] }
  0x60   : > { %580 = vst.msk [vmem:[#allocation2 + $0x238] sm:$0xff] %vm571_vm0, %v4426_v0 }
  0x61   : > { %584 = vst.msk [vmem:[#allocation2 + $0x60] sm:$0xff] %vm571_vm0, %v4426_v0  ;;  %v826_v57 = vadd.f32 %v810_v49, %v777_v48 }
  0x62   : > { %v841_v27 = vld [vmem:[#allocation2 + $0x27] sm:$0xff]  ;;  %585 = vst.msk [vmem:[#allocation2 + $0x80] sm:$0xff] %vm571_vm0, %v4426_v0 }
  0x63   : > { %v890_v28 = vld [vmem:[#allocation2 + $0x28] sm:$0xff]  ;;  %v858_v31 = vmul.f32 %v4705_v19, %v841_v27  ;;  %586 = vst.msk [vmem:[#allocation2 + $0xa0] sm:$0xff] %vm571_vm0, %v4426_v0  ;;  %v891_v58 = vld [vmem:[#allocation2 + $0x30] sm:$0xff]  ;;  %v713_v59 = vmul.f32 %v841_v27, %v4696_v13 }
  0x64   : > { %v939_v33 = vld [vmem:[#allocation2 + $0x29] sm:$0xff]  ;;  %587 = vst.msk [vmem:[#allocation2 + $0xc0] sm:$0xff] %vm571_vm0, %v4426_v0  ;;  %v907_v36 = vmul.f32 %v4714_v25, %v890_v28  ;;  %v908_v62 = vmul.f32 %v4714_v25, %v891_v58  ;;  %v762_v3 = vmul.f32 %v890_v28, %v4700_v15  ;;  %v763_v9 = vmul.f32 %v891_v58, %v4700_v15 }
  0x65   : > { %588 = vst.msk [vmem:[#allocation2 + $0xe0] sm:$0xff] %vm571_vm0, %v4426_v0  ;;  %v4735_v39 = vld [vmem:[#allocation2 + $0x47] sm:$0xff]  ;;  %v874_v41 = vadd.f32 %v858_v31, %v825_v35  ;;  %v956_v42 = vmul.f32 %v4722_v32, %v939_v33  ;;  %v842_v50 = vld [vmem:[#allocation2 + $0x2f] sm:$0xff]  ;;  %v729_v2 = vadd.f32 %v4694_v12, %v713_v59  ;;  %v811_v18 = vmul.f32 %v939_v33, %v4702_v17 }
  0x66   : > { %589 = vst.msk [vmem:[#allocation2 + $0x100] sm:$0xff] %vm571_vm0, %v4426_v0  ;;  %v4744_v44 = vld [vmem:[#allocation2 + $0x48] sm:$0xff]  ;;  %v1006_v47 = vmul.f32 %v4726_v34, %v4735_v39  ;;  %v859_v54 = vmul.f32 %v4705_v19, %v842_v50  ;;  %v714_v60 = vmul.f32 %v842_v50, %v4696_v13  ;;  %v1039_v14 = vld [vmem:[#allocation2 + $0x50] sm:$0xff]  ;;  %v860_v30 = vmul.f32 %v4735_v39, %v4705_v19 }
  0x67   : > { %590 = vst.msk [vmem:[#allocation2 + $0x120] sm:$0xff] %vm571_vm0, %v4426_v0  ;;  %v923_v46 = vadd.f32 %v907_v36, %v874_v41  ;;  %v4755_v51 = vld [vmem:[#allocation2 + $0x49] sm:$0xff]  ;;  %v1055_v53 = vmul.f32 %v4740_v43, %v4744_v44  ;;  %v778_v16 = vadd.f32 %v762_v3, %v729_v2  ;;  %v1056_v26 = vmul.f32 %v4740_v43, %v1039_v14 }
  0x68   : > { %591 = vst.msk [vmem:[#allocation2 + $0x140] sm:$0xff] %vm571_vm0, %v4426_v0  ;;  %v1104_v56 = vmul.f32 %v4746_v45, %v4755_v51  ;;  %v875_v1 = vadd.f32 %v859_v54, %v826_v57  ;;  %v730_v8 = vadd.f32 %v4694_v12, %v714_v60  ;;  %v990_v10 = vld [vmem:[#allocation2 + $0x4f] sm:$0xff]  ;;  %v715_v31 = vmul.f32 %v4735_v39, %v4696_v13  ;;  %v4842_v54 = vld [vmem:[%s4639_s19 + $0x38] sm:$0xff] }
  0x69   : > { %592 = vst.msk [vmem:[#allocation2 + $0x160] sm:$0xff] %vm571_vm0, %v4426_v0  ;;  %v972_v52 = vadd.f32 %v956_v42, %v923_v46  ;;  %v1007_v23 = vmul.f32 %v4726_v34, %v990_v10  ;;  %v827_v29 = vadd.f32 %v811_v18, %v778_v16  ;;  %v861_v35 = vmul.f32 %v990_v10, %v4705_v19  ;;  %v4828_v42 = vld [vmem:[%s4639_s19 + $0x28] sm:$0xff]  ;;  %v4859_v60 = vld [vmem:[%s4639_s19 + $0x78] sm:$0xff]  ;;  %v4873_v2 = vld [vmem:[%s4639_s19 + $0x90] sm:$0xff] }
  0x6a   : > { %593 = vst.msk [vmem:[#allocation2 + $0x180] sm:$0xff] %vm571_vm0, %v4426_v0  ;;  %v924_v11 = vadd.f32 %v908_v62, %v875_v1  ;;  %v779_v21 = vadd.f32 %v763_v9, %v730_v8  ;;  %v909_v39 = vmul.f32 %v4744_v44, %v4714_v25  ;;  %v716_v40 = vmul.f32 %v990_v10, %v4696_v13  ;;  %v4868_v1 = vld [vmem:[%s4639_s19 + $0x88] sm:$0xff]  ;;  %v4879_v10 = vld [vmem:[%s4639_s19 + $0x98] sm:$0xff] }
  0x6b   : > { %594 = vst.msk [vmem:[#allocation2 + $0x1a0] sm:$0xff] %vm571_vm0, %v4426_v0  ;;  %v1022_v55 = vadd.f32 %v1006_v47, %v972_v52  ;;  %v876_v46 = vadd.f32 %v860_v30, %v827_v29  ;;  %v731_v47 = vadd.f32 %v4694_v12, %v715_v31  ;;  %v764_v48 = vmul.f32 %v4744_v44, %v4700_v15  ;;  %v4837_v52 = vld [vmem:[%s4639_s19 + $0x30] sm:$0xff] }
  0x6c   : > { %595 = vst.msk [vmem:[#allocation2 + $0x1c0] sm:$0xff] %vm571_vm0, %v4426_v0  ;;  %v910_v50 = vmul.f32 %v1039_v14, %v4714_v25  ;;  %v4849_v44 = vld [vmem:[%s4639_s19 + $0x70] sm:$0xff]  ;;  %v813_v59 = vmul.f32 %v4755_v51, %v4702_v17 }
  0x6d   : > { %596 = vst.msk [vmem:[#allocation2 + $0x1e0] sm:$0xff] %vm571_vm0, %v4426_v0  ;;  %v1071_v61 = vadd.f32 %v1055_v53, %v1022_v55  ;;  %v732_v55 = vadd.f32 %v4694_v12, %v716_v40  ;;  %v925_v57 = vadd.f32 %v909_v39, %v876_v46  ;;  %v780_v58 = vadd.f32 %v764_v48, %v731_v47  ;;  %v4931_v46 = vld [vmem:[%s4639_s19 + $0xa8] sm:$0xff] }
  0x6e   : > { %597 = vst.msk [vmem:[#allocation2 + $0x200] sm:$0xff] %vm571_vm0, %v4426_v0 }
  0x6f   : > { %598 = vst.msk [vmem:[#allocation2 + $0x38] sm:$0xff] %vm571_vm0, %v4426_v0  ;;  %v1120_v63 = vadd.f32 %v1104_v56, %v1071_v61  ;;  %v765_v56 = vmul.f32 %v1039_v14, %v4700_v15  ;;  %v829_v9 = vadd.f32 %v813_v59, %v780_v58 }
  0x70   : > { %599 = vst.msk [vmem:[#allocation2 + $0x58] sm:$0xff] %vm571_vm0, %v4426_v0 }
  0x71   : > { %600 = vst.msk [vmem:[#allocation2 + $0x78] sm:$0xff] %vm571_vm0, %v4426_v0  ;;  %3968 = vmatmul.msk.f32.vlgmr.msra.gmra.mxu0 %vm571_vm0, %v1120_v63  ;;  %v4865_v63 = vld [vmem:[%s4639_s19 + $0x80] sm:$0xff] }
  0x72   : > { %601 = vst.msk [vmem:[#allocation2 + $0x98] sm:$0xff] %vm571_vm0, %v4426_v0 }
  0x73   : > { %602 = vst.msk [vmem:[#allocation2 + $0xb8] sm:$0xff] %vm571_vm0, %v4426_v0 }
  0x74   : > { %603 = vst.msk [vmem:[#allocation2 + $0xd8] sm:$0xff] %vm571_vm0, %v4426_v0 }
  0x75   : > { %604 = vst.msk [vmem:[#allocation2 + $0xf8] sm:$0xff] %vm571_vm0, %v4426_v0 }
  0x76   : > { %605 = vst.msk [vmem:[#allocation2 + $0x118] sm:$0xff] %vm571_vm0, %v4426_v0  ;;  %v940_v20 = vld [vmem:[#allocation2 + $0x31] sm:$0xff] }
  0x77   : > { %606 = vst.msk [vmem:[#allocation2 + $0x138] sm:$0xff] %vm571_vm0, %v4426_v0  ;;  %v957_v22 = vmul.f32 %v4722_v32, %v940_v20  ;;  %v812_v24 = vmul.f32 %v940_v20, %v4702_v17  ;;  %v1088_v27 = vld [vmem:[#allocation2 + $0x51] sm:$0xff]  ;;  %v4893_v20 = vld [vmem:[%s4639_s19 + $0x48] sm:$0xff] }
  0x78   : > { %607 = vst.msk [vmem:[#allocation2 + $0x158] sm:$0xff] %vm571_vm0, %v4426_v0  ;;  %v1105_v37 = vmul.f32 %v4746_v45, %v1088_v27  ;;  %v959_v62 = vmul.f32 %v1088_v27, %v4722_v32  ;;  %v814_v3 = vmul.f32 %v1088_v27, %v4702_v17 }
  0x79   : > { %608 = vst.msk [vmem:[#allocation2 + $0x178] sm:$0xff] %vm571_vm0, %v4426_v0  ;;  %v973_v28 = vadd.f32 %v957_v22, %v924_v11  ;;  %v828_v33 = vadd.f32 %v812_v24, %v779_v21  ;;  %v4884_v11 = vld [vmem:[%s4639_s19 + $0x40] sm:$0xff] }
  0x7a   : > { %609 = vst.msk [vmem:[#allocation2 + $0x198] sm:$0xff] %vm571_vm0, %v4426_v0 }
  0x7b   : > { %610 = vst.msk [vmem:[#allocation2 + $0x1b8] sm:$0xff] %vm571_vm0, %v4426_v0  ;;  %v1023_v36 = vadd.f32 %v1007_v23, %v973_v28  ;;  %v877_v49 = vadd.f32 %v861_v35, %v828_v33  ;;  %v4920_v35 = vld [vmem:[%s4639_s19 + $0xa0] sm:$0xff] }
  0x7c   : > { %611 = vst.msk [vmem:[#allocation2 + $0x1d8] sm:$0xff] %vm571_vm0, %v4426_v0 }
  0x7d   : > { %7616 = vst [vmem:[#allocation25_spill] sm:$0xff] %v4820_v38  ;;  %v1072_v41 = vadd.f32 %v1056_v26, %v1023_v36  ;;  %v926_v61 = vadd.f32 %v910_v50, %v877_v49 }
  0x7e   : > { %612 = vst.msk [vmem:[#allocation2 + $0x1f8] sm:$0xff] %vm571_vm0, %v4426_v0 }
  0x7f   : > { %7617 = vst [vmem:[#allocation26_spill] sm:$0xff] %v4828_v42  ;;  %v1121_v53 = vadd.f32 %v1105_v37, %v1072_v41  ;;  %v975_v18 = vadd.f32 %v959_v62, %v926_v61 }
  0x80   : > { %613 = vst.msk [vmem:[#allocation2 + $0x218] sm:$0xff] %vm571_vm0, %v4426_v0  ;;  %v958_v0 = vmul.f32 %v4755_v51, %v4722_v32  ;;  %v781_v51 = vadd.f32 %v765_v56, %v732_v55 }
  0x81   : > { %7618 = vst [vmem:[#allocation27_spill] sm:$0xff] %v4837_v52  ;;  %3969 = vmatmul.msk.f32.gmra.mxu0 %vm571_vm0, %v1121_v53 }
  0x82   : > { %654 = vst.msk [vmem:[#allocation2 + $0x68] sm:$0xff] %vm571_vm0, %v4820_v38  ;;  %v974_v8 = vadd.f32 %v958_v0, %v925_v57  ;;  %v830_v33 = vadd.f32 %v814_v3, %v781_v51 }
  0x83   : > { %7619 = vst [vmem:[#allocation28_spill] sm:$0xff] %v4842_v54 }
  0x84   : > { %655 = vst.msk [vmem:[#allocation2 + $0x70] sm:$0xff] %vm571_vm0, %v4828_v42 }
  0x85   : > { %7620 = vst [vmem:[#allocation29_spill] sm:$0xff] %v4849_v44 }
  0x86   : > { %656 = vst.msk [vmem:[#allocation2 + $0x88] sm:$0xff] %vm571_vm0, %v4837_v52 }
  0x87   : > { %7621 = vst [vmem:[#allocation30_spill] sm:$0xff] %v4859_v60 }
  0x88   : > { %657 = vst.msk [vmem:[#allocation2 + $0x90] sm:$0xff] %vm571_vm0, %v4842_v54  ;;  %v5025_v54 = vld [vmem:[%s4639_s19 + $0x50] sm:$0xff] }
  0x89   : > { %7622 = vst [vmem:[#allocation31_spill] sm:$0xff] %v4865_v63  ;;  %v4886_v14 = vld [vmem:[#allocation2 + $0x67] sm:$0xff] }
  0x8a   : > { %7623 = vst [vmem:[#allocation32_spill] sm:$0xff] %v4868_v1  ;;  %v4888_v16 = vld [vmem:[#allocation2 + $0x68] sm:$0xff]  ;;  %v1008_v21 = vmul.f32 %v4726_v34, %v4886_v14  ;;  %v862_v27 = vmul.f32 %v4886_v14, %v4705_v19  ;;  %v717_v7 = vmul.f32 %v4886_v14, %v4696_v13 }
  0x8b   : > { %664 = vst.msk [vmem:[#allocation2 + $0x108] sm:$0xff] %vm571_vm0, %v4849_v44  ;;  %v1057_v22 = vmul.f32 %v4740_v43, %v4888_v16  ;;  %v4899_v23 = vld [vmem:[#allocation2 + $0x69] sm:$0xff]  ;;  %v911_v28 = vmul.f32 %v4888_v16, %v4714_v25  ;;  %v4915_v31 = vld [vmem:[#allocation2 + $0x71] sm:$0xff] }
  0x8c   : > { %7624 = vst [vmem:[#allocation33_spill] sm:$0xff] %v4873_v2  ;;  %v4901_v24 = vld [vmem:[#allocation2 + $0x6f] sm:$0xff]  ;;  %v1024_v36 = vadd.f32 %v1008_v21, %v974_v8  ;;  %v1106_v37 = vmul.f32 %v4746_v45, %v4899_v23  ;;  %v878_v39 = vadd.f32 %v862_v27, %v829_v9  ;;  %v960_v40 = vmul.f32 %v4899_v23, %v4722_v32 }
  0x8d   : > { %665 = vst.msk [vmem:[#allocation2 + $0x110] sm:$0xff] %vm571_vm0, %v4859_v60  ;;  %v4903_v26 = vld [vmem:[#allocation2 + $0x70] sm:$0xff]  ;;  %v1009_v29 = vmul.f32 %v4726_v34, %v4901_v24  ;;  %v4926_v41 = vld [vmem:[#allocation2 + $0x87] sm:$0xff]  ;;  %v1107_v48 = vmul.f32 %v4746_v45, %v4915_v31  ;;  %v863_v53 = vmul.f32 %v4901_v24, %v4705_v19 }
  0x8e   : > { %7625 = vst [vmem:[#allocation34_spill] sm:$0xff] %v4879_v10  ;;  %v1058_v30 = vmul.f32 %v4740_v43, %v4903_v26  ;;  %v1073_v0 = vadd.f32 %v1057_v22, %v1024_v36  ;;  %v927_v55 = vadd.f32 %v911_v28, %v878_v39  ;;  %v1010_v61 = vmul.f32 %v4726_v34, %v4926_v41  ;;  %v4953_v62 = vld [vmem:[#allocation2 + $0x88] sm:$0xff] }
  0x8f   : > { %666 = vst.msk [vmem:[#allocation2 + $0x128] sm:$0xff] %vm571_vm0, %v4865_v63  ;;  %v1025_v47 = vadd.f32 %v1009_v29, %v975_v18  ;;  %v879_v3 = vadd.f32 %v863_v53, %v830_v33  ;;  %v912_v8 = vmul.f32 %v4903_v26, %v4714_v25  ;;  %v4961_v21 = vld [vmem:[#allocation2 + $0x89] sm:$0xff]  ;;  %v1059_v36 = vmul.f32 %v4740_v43, %v4953_v62  ;;  %v5011_v63 = vld [vmem:[#allocation2 + $0x91] sm:$0xff] }
  0x90   : > { %7626 = vst [vmem:[#allocation35_spill] sm:$0xff] %v4884_v11  ;;  %v1122_v9 = vadd.f32 %v1106_v37, %v1073_v0  ;;  %v976_v18 = vadd.f32 %v960_v40, %v927_v55  ;;  %v4966_v28 = vld [vmem:[#allocation2 + $0x8f] sm:$0xff]  ;;  %v1108_v55 = vmul.f32 %v4746_v45, %v4961_v21 }
  0x91   : > { %667 = vst.msk [vmem:[#allocation2 + $0x130] sm:$0xff] %vm571_vm0, %v4868_v1  ;;  %v1074_v59 = vadd.f32 %v1058_v30, %v1025_v47  ;;  %v928_v30 = vadd.f32 %v912_v8, %v879_v3  ;;  %v4979_v47 = vld [vmem:[#allocation2 + $0x90] sm:$0xff]  ;;  %v961_v3 = vmul.f32 %v4915_v31, %v4722_v32 }
  0x92   : > { %7627 = vst [vmem:[#allocation36_spill] sm:$0xff] %v4893_v20  ;;  %v4935_v49 = vld [vmem:[#allocation2 + $0x107] sm:$0xff]  ;;  %3970 = vmatmul.msk.f32.gmra.mxu0 %vm571_vm0, %v1122_v9  ;;  %v1026_v0 = vadd.f32 %v1010_v61, %v976_v18 }
  0x93   : > { %668 = vst.msk [vmem:[#allocation2 + $0x148] sm:$0xff] %vm571_vm0, %v4873_v2  ;;  %v4937_v50 = vld [vmem:[#allocation2 + $0x108] sm:$0xff]  ;;  %v1285_v56 = vmul.f32 %v4935_v49, %v4696_v13  ;;  %v1123_v9 = vadd.f32 %v1107_v48, %v1074_v59  ;;  %v977_v2 = vadd.f32 %v961_v3, %v928_v30  ;;  %v1060_v48 = vmul.f32 %v4740_v43, %v4979_v47 }
  0x94   : > { %669 = vst.msk [vmem:[#allocation2 + $0x150] sm:$0xff] %vm571_vm0, %v4879_v10  ;;  %v1333_v57 = vmul.f32 %v4937_v50, %v4700_v15  ;;  %v4947_v58 = vld [vmem:[#allocation2 + $0x109] sm:$0xff]  ;;  %v4991_v8 = vld [vmem:[#allocation2 + $0x111] sm:$0xff]  ;;  %v1075_v44 = vadd.f32 %v1059_v36, %v1026_v0 }
  0x95   : > { %7628 = vst [vmem:[#allocation37_spill] sm:$0xff] %v4920_v35  ;;  %v1301_v22 = vadd.f32 %v4694_v12, %v1285_v56  ;;  %v1381_v27 = vmul.f32 %v4947_v58, %v4702_v17  ;;  %v4970_v33 = vld [vmem:[#allocation2 + $0x10f] sm:$0xff]  ;;  %v1382_v30 = vmul.f32 %v4991_v8, %v4702_v17 }
  0x96   : > { %658 = vst.msk [vmem:[#allocation2 + $0xa8] sm:$0xff] %vm571_vm0, %v4884_v11  ;;  %v4955_v51 = vld [vmem:[#allocation2 + $0x127] sm:$0xff]  ;;  %v4981_v53 = vld [vmem:[#allocation2 + $0x110] sm:$0xff]  ;;  %v1286_v18 = vmul.f32 %v4970_v33, %v4696_v13  ;;  %v1124_v5 = vadd.f32 %v1108_v55, %v1075_v44  ;;  %v913_v55 = vmul.f32 %v4953_v62, %v4714_v25 }
  0x97   : > { %7629 = vst [vmem:[#allocation38_spill] sm:$0xff] %v4931_v46  ;;  %v4968_v29 = vld [vmem:[#allocation2 + $0x128] sm:$0xff]  ;;  %v1349_v37 = vadd.f32 %v1333_v57, %v1301_v22  ;;  %v1430_v39 = vmul.f32 %v4955_v51, %v4705_v19  ;;  %v1011_v57 = vmul.f32 %v4726_v34, %v4966_v28  ;;  %v1334_v59 = vmul.f32 %v4981_v53, %v4700_v15 }
  0x98   : > { %659 = vst.msk [vmem:[#allocation2 + $0xb0] sm:$0xff] %vm571_vm0, %v4893_v20  ;;  %v4977_v40 = vld [vmem:[#allocation2 + $0x129] sm:$0xff]  ;;  %v1302_v60 = vadd.f32 %v4694_v12, %v1286_v18  ;;  %v5022_v11 = vld [vmem:[#allocation2 + $0x131] sm:$0xff] }
  0x99   : > { %670 = vst.msk [vmem:[#allocation2 + $0x168] sm:$0xff] %vm571_vm0, %v4920_v35  ;;  %v1397_v22 = vadd.f32 %v1381_v27, %v1349_v37  ;;  %v1526_v10 = vmul.f32 %v4977_v40, %v4722_v32  ;;  %v5007_v27 = vld [vmem:[#allocation2 + $0x12f] sm:$0xff]  ;;  %v5028_v18 = vld [vmem:[%s4639_s19 + $0x58] sm:$0xff] }
  0x9a   : > { %671 = vst.msk [vmem:[#allocation2 + $0x170] sm:$0xff] %vm571_vm0, %v4931_v46  ;;  %v4985_v56 = vld [vmem:[#allocation2 + $0x147] sm:$0xff]  ;;  %v1478_v46 = vmul.f32 %v4968_v29, %v4714_v25  ;;  %v5016_v3 = vld [vmem:[#allocation2 + $0x130] sm:$0xff]  ;;  %v1350_v42 = vadd.f32 %v1334_v59, %v1302_v60  ;;  %v1431_v38 = vmul.f32 %v5007_v27, %v4705_v19  ;;  %v766_v59 = vmul.f32 %v4888_v16, %v4700_v15 }
  0x9b   : > { %7630 = vst [vmem:[#allocation39_spill] sm:$0xff] %v4981_v53  ;;  %v4995_v35 = vld [vmem:[#allocation2 + $0x148] sm:$0xff]  ;;  %v1446_v37 = vadd.f32 %v1430_v39, %v1397_v22  ;;  %v1575_v1 = vmul.f32 %v4985_v56, %v4726_v34  ;;  %v1027_v22 = vadd.f32 %v1011_v57, %v977_v2  ;;  %v5034_v0 = vld [vmem:[#allocation2 + $0x150] sm:$0xff]  ;;  %v1479_v60 = vmul.f32 %v5016_v3, %v4714_v25 }
  0x9c   : > { %7631 = vst [vmem:[#allocation40_spill] sm:$0xff] %v4991_v8  ;;  %v4997_v61 = vld [vmem:[#allocation2 + $0x149] sm:$0xff]  ;;  %v1623_v20 = vmul.f32 %v4995_v35, %v4740_v43  ;;  %3971 = vmatmul.msk.f32.gmra.mxu0 %vm571_vm0, %v1123_v9  ;;  %v5055_v6 = vld [vmem:[#allocation2 + $0x151] sm:$0xff]  ;;  %v1527_v16 = vmul.f32 %v5022_v11, %v4722_v32  ;;  %v1624_v4 = vmul.f32 %v5034_v0, %v4740_v43 }
  0x9d   : > { %v1671_v39 = vmul.f32 %v4997_v61, %v4746_v45  ;;  %7632 = vst [vmem:[#allocation41_spill] sm:$0xff] %v5025_v54  ;;  %v1494_v52 = vadd.f32 %v1478_v46, %v1446_v37  ;;  %v5032_v36 = vld [vmem:[#allocation2 + $0x14f] sm:$0xff]  ;;  %v1076_v57 = vadd.f32 %v1060_v48, %v1027_v22  ;;  %v1109_v46 = vmul.f32 %v4746_v45, %v5011_v63  ;;  %v5052_v37 = vld [vmem:[%s4639_s19 + $0xb8] sm:$0xff] }
  0x9e   : > { %7633 = vst [vmem:[#allocation42_spill] sm:$0xff] %v5028_v18  ;;  %v5041_v2 = vld [vmem:[%s4639_s19 + $0xb0] sm:$0xff]  ;;  %v733_v48 = vadd.f32 %v4694_v12, %v717_v7  ;;  %v815_v22 = vmul.f32 %v4899_v23, %v4702_v17  ;;  %v864_v7 = vmul.f32 %v4926_v41, %v4705_v19  ;;  %v5070_v23 = vld [vmem:[#allocation2 + $0xa7] sm:$0xff]  ;;  %v1672_v44 = vmul.f32 %v5055_v6, %v4746_v45 }
  0x9f   : > { %660 = vst.msk [vmem:[#allocation2 + $0xc8] sm:$0xff] %vm571_vm0, %v5025_v54  ;;  %v1542_v14 = vadd.f32 %v1526_v10, %v1494_v52  ;;  %v1398_v54 = vadd.f32 %v1382_v30, %v1350_v42  ;;  %v5078_v9 = vld [vmem:[#allocation2 + $0xa8] sm:$0xff]  ;;  %v5084_v30 = vadd.f32 %v1109_v46, %v1076_v57 }
  0xa0   : > { %7634 = vst [vmem:[#allocation43_spill] sm:$0xff] %v5041_v2  ;;  %v782_v10 = vadd.f32 %v766_v59, %v733_v48  ;;  %v962_v48 = vmul.f32 %v4961_v21, %v4722_v32  ;;  %v1061_v57 = vmul.f32 %v4740_v43, %v5078_v9 }
  0xa1   : > { %661 = vst.msk [vmem:[#allocation2 + $0xd0] sm:$0xff] %vm571_vm0, %v5028_v18  ;;  %v1576_v18 = vmul.f32 %v5032_v36, %v4726_v34  ;;  %v1591_v42 = vadd.f32 %v1575_v1, %v1542_v14  ;;  %v1447_v52 = vadd.f32 %v1431_v38, %v1398_v54  ;;  %v1287_v38 = vmul.f32 %v4955_v51, %v4696_v13 }
  0xa2   : > { %7635 = vst [vmem:[#allocation44_spill] sm:$0xff] %v5052_v37  ;;  %v1335_v54 = vmul.f32 %v4968_v29, %v4700_v15  ;;  %v831_v14 = vadd.f32 %v815_v22, %v782_v10  ;;  %v1383_v51 = vmul.f32 %v4977_v40, %v4702_v17  ;;  %v5099_v22 = vld [vmem:[#allocation2 + $0x167] sm:$0xff]  ;;  %v767_v40 = vmul.f32 %v4903_v26, %v4700_v15 }
  0xa3   : > { %672 = vst.msk [vmem:[#allocation2 + $0x188] sm:$0xff] %vm571_vm0, %v5041_v2  ;;  %v1639_v1 = vadd.f32 %v1623_v20, %v1591_v42  ;;  %v1495_v59 = vadd.f32 %v1479_v60, %v1447_v52  ;;  %v5090_v2 = vld [vmem:[#allocation2 + $0xa9] sm:$0xff]  ;;  %v1303_v8 = vadd.f32 %v4694_v12, %v1287_v38  ;;  %v1432_v60 = vmul.f32 %v4985_v56, %v4705_v19 }
  0xa4   : > { %673 = vst.msk [vmem:[#allocation2 + $0x190] sm:$0xff] %vm571_vm0, %v5052_v37  ;;  %v1012_v37 = vmul.f32 %v4726_v34, %v5070_v23  ;;  %v880_v20 = vadd.f32 %v864_v7, %v831_v14  ;;  %v718_v42 = vmul.f32 %v4901_v24, %v4696_v13  ;;  %3972 = vmatmul.msk.f32.gmra.mxu0 %vm571_vm0, %v1124_v5  ;;  %v5130_v14 = vld [vmem:[#allocation2 + $0xaf] sm:$0xff] }
  0xa5   : > { %v1687_v53 = vadd.f32 %v1671_v39, %v1639_v1  ;;  %v1543_v29 = vadd.f32 %v1527_v16, %v1495_v59  ;;  %v1351_v46 = vadd.f32 %v1335_v54, %v1303_v8  ;;  %v1110_v8 = vmul.f32 %v4746_v45, %v5090_v2  ;;  %v5124_v1 = vld [vmem:[#allocation2 + $0x168] sm:$0xff] }
  0xa6   : > { %v929_v16 = vadd.f32 %v913_v55, %v880_v20  ;;  %v1480_v10 = vmul.f32 %v4995_v35, %v4714_v25  ;;  %v734_v7 = vadd.f32 %v4694_v12, %v718_v42  ;;  %v816_v24 = vmul.f32 %v4915_v31, %v4702_v17  ;;  %v5122_v55 = vld [vmem:[%s4639_s19 + $0xc0] sm:$0xff]  ;;  %v5126_v59 = vld [vmem:[#allocation2 + $0x169] sm:$0xff] }
  0xa7   : > { %3984 = vmatmul.msk.f32.vlgmr.msra.gmra.mxu1 %vm571_vm0, %v1687_v53  ;;  %v1592_v39 = vadd.f32 %v1576_v18, %v1543_v29  ;;  %v1399_v52 = vadd.f32 %v1383_v51, %v1351_v46  ;;  %v1528_v5 = vmul.f32 %v4997_v61, %v4722_v32  ;;  %v1577_v53 = vmul.f32 %v5099_v22, %v4726_v34  ;;  %v5119_v18 = vld [vmem:[%s4639_s19 + $0x60] sm:$0xff] }
  0xa8   : > { %v978_v26 = vadd.f32 %v962_v48, %v929_v16  ;;  %v783_v31 = vadd.f32 %v767_v40, %v734_v7  ;;  %v1288_v48 = vmul.f32 %v5007_v27, %v4696_v13  ;;  %662 = vst.msk [vmem:[#allocation2 + $0xe8] sm:$0xff] %vm571_vm0, %v5119_v18  ;;  %v914_v20 = vmul.f32 %v4979_v47, %v4714_v25  ;;  %v5161_v7 = vld [vmem:[#allocation2 + $0xb0] sm:$0xff] }
  0xa9   : > { %v1640_v38 = vadd.f32 %v1624_v4, %v1592_v39  ;;  %v1448_v54 = vadd.f32 %v1432_v60, %v1399_v52  ;;  %v865_v4 = vmul.f32 %v4966_v28, %v4705_v19  ;;  %v1336_v46 = vmul.f32 %v5016_v3, %v4700_v15  ;;  %674 = vst.msk [vmem:[#allocation2 + $0x1a8] sm:$0xff] %vm571_vm0, %v5122_v55  ;;  %v5146_v39 = vld [vmem:[%s4639_s19 + $0x68] sm:$0xff] }
  0xaa   : > { %v1028_v29 = vadd.f32 %v1012_v37, %v978_v26  ;;  %v832_v42 = vadd.f32 %v816_v24, %v783_v31  ;;  %v1304_v40 = vadd.f32 %v4694_v12, %v1288_v48  ;;  %v1384_v27 = vmul.f32 %v5022_v11, %v4702_v17  ;;  %663 = vst.msk [vmem:[#allocation2 + $0xf0] sm:$0xff] %vm571_vm0, %v5146_v39  ;;  %v5163_v24 = vld [vmem:[#allocation2 + $0xb1] sm:$0xff] }
  0xab   : > { %v1688_v51 = vadd.f32 %v1672_v44, %v1640_v38  ;;  %v1496_v60 = vadd.f32 %v1480_v10, %v1448_v54  ;;  %v5149_v44 = vld [vmem:[%s4639_s19 + $0xc8] sm:$0xff]  ;;  %v1625_v37 = vmul.f32 %v5124_v1, %v4740_v43  ;;  %v1673_v3 = vmul.f32 %v5126_v59, %v4746_v45 }
  0xac   : > { %7636 = vst [vmem:[#allocation45_spill] sm:$0xff] %v5149_v44  ;;  %v963_v16 = vmul.f32 %v5011_v63, %v4722_v32  ;;  %v1013_v52 = vmul.f32 %v4726_v34, %v5130_v14  ;;  %v881_v10 = vadd.f32 %v865_v4, %v832_v42  ;;  %v1352_v38 = vadd.f32 %v1336_v46, %v1304_v40 }
  0xad   : > { %v1544_v11 = vadd.f32 %v1528_v5, %v1496_v60  ;;  %v1433_v26 = vmul.f32 %v5032_v36, %v4705_v19  ;;  %675 = vst.msk [vmem:[#allocation2 + $0x1b0] sm:$0xff] %vm571_vm0, %v5149_v44  ;;  %3973 = vmatmul.msk.f32.gmra.mxu0 %vm571_vm0, %v5084_v30  ;;  %v1077_v54 = vadd.f32 %v1061_v57, %v1028_v29  ;;  %v5176_v60 = vld [vmem:[#allocation2 + $0x16f] sm:$0xff] }
  0xae   : > { %v1481_v5 = vmul.f32 %v5034_v0, %v4714_v25  ;;  %v719_v31 = vmul.f32 %v4926_v41, %v4696_v13  ;;  %v930_v48 = vadd.f32 %v914_v20, %v881_v10  ;;  %v1400_v46 = vadd.f32 %v1384_v27, %v1352_v38  ;;  %v5189_v27 = vld [vmem:[#allocation2 + $0x170] sm:$0xff] }
  0xaf   : > { %3985 = vmatmul.msk.f32.gmra.mxu1 %vm571_vm0, %v1688_v51  ;;  %v1593_v4 = vadd.f32 %v1577_v53, %v1544_v11  ;;  %v768_v42 = vmul.f32 %v4953_v62, %v4700_v15  ;;  %v1062_v30 = vmul.f32 %v4740_v43, %v5161_v7  ;;  %v1111_v57 = vmul.f32 %v4746_v45, %v5163_v24  ;;  %v5193_v10 = vld [vmem:[#allocation2 + $0x171] sm:$0xff] }
  0xb0   : > { %v735_v51 = vadd.f32 %v4694_v12, %v719_v31  ;;  %v817_v29 = vmul.f32 %v4961_v21, %v4702_v17  ;;  %v979_v53 = vadd.f32 %v963_v16, %v930_v48  ;;  %v1449_v20 = vadd.f32 %v1433_v26, %v1400_v46 }
  0xb1   : > { %v1641_v41 = vadd.f32 %v1625_v37, %v1593_v4  ;;  %v1529_v40 = vmul.f32 %v5055_v6, %v4722_v32  ;;  %v1126_v62 = vadd.f32 %v1110_v8, %v1077_v54  ;;  %v1578_v11 = vmul.f32 %v5176_v60, %v4726_v34  ;;  %v5203_v54 = vld [vmem:[#allocation2 + $0xc7] sm:$0xff] }
  0xb2   : > { %v784_v38 = vadd.f32 %v768_v42, %v735_v51  ;;  %v866_v31 = vmul.f32 %v5070_v23, %v4705_v19  ;;  %v1029_v21 = vadd.f32 %v1013_v52, %v979_v53  ;;  %v1497_v37 = vadd.f32 %v1481_v5, %v1449_v20  ;;  %v5209_v52 = vld [vmem:[#allocation2 + $0xc8] sm:$0xff] }
  0xb3   : > { %v1689_v44 = vadd.f32 %v1673_v3, %v1641_v41  ;;  %v1289_v16 = vmul.f32 %v4985_v56, %v4696_v13  ;;  %v1626_v26 = vmul.f32 %v5189_v27, %v4740_v43  ;;  %v915_v8 = vmul.f32 %v5078_v9, %v4714_v25 }
  0xb4   : > { %v833_v4 = vadd.f32 %v817_v29, %v784_v38  ;;  %v1337_v48 = vmul.f32 %v4995_v35, %v4700_v15  ;;  %v1545_v46 = vadd.f32 %v1529_v40, %v1497_v37  ;;  %v1674_v3 = vmul.f32 %v5193_v10, %v4746_v45  ;;  %v5218_v29 = vld [vmem:[#allocation2 + $0xc9] sm:$0xff] }
  0xb5   : > { %v1305_v56 = vadd.f32 %v4694_v12, %v1289_v16  ;;  %v1385_v5 = vmul.f32 %v4997_v61, %v4702_v17  ;;  %3974 = vmatmul.msk.f32.gmra.mxu0 %vm571_vm0, %v1126_v62  ;;  %v1078_v42 = vadd.f32 %v1062_v30, %v1029_v21  ;;  %v964_v35 = vmul.f32 %v5090_v2, %v4722_v32  ;;  %v5226_v30 = vld [vmem:[#allocation2 + $0x187] sm:$0xff]  ;;  %v5237_v16 = vld [vmem:[%s4639_s19 + $0xd0] sm:$0xff] }
  0xb6   : > { %v882_v51 = vadd.f32 %v866_v31, %v833_v4  ;;  %v1594_v41 = vadd.f32 %v1578_v11, %v1545_v46  ;;  %v1014_v53 = vmul.f32 %v4726_v34, %v5203_v54  ;;  %v1434_v61 = vmul.f32 %v5099_v22, %v4705_v19  ;;  %7637 = vst [vmem:[#allocation46_spill] sm:$0xff] %v5237_v16 }
  0xb7   : > { %3986 = vmatmul.msk.f32.gmra.mxu1 %vm571_vm0, %v1689_v44  ;;  %v1353_v20 = vadd.f32 %v1337_v48, %v1305_v56  ;;  %v1063_v44 = vmul.f32 %v4740_v43, %v5209_v52  ;;  %v720_v62 = vmul.f32 %v4966_v28, %v4696_v13  ;;  %v769_v38 = vmul.f32 %v4979_v47, %v4700_v15 }
  0xb8   : > { %v931_v40 = vadd.f32 %v915_v8, %v882_v51  ;;  %v1642_v11 = vadd.f32 %v1626_v26, %v1594_v41  ;;  %v1112_v31 = vmul.f32 %v4746_v45, %v5218_v29  ;;  %v1482_v37 = vmul.f32 %v5124_v1, %v4714_v25  ;;  %676 = vst.msk [vmem:[#allocation2 + $0x1c8] sm:$0xff] %vm571_vm0, %v5237_v16 }
  0xb9   : > { %v1401_v21 = vadd.f32 %v1385_v5, %v1353_v20  ;;  %v1127_v4 = vadd.f32 %v1111_v57, %v1078_v42  ;;  %v736_v48 = vadd.f32 %v4694_v12, %v720_v62  ;;  %v818_v28 = vmul.f32 %v5011_v63, %v4702_v17  ;;  %v5248_v57 = vld [vmem:[#allocation2 + $0x188] sm:$0xff] }
  0xba   : > { %v980_v8 = vadd.f32 %v964_v35, %v931_v40  ;;  %v1690_v47 = vadd.f32 %v1674_v3, %v1642_v11  ;;  %v1530_v46 = vmul.f32 %v5126_v59, %v4722_v32  ;;  %v1579_v56 = vmul.f32 %v5226_v30, %v4726_v34  ;;  %v5250_v42 = vld [vmem:[#allocation2 + $0x189] sm:$0xff]  ;;  %v5265_v40 = vld [vmem:[%s4639_s19 + $0xd8] sm:$0xff] }
  0xbb   : > { %v1450_v26 = vadd.f32 %v1434_v61, %v1401_v21  ;;  %v785_v51 = vadd.f32 %v769_v38, %v736_v48  ;;  %v867_v63 = vmul.f32 %v5130_v14, %v4705_v19  ;;  %v1290_v35 = vmul.f32 %v5032_v36, %v4696_v13  ;;  %v5258_v20 = vld [vmem:[#allocation2 + $0xcf] sm:$0xff]  ;;  %7638 = vst [vmem:[#allocation47_spill] sm:$0xff] %v5265_v40 }
  0xbc   : > { %v1030_v5 = vadd.f32 %v1014_v53, %v980_v8  ;;  %v916_v41 = vmul.f32 %v5161_v7, %v4714_v25  ;;  %v1338_v53 = vmul.f32 %v5034_v0, %v4700_v15  ;;  %v1386_v61 = vmul.f32 %v5055_v6, %v4702_v17  ;;  %v5269_v38 = vld [vmem:[#allocation2 + $0xd0] sm:$0xff]  ;;  %677 = vst.msk [vmem:[#allocation2 + $0x1d0] sm:$0xff] %vm571_vm0, %v5265_v40 }
  0xbd   : > { %v1498_v3 = vadd.f32 %v1482_v37, %v1450_v26  ;;  %3975 = vmatmul.msk.f32.gmra.mxu0 %vm571_vm0, %v1127_v4  ;;  %v834_v36 = vadd.f32 %v818_v28, %v785_v51  ;;  %v1306_v11 = vadd.f32 %v4694_v12, %v1290_v35  ;;  %v1627_v0 = vmul.f32 %v5248_v57, %v4740_v43  ;;  %v5282_v8 = vld [vmem:[#allocation2 + $0xd1] sm:$0xff] }
  0xbe   : > { %v1079_v62 = vadd.f32 %v1063_v44, %v1030_v5  ;;  %v1675_v6 = vmul.f32 %v5250_v42, %v4746_v45  ;;  %v965_v37 = vmul.f32 %v5163_v24, %v4722_v32  ;;  %v1015_v44 = vmul.f32 %v4726_v34, %v5258_v20 }
  0xbf   : > { %3987 = vmatmul.msk.f32.gmra.mxu1 %vm571_vm0, %v1690_v47  ;;  %v1546_v21 = vadd.f32 %v1530_v46, %v1498_v3  ;;  %v883_v4 = vadd.f32 %v867_v63, %v834_v36  ;;  %v1354_v48 = vadd.f32 %v1338_v53, %v1306_v11  ;;  %v1435_v28 = vmul.f32 %v5176_v60, %v4705_v19  ;;  %v5288_v46 = vld [vmem:[#allocation2 + $0x18f] sm:$0xff] }
  0xc0   : > { %v1064_v26 = vmul.f32 %v4740_v43, %v5269_v38  ;;  %v721_v5 = vmul.f32 %v5070_v23, %v4696_v13  ;;  %v770_v51 = vmul.f32 %v5078_v9, %v4700_v15  ;;  %v1128_v63 = vadd.f32 %v1112_v31, %v1079_v62  ;;  %v5298_v11 = vld [vmem:[#allocation2 + $0x190] sm:$0xff] }
  0xc1   : > { %v1595_v47 = vadd.f32 %v1579_v56, %v1546_v21  ;;  %v932_v35 = vadd.f32 %v916_v41, %v883_v4  ;;  %v1402_v3 = vadd.f32 %v1386_v61, %v1354_v48  ;;  %v1483_v53 = vmul.f32 %v5189_v27, %v4714_v25  ;;  %v5307_v61 = vld [vmem:[#allocation2 + $0x191] sm:$0xff] }
  0xc2   : > { %v1113_v56 = vmul.f32 %v4746_v45, %v5282_v8  ;;  %v737_v21 = vadd.f32 %v4694_v12, %v721_v5  ;;  %v819_v23 = vmul.f32 %v5090_v2, %v4702_v17  ;;  %v1531_v9 = vmul.f32 %v5193_v10, %v4722_v32 }
  0xc3   : > { %v1643_v36 = vadd.f32 %v1627_v0, %v1595_v47  ;;  %v981_v40 = vadd.f32 %v965_v37, %v932_v35  ;;  %v1451_v16 = vadd.f32 %v1435_v28, %v1402_v3  ;;  %v1580_v31 = vmul.f32 %v5288_v46, %v4726_v34  ;;  %v5316_v28 = vld [vmem:[#allocation2 + $0xe7] sm:$0xff] }
  0xc4   : > { %v786_v62 = vadd.f32 %v770_v51, %v737_v21  ;;  %v868_v0 = vmul.f32 %v5203_v54, %v4705_v19  ;;  %v1291_v4 = vmul.f32 %v5099_v22, %v4696_v13  ;;  %v1628_v48 = vmul.f32 %v5298_v11, %v4740_v43 }
  0xc5   : > { %v1691_v41 = vadd.f32 %v1675_v6, %v1643_v36  ;;  %3976 = vmatmul.msk.f32.gmra.mxu0 %vm571_vm0, %v1128_v63  ;;  %v1031_v2 = vadd.f32 %v1015_v44, %v981_v40  ;;  %v1499_v37 = vadd.f32 %v1483_v53, %v1451_v16  ;;  %v1339_v6 = vmul.f32 %v5124_v1, %v4700_v15  ;;  %v5330_v1 = vld [vmem:[#allocation2 + $0xe8] sm:$0xff] }
  0xc6   : > { %v835_v47 = vadd.f32 %v819_v23, %v786_v62  ;;  %v917_v5 = vmul.f32 %v5209_v52, %v4714_v25  ;;  %v1307_v22 = vadd.f32 %v4694_v12, %v1291_v4  ;;  %v1387_v40 = vmul.f32 %v5126_v59, %v4702_v17  ;;  %v5334_v53 = vld [vmem:[#allocation2 + $0xe9] sm:$0xff] }
  0xc7   : > { %3988 = vmatmul.msk.f32.gmra.mxu1 %vm571_vm0, %v1691_v41  ;;  %v1080_v16 = vadd.f32 %v1064_v26, %v1031_v2  ;;  %v1547_v44 = vadd.f32 %v1531_v9, %v1499_v37  ;;  %v1676_v51 = vmul.f32 %v5307_v61, %v4746_v45  ;;  %v966_v63 = vmul.f32 %v5218_v29, %v4722_v32  ;;  %v5338_v23 = vld [vmem:[#allocation2 + $0x1a7] sm:$0xff] }
  0xc8   : > { %v884_v35 = vadd.f32 %v868_v0, %v835_v47  ;;  %v1016_v3 = vmul.f32 %v4726_v34, %v5316_v28  ;;  %v1355_v36 = vadd.f32 %v1339_v6, %v1307_v22  ;;  %v1436_v59 = vmul.f32 %v5226_v30, %v4705_v19  ;;  %v5349_v37 = vld [vmem:[%s4639_s19 + $0xe0] sm:$0xff]  ;;  %v5353_v6 = vld [vmem:[#allocation2 + $0x1a8] sm:$0xff] }
  0xc9   : > { %v1129_v26 = vadd.f32 %v1113_v56, %v1080_v16  ;;  %v1596_v21 = vadd.f32 %v1580_v31, %v1547_v44  ;;  %v722_v9 = vmul.f32 %v5130_v14, %v4696_v13  ;;  %v771_v41 = vmul.f32 %v5161_v7, %v4700_v15  ;;  %678 = vst.msk [vmem:[#allocation2 + $0x1e8] sm:$0xff] %vm571_vm0, %v5349_v37  ;;  %v5365_v16 = vld [vmem:[#allocation2 + $0x1a9] sm:$0xff] }
  0xca   : > { %v933_v62 = vadd.f32 %v917_v5, %v884_v35  ;;  %v1065_v0 = vmul.f32 %v4740_v43, %v5330_v1  ;;  %v1403_v4 = vadd.f32 %v1387_v40, %v1355_v36  ;;  %v1484_v2 = vmul.f32 %v5248_v57, %v4714_v25 }
  0xcb   : > { %v1644_v56 = vadd.f32 %v1628_v48, %v1596_v21  ;;  %v1114_v31 = vmul.f32 %v4746_v45, %v5334_v53  ;;  %v738_v14 = vadd.f32 %v4694_v12, %v722_v9  ;;  %v820_v7 = vmul.f32 %v5163_v24, %v4702_v17 }
  0xcc   : > { %v982_v47 = vadd.f32 %v966_v63, %v933_v62  ;;  %v1452_v5 = vadd.f32 %v1436_v59, %v1403_v4  ;;  %v1532_v22 = vmul.f32 %v5250_v42, %v4722_v32  ;;  %v1581_v48 = vmul.f32 %v5338_v23, %v4726_v34  ;;  %v5373_v59 = vld [vmem:[#allocation2 + $0xef] sm:$0xff] }
  0xcd   : > { %3977 = vmatmul.msk.f32.gmra.mxu0 %vm571_vm0, %v1129_v26  ;;  %v1692_v40 = vadd.f32 %v1676_v51, %v1644_v56  ;;  %v787_v12 = vadd.f32 %v771_v41, %v738_v14  ;;  %v869_v24 = vmul.f32 %v5258_v20, %v4705_v19  ;;  %v1292_v44 = vmul.f32 %v5176_v60, %v4696_v13  ;;  %v5378_v51 = vld [vmem:[%s4639_s19 + $0xe8] sm:$0xff]  ;;  %v5386_v60 = vld [vmem:[%s7545_s2] ss:$0 sm:$0xff]  ;;  %v5395_v56 = vld [vmem:[#allocation2 + $0xf0] sm:$0xff] }
  0xce   : > { %v1032_v63 = vadd.f32 %v1016_v3, %v982_v47  ;;  %v1500_v35 = vadd.f32 %v1484_v2, %v1452_v5  ;;  %v1629_v36 = vmul.f32 %v5353_v6, %v4740_v43  ;;  %v1340_v26 = vmul.f32 %v5189_v27, %v4700_v15  ;;  %7639 = vst [vmem:[#allocation48_spill] sm:$0xff] %v5378_v51  ;;  %v5401_v47 = vld [vmem:[#allocation2 + $0xf1] sm:$0xff] }
  0xcf   : > { %3989 = vmatmul.msk.f32.gmra.mxu1 %vm571_vm0, %v1692_v40  ;;  %v836_v21 = vadd.f32 %v820_v7, %v787_v12  ;;  %v918_v9 = vmul.f32 %v5269_v38, %v4714_v25  ;;  %v1308_v3 = vadd.f32 %v5386_v60, %v1292_v44  ;;  %v1388_v41 = vmul.f32 %v5193_v10, %v4702_v17  ;;  %v5405_v40 = vld [vmem:[#allocation2 + $0x1af] sm:$0xff] }
  0xd0   : > { %v1081_v62 = vadd.f32 %v1065_v0, %v1032_v63  ;;  %v1548_v27 = vadd.f32 %v1532_v22, %v1500_v35  ;;  %v1677_v4 = vmul.f32 %v5365_v16, %v4746_v45  ;;  %v967_v2 = vmul.f32 %v5282_v8, %v4722_v32  ;;  %679 = vst.msk [vmem:[#allocation2 + $0x1f0] sm:$0xff] %vm571_vm0, %v5378_v51 }
  0xd1   : > { %v885_v14 = vadd.f32 %v869_v24, %v836_v21  ;;  %v1017_v7 = vmul.f32 %v4726_v34, %v5373_v59  ;;  %v1356_v10 = vadd.f32 %v1340_v26, %v1308_v3  ;;  %v1437_v0 = vmul.f32 %v5288_v46, %v4705_v19 }
  0xd2   : > { %v1130_v5 = vadd.f32 %v1114_v31, %v1081_v62  ;;  %v1597_v22 = vadd.f32 %v1581_v48, %v1548_v27  ;;  %v723_v12 = vmul.f32 %v5203_v54, %v4696_v13  ;;  %v772_v44 = vmul.f32 %v5209_v52, %v4700_v15  ;;  %v5417_v48 = vld [vmem:[#allocation2 + $0x1b0] sm:$0xff] }
  0xd3   : > { %v934_v24 = vadd.f32 %v918_v9, %v885_v14  ;;  %v1066_v63 = vmul.f32 %v4740_v43, %v5395_v56  ;;  %v1404_v35 = vadd.f32 %v1388_v41, %v1356_v10  ;;  %v1485_v26 = vmul.f32 %v5298_v11, %v4714_v25  ;;  %v5427_v27 = vld [vmem:[#allocation2 + $0x1b1] sm:$0xff] }
  0xd4   : > { %v1645_v21 = vadd.f32 %v1629_v36, %v1597_v22  ;;  %v1115_v31 = vmul.f32 %v4746_v45, %v5401_v47  ;;  %v739_v3 = vadd.f32 %v5386_v60, %v723_v12  ;;  %v821_v54 = vmul.f32 %v5218_v29, %v4702_v17 }
  0xd5   : > { %3978 = vmatmul.msk.f32.gmra.mxu0 %vm571_vm0, %v1130_v5  ;;  %v983_v52 = vadd.f32 %v967_v2, %v934_v24  ;;  %v1453_v9 = vadd.f32 %v1437_v0, %v1404_v35  ;;  %v1533_v41 = vmul.f32 %v5307_v61, %v4722_v32  ;;  %v1582_v36 = vmul.f32 %v5405_v40, %v4726_v34 }
  0xd6   : > { %v1693_v62 = vadd.f32 %v1677_v4, %v1645_v21  ;;  %v788_v14 = vadd.f32 %v772_v44, %v739_v3  ;;  %v870_v10 = vmul.f32 %v5316_v28, %v4705_v19  ;;  %v1293_v29 = vmul.f32 %v5226_v30, %v4696_v13 }
  0xd7   : > { %v1033_v22 = vadd.f32 %v1017_v7, %v983_v52  ;;  %v1501_v5 = vadd.f32 %v1485_v26, %v1453_v9  ;;  %v1630_v2 = vmul.f32 %v5417_v48, %v4740_v43  ;;  %v1341_v0 = vmul.f32 %v5248_v57, %v4700_v15 }
  0xd8   : > { %3990 = vmatmul.msk.f32.gmra.mxu1 %vm571_vm0, %v1693_v62  ;;  %v837_v4 = vadd.f32 %v821_v54, %v788_v14  ;;  %v919_v12 = vmul.f32 %v5330_v1, %v4714_v25  ;;  %v1309_v44 = vadd.f32 %v5386_v60, %v1293_v29  ;;  %v1389_v24 = vmul.f32 %v5250_v42, %v4702_v17  ;;  %v5451_v42 = vld [vmem:[#allocation2 + $0x1c7] sm:$0xff]  ;;  %v5462_v29 = vld [vmem:[%s4639_s19 + $0xf0] sm:$0xff] }
  0xd9   : > { %v1082_v30 = vadd.f32 %v1066_v63, %v1033_v22  ;;  %v1549_v7 = vadd.f32 %v1533_v41, %v1501_v5  ;;  %v1678_v35 = vmul.f32 %v5427_v27, %v4746_v45  ;;  %v968_v57 = vmul.f32 %v5334_v53, %v4722_v32  ;;  %7640 = vst [vmem:[#allocation49_spill] sm:$0xff] %v5462_v29 }
  0xda   : > { %v886_v26 = vadd.f32 %v870_v10, %v837_v4  ;;  %v1018_v21 = vmul.f32 %v4935_v49, %v4726_v34  ;;  %v1357_v3 = vadd.f32 %v1341_v0, %v1309_v44  ;;  %v1438_v54 = vmul.f32 %v5338_v23, %v4705_v19  ;;  %680 = vst.msk [vmem:[#allocation2 + $0x208] sm:$0xff] %vm571_vm0, %v5462_v29 }
  0xdb   : > { %v1131_v52 = vadd.f32 %v1115_v31, %v1082_v30  ;;  %v1598_v9 = vadd.f32 %v1582_v36, %v1549_v7  ;;  %v724_v63 = vmul.f32 %v5258_v20, %v4696_v13  ;;  %v773_v41 = vmul.f32 %v5269_v38, %v4700_v15  ;;  %v5467_v20 = vld [vmem:[#allocation2 + $0x1c8] sm:$0xff] }
  0xdc   : > { %v935_v62 = vadd.f32 %v919_v12, %v886_v26  ;;  %v1067_v14 = vmul.f32 %v4937_v50, %v4740_v43  ;;  %v1405_v10 = vadd.f32 %v1389_v24, %v1357_v3  ;;  %v1486_v49 = vmul.f32 %v5353_v6, %v4714_v25  ;;  %v5489_v26 = vld [vmem:[%s4639_s19 + $0xf8] sm:$0xff]  ;;  %s3824_s19 = scalar_lea.hbm %s7681_s13, %s4042_s9 }
  0xdd   : > { %3979 = vmatmul.msk.f32.gmra.mxu0 %vm571_vm0, %v1131_v52  ;;  %v1646_v31 = vadd.f32 %v1630_v2, %v1598_v9  ;;  %v1116_v36 = vmul.f32 %v4947_v58, %v4746_v45  ;;  %v740_v38 = vadd.f32 %v5386_v60, %v724_v63  ;;  %v822_v50 = vmul.f32 %v5282_v8, %v4702_v17  ;;  %v5478_v2 = vld [vmem:[#allocation2 + $0x1c9] sm:$0xff]  ;;  %s3827_s21 = sshll.u32 %s3824_s19, 4  ;;  %s3828_s21 = int_to_ptr.hbm [resolvable:$true] %s3827_s21 }
  0xde   : > { %v984_v22 = vadd.f32 %v968_v57, %v935_v62  ;;  %v1454_v5 = vadd.f32 %v1438_v54, %v1405_v10  ;;  %v1534_v0 = vmul.f32 %v5365_v16, %v4722_v32  ;;  %v1583_v4 = vmul.f32 %v5451_v42, %v4726_v34  ;;  %7641 = vst [vmem:[#allocation50_spill] sm:$0xff] %v5489_v26  ;;  %s4351_s27 = sshra.s32 %s3828_s21, 4  ;;  %s4352_s27 = int_to_ptr.hbm [resolvable:$true] %s4351_s27 }
  0xdf   : > { %v1694_v58 = vadd.f32 %v1678_v35, %v1646_v31  ;;  %v789_v12 = vadd.f32 %v773_v41, %v740_v38  ;;  %v871_v44 = vmul.f32 %v5373_v59, %v4705_v19  ;;  %v1294_v8 = vmul.f32 %v5288_v46, %v4696_v13  ;;  %681 = vst.msk [vmem:[#allocation2 + $0x210] sm:$0xff] %vm571_vm0, %v5489_v26  ;;  %s4353_s25 = scalar_lea.hbm %s4352_s27, 256  ;;  %p4358_p12 = scmp.lt.s32.totalorder %s4352_s27, %s7681_s13 }
  0xe0   : > { %v1034_v24 = vadd.f32 %v1018_v21, %v984_v22  ;;  %v1502_v30 = vadd.f32 %v1486_v49, %v1454_v5  ;;  %v1631_v7 = vmul.f32 %v5467_v20, %v4740_v43  ;;  %v1342_v57 = vmul.f32 %v5298_v11, %v4700_v15  ;;  %v5507_v49 = vld [vmem:[#allocation2 + $0x1cf] sm:$0xff]  ;;  %p4354_p1 = scmp.ne.s32.totalorder %s4352_s27, %s4353_s25  ;;  %p4359_p8 = scmp.lt.s32.totalorder %s4357_s7, %s4353_s25 }
  0xe1   : > { %3991 = vmatmul.msk.f32.gmra.mxu1 %vm571_vm0, %v1694_v58  ;;  %v838_v35 = vadd.f32 %v822_v50, %v789_v12  ;;  %v920_v3 = vmul.f32 %v5395_v56, %v4714_v25  ;;  %v1310_v54 = vadd.f32 %v5386_v60, %v1294_v8  ;;  %v1390_v46 = vmul.f32 %v5307_v61, %v4702_v17  ;;  %v7642_v22 = vld [vmem:[#allocation39_spill] sm:$0xff] }
  0xe2   : > { %v1083_v21 = vadd.f32 %v1067_v14, %v1034_v24  ;;  %v1550_v52 = vadd.f32 %v1534_v0, %v1502_v30  ;;  %v1679_v9 = vmul.f32 %v5478_v2, %v4746_v45  ;;  %v969_v11 = vmul.f32 %v5401_v47, %v4722_v32  ;;  %v855_v58 = vld [vmem:[#allocation2 + $0x107] sm:$0xff]  ;;  %p4355_p3 = pnand %p4354_p1, %p4599_p13  ;;  %p4360_p7 = por %p4359_p8, %p4358_p12 }
  0xe3   : > { %v887_v63 = vadd.f32 %v871_v44, %v838_v35  ;;  %v1019_v41 = vmul.f32 %v4970_v33, %v4726_v34  ;;  %v1358_v62 = vadd.f32 %v1342_v57, %v1310_v54  ;;  %v1439_v10 = vmul.f32 %v5405_v40, %v4705_v19  ;;  %v5520_v44 = vld [vmem:[#allocation2 + $0x1d0] sm:$0xff]  ;;  %v904_v35 = vld [vmem:[#allocation2 + $0x108] sm:$0xff] }
  0xe4   : > { %v1132_v61 = vadd.f32 %v1116_v36, %v1083_v21  ;;  %v1599_v14 = vadd.f32 %v1583_v4, %v1550_v52  ;;  %v725_v31 = vmul.f32 %v5316_v28, %v4696_v13  ;;  %v774_v38 = vmul.f32 %v5330_v1, %v4700_v15  ;;  %v7643_v4 = vld [vmem:[#allocation40_spill] sm:$0xff]  ;;  %p4356_p5 = pneg %p4355_p3 }
  0xe5   : > { %v936_v50 = vadd.f32 %v920_v3, %v887_v63  ;;  %v1068_v5 = vmul.f32 %v7642_v22, %v4740_v43  ;;  %v1406_v0 = vadd.f32 %v1390_v46, %v1358_v62  ;;  %v1487_v33 = vmul.f32 %v5417_v48, %v4714_v25  ;;  %v5529_v3 = vld [vmem:[#allocation2 + $0x1d1] sm:$0xff]  ;;  %v953_v21 = vld [vmem:[#allocation2 + $0x109] sm:$0xff] }
  0xe6   : > { %3980 = vmatmul.msk.f32.gmra.mxu0 %vm571_vm0, %v1132_v61  ;;  %v1647_v36 = vadd.f32 %v1631_v7, %v1599_v14  ;;  %v1117_v12 = vmul.f32 %v7643_v4, %v4746_v45  ;;  %v741_v28 = vadd.f32 %v5386_v60, %v725_v31  ;;  %v823_v1 = vmul.f32 %v5334_v53, %v4702_v17  ;;  %v1003_v62 = vld [vmem:[#allocation2 + $0x127] sm:$0xff]  ;;  %p4361_p9 = pnand %p4360_p7, %p4356_p5 }
  0xe7   : > { %v985_v8 = vadd.f32 %v969_v11, %v936_v50  ;;  %v1455_v24 = vadd.f32 %v1439_v10, %v1406_v0  ;;  %v1535_v30 = vmul.f32 %v5427_v27, %v4722_v32  ;;  %v1584_v57 = vmul.f32 %v5507_v49, %v4726_v34  ;;  %v1052_v22 = vld [vmem:[#allocation2 + $0x128] sm:$0xff] }
  0xe8   : > { %v1695_v7 = vadd.f32 %v1679_v9, %v1647_v36  ;;  %v790_v54 = vadd.f32 %v774_v38, %v741_v28  ;;  %v872_v46 = vmul.f32 %v4705_v19, %v855_v58  ;;  %v1295_v52 = vmul.f32 %v5338_v23, %v4696_v13 }
  0xe9   : > { %v1035_v53 = vadd.f32 %v1019_v41, %v985_v8  ;;  %v1503_v11 = vadd.f32 %v1487_v33, %v1455_v24  ;;  %v1632_v63 = vmul.f32 %v5520_v44, %v4740_v43  ;;  %v1343_v10 = vmul.f32 %v5353_v6, %v4700_v15  ;;  %v1101_v33 = vld [vmem:[#allocation2 + $0x129] sm:$0xff] }
  0xea   : > { %3992 = vmatmul.msk.f32.gmra.mxu1 %vm571_vm0, %v1695_v7  ;;  %v839_v9 = vadd.f32 %v823_v1, %v790_v54  ;;  %v921_v61 = vmul.f32 %v4714_v25, %v904_v35  ;;  %v1311_v14 = vadd.f32 %v5386_v60, %v1295_v52  ;;  %v1391_v31 = vmul.f32 %v5365_v16, %v4702_v17  ;;  %v5549_v1 = vld [vmem:[#allocation2 + $0x1e7] sm:$0xff]  ;;  %v856_v7 = vld [vmem:[#allocation2 + $0x10f] sm:$0xff] }
  0xeb   : > { %v1084_v23 = vadd.f32 %v1068_v5, %v1035_v53  ;;  %v1551_v41 = vadd.f32 %v1535_v30, %v1503_v11  ;;  %v1680_v38 = vmul.f32 %v5529_v3, %v4746_v45  ;;  %v970_v50 = vmul.f32 %v4722_v32, %v953_v21  ;;  %v5560_v54 = vld [vmem:[#allocation2 + $0x1e8] sm:$0xff]  ;;  %v905_v11 = vld [vmem:[#allocation2 + $0x110] sm:$0xff] }
  0xec   : > { %v888_v0 = vadd.f32 %v872_v46, %v839_v9  ;;  %v1020_v6 = vmul.f32 %v4726_v34, %v1003_v62  ;;  %v1359_v58 = vadd.f32 %v1343_v10, %v1311_v14  ;;  %v1440_v36 = vmul.f32 %v5451_v42, %v4705_v19 }
  0xed   : > { %v1133_v4 = vadd.f32 %v1117_v12, %v1084_v23  ;;  %v1600_v28 = vadd.f32 %v1584_v57, %v1551_v41  ;;  %v726_v16 = vmul.f32 %v5373_v59, %v4696_v13  ;;  %v775_v5 = vmul.f32 %v5395_v56, %v4700_v15  ;;  %v1004_v41 = vld [vmem:[#allocation2 + $0x12f] sm:$0xff] }
  0xee   : > { %v937_v8 = vadd.f32 %v921_v61, %v888_v0  ;;  %v1069_v24 = vmul.f32 %v4740_v43, %v1052_v22  ;;  %v1407_v30 = vadd.f32 %v1391_v31, %v1359_v58  ;;  %v1488_v35 = vmul.f32 %v5467_v20, %v4714_v25  ;;  %v954_v61 = vld [vmem:[#allocation2 + $0x111] sm:$0xff] }
  0xef   : > { %3981 = vmatmul.msk.f32.gmra.mxu0 %vm571_vm0, %v1133_v4  ;;  %v1648_v12 = vadd.f32 %v1632_v63, %v1600_v28  ;;  %v1118_v57 = vmul.f32 %v4746_v45, %v1101_v33  ;;  %v742_v59 = vadd.f32 %v5386_v60, %v726_v16  ;;  %v824_v56 = vmul.f32 %v5401_v47, %v4702_v17  ;;  %v5569_v63 = vld [vmem:[#allocation2 + $0x1e9] sm:$0xff] }
  0xf0   : > { %v986_v46 = vadd.f32 %v970_v50, %v937_v8  ;;  %v1456_v21 = vadd.f32 %v1440_v36, %v1407_v30  ;;  %v1536_v52 = vmul.f32 %v5478_v2, %v4722_v32  ;;  %v1585_v53 = vmul.f32 %v5549_v1, %v4726_v34  ;;  %v1053_v16 = vld [vmem:[#allocation2 + $0x130] sm:$0xff] }
  0xf1   : > { %v1696_v62 = vadd.f32 %v1680_v38, %v1648_v12  ;;  %v791_v10 = vadd.f32 %v775_v5, %v742_v59  ;;  %v873_v9 = vmul.f32 %v4705_v19, %v856_v7  ;;  %v1296_v14 = vmul.f32 %v5405_v40, %v4696_v13  ;;  %v5586_v40 = vld [vmem:[%s7547_s4] ss:$0 sm:$0xff]  ;;  %v1204_v7 = vpop.f32.mrf.mxu0 }
  0xf2   : > { %v1036_v47 = vadd.f32 %v1020_v6, %v986_v46  ;;  %v1504_v31 = vadd.f32 %v1488_v35, %v1456_v21  ;;  %v1633_v23 = vmul.f32 %v5560_v54, %v4740_v43  ;;  %v1344_v50 = vmul.f32 %v5417_v48, %v4700_v15  ;;  %v1102_v35 = vld [vmem:[#allocation2 + $0x131] sm:$0xff] }
  0xf3   : > { %3993 = vmatmul.msk.f32.gmra.mxu1 %vm571_vm0, %v1696_v62  ;;  %v840_v38 = vadd.f32 %v824_v56, %v791_v10  ;;  %v922_v22 = vmul.f32 %v4714_v25, %v905_v11  ;;  %v1312_v0 = vadd.f32 %v5386_v60, %v1296_v14  ;;  %v1392_v33 = vmul.f32 %v5427_v27, %v4702_v17  ;;  %v5600_v21 = vld [vmem:[#allocation2 + $0x1ef] sm:$0xff] }
  0xf4   : > { %v1085_v6 = vadd.f32 %v1069_v24, %v1036_v47  ;;  %v1552_v58 = vadd.f32 %v1536_v52, %v1504_v31  ;;  %v1681_v48 = vmul.f32 %v5569_v63, %v4746_v45  ;;  %v971_v36 = vmul.f32 %v4722_v32, %v954_v61  ;;  %v1618_v61 = vld [vmem:[#allocation2 + $0x1f0] sm:$0xff] }
  0xf5   : > { %v889_v4 = vadd.f32 %v873_v9, %v840_v38  ;;  %v1021_v28 = vmul.f32 %v4726_v34, %v1004_v41  ;;  %v1360_v5 = vadd.f32 %v1344_v50, %v1312_v0  ;;  %v1441_v27 = vmul.f32 %v5507_v49, %v4705_v19  ;;  %v1666_v50 = vld [vmem:[#allocation2 + $0x1f1] sm:$0xff] }
  0xf6   : > { %v1134_v8 = vadd.f32 %v1118_v57, %v1085_v6  ;;  %v1601_v30 = vadd.f32 %v1585_v53, %v1552_v58  ;;  %v1297_v24 = vmul.f32 %v5451_v42, %v4696_v13  ;;  %v1345_v12 = vmul.f32 %v5467_v20, %v4700_v15 }
  0xf7   : > { %v938_v59 = vadd.f32 %v922_v22, %v889_v4  ;;  %v1408_v56 = vadd.f32 %v1392_v33, %v1360_v5  ;;  %v1489_v46 = vmul.f32 %v5520_v44, %v4714_v25  ;;  %v1205_v52 = vadd.f32 %v5586_v40, %v1204_v7 }
  0xf8   : > { %3982 = vmatmul.msk.f32.gmra.mxu0 %vm571_vm0, %v1134_v8  ;;  %v1649_v57 = vadd.f32 %v1633_v23, %v1601_v30  ;;  %v1070_v53 = vmul.f32 %v4740_v43, %v1053_v16  ;;  %v1313_v11 = vadd.f32 %v5386_v60, %v1297_v24  ;;  %v1393_v42 = vmul.f32 %v5478_v2, %v4702_v17  ;;  %v1619_v30 = vld [vmem:[#allocation2 + $0x208] sm:$0xff] }
  0xf9   : > { %v987_v20 = vadd.f32 %v971_v36, %v938_v59  ;;  %v1119_v62 = vmul.f32 %v4746_v45, %v1102_v35  ;;  %v1457_v10 = vadd.f32 %v1441_v27, %v1408_v56  ;;  %v1537_v9 = vmul.f32 %v5529_v3, %v4722_v32  ;;  %1252 = vst.msk [vmem:[#allocation3] sm:$0xff] %vm571_vm0, %v1205_v52  ;;  %v1571_v36 = vld [vmem:[#allocation2 + $0x207] sm:$0xff] }
  0xfa   : > { %v1697_v14 = vadd.f32 %v1681_v48, %v1649_v57  ;;  %v1586_v47 = vmul.f32 %v5600_v21, %v4726_v34  ;;  %v1361_v31 = vadd.f32 %v1345_v12, %v1313_v11  ;;  %v1442_v23 = vmul.f32 %v5549_v1, %v4705_v19  ;;  %v1572_v57 = vld [vmem:[#allocation2 + $0x20f] sm:$0xff] }
  0xfb   : > { %v1037_v41 = vadd.f32 %v1021_v28, %v987_v20  ;;  %v1505_v2 = vadd.f32 %v1489_v46, %v1457_v10  ;;  %v1298_v38 = vmul.f32 %v5507_v49, %v4696_v13  ;;  %v1346_v22 = vmul.f32 %v5520_v44, %v4700_v15 }
  0xfc   : > { %3994 = vmatmul.msk.f32.gmra.mxu1 %vm571_vm0, %v1697_v14  ;;  %v1634_v0 = vmul.f32 %v1618_v61, %v4740_v43  ;;  %v1409_v33 = vadd.f32 %v1393_v42, %v1361_v31  ;;  %v1490_v6 = vmul.f32 %v5560_v54, %v4714_v25  ;;  %v1394_v28 = vmul.f32 %v5529_v3, %v4702_v17  ;;  %v1667_v3 = vld [vmem:[#allocation2 + $0x209] sm:$0xff] }
  0xfd   : > { %v1086_v58 = vadd.f32 %v1070_v53, %v1037_v41  ;;  %v1553_v48 = vadd.f32 %v1537_v9, %v1505_v2  ;;  %v1314_v4 = vadd.f32 %v5386_v60, %v1298_v38  ;;  %v1682_v49 = vmul.f32 %v1666_v50, %v4746_v45  ;;  %v1620_v38 = vld [vmem:[#allocation2 + $0x210] sm:$0xff] }
  0xfe   : > { %v1458_v16 = vadd.f32 %v1442_v23, %v1409_v33  ;;  %v1538_v44 = vmul.f32 %v5569_v63, %v4722_v32  ;;  %v1443_v5 = vmul.f32 %v5600_v21, %v4705_v19  ;;  %v1299_v7 = vmul.f32 %v5549_v1, %v4696_v13  ;;  %v1207_v14 = vpop.f32.mrf.mxu0 }
  0xff   : > { %v1135_v27 = vadd.f32 %v1119_v62, %v1086_v58  ;;  %v1602_v8 = vadd.f32 %v1586_v47, %v1553_v48  ;;  %v1362_v35 = vadd.f32 %v1346_v22, %v1314_v4  ;;  %v1587_v12 = vmul.f32 %v1571_v36, %v4726_v34 }
 0x100   : > { %v1506_v24 = vadd.f32 %v1490_v6, %v1458_v16  ;;  %v1347_v59 = vmul.f32 %v5560_v54, %v4700_v15  ;;  %v1491_v52 = vmul.f32 %v1618_v61, %v4714_v25  ;;  %v1635_v11 = vmul.f32 %v1619_v30, %v4740_v43 }
 0x101   : > { %3983 = vmatmul.msk.f32.gmra.mxu0 %vm571_vm0, %v1135_v27  ;;  %v1650_v56 = vadd.f32 %v1634_v0, %v1602_v8  ;;  %v1410_v46 = vadd.f32 %v1394_v28, %v1362_v35  ;;  %v1315_v42 = vadd.f32 %v5386_v60, %v1299_v7  ;;  %v1395_v1 = vmul.f32 %v5569_v63, %v4702_v17 }
 0x102   : > { %v1554_v53 = vadd.f32 %v1538_v44, %v1506_v24  ;;  %v1683_v62 = vmul.f32 %v1667_v3, %v4746_v45  ;;  %v1539_v54 = vmul.f32 %v1666_v50, %v4722_v32  ;;  %v1588_v47 = vmul.f32 %v1572_v57, %v4726_v34 }
 0x103   : > { %v1698_v20 = vadd.f32 %v1682_v49, %v1650_v56  ;;  %v1459_v10 = vadd.f32 %v1443_v5, %v1410_v46  ;;  %v1363_v31 = vadd.f32 %v1347_v59, %v1315_v42  ;;  %v1444_v23 = vmul.f32 %v1571_v36, %v4705_v19  ;;  %v1669_v59 = vld [vmem:[#allocation2 + $0x229] sm:$0xff] }
 0x104   : > { %v1603_v9 = vadd.f32 %v1587_v12, %v1554_v53  ;;  %v1208_v41 = vadd.f32 %v5586_v40, %v1207_v14  ;;  %v1300_v63 = vmul.f32 %v5600_v21, %v4696_v13  ;;  %v1348_v22 = vmul.f32 %v1618_v61, %v4700_v15  ;;  %v1668_v21 = vld [vmem:[#allocation2 + $0x211] sm:$0xff]  ;;  %v1573_v15 = vld [vmem:[#allocation2 + $0x227] sm:$0xff] }
 0x105   : > { %3995 = vmatmul.msk.f32.gmra.mxu1 %vm571_vm0, %v1698_v20  ;;  %v1507_v2 = vadd.f32 %v1491_v52, %v1459_v10  ;;  %v1411_v33 = vadd.f32 %v1395_v1, %v1363_v31  ;;  %v1492_v6 = vmul.f32 %v1619_v30, %v4714_v25  ;;  %v1396_v36 = vmul.f32 %v1666_v50, %v4702_v17  ;;  %v1621_v30 = vld [vmem:[#allocation2 + $0x228] sm:$0xff]  ;;  %v1622_v1 = vld [vmem:[#allocation2 + $0x230] sm:$0xff] }
 0x106   : > { %v1651_v0 = vadd.f32 %v1635_v11, %v1603_v9  ;;  %1253 = vst.msk [vmem:[#allocation3 + $0x8] sm:$0xff] %vm571_vm0, %v1208_v41  ;;  %v1316_v48 = vadd.f32 %v5386_v60, %v1300_v63  ;;  %v1636_v4 = vmul.f32 %v1620_v38, %v4740_v43  ;;  %v1540_v49 = vmul.f32 %v1667_v3, %v4722_v32  ;;  %v1574_v52 = vld [vmem:[#allocation2 + $0x22f] sm:$0xff] }
 0x107   : > { %v1555_v58 = vadd.f32 %v1539_v54, %v1507_v2  ;;  %v1460_v28 = vadd.f32 %v1444_v23, %v1411_v33  ;;  %v1445_v44 = vmul.f32 %v1572_v57, %v4705_v19  ;;  %v1684_v8 = vmul.f32 %v1668_v21, %v4746_v45  ;;  %v1670_v54 = vld [vmem:[#allocation2 + $0x231] sm:$0xff] }
 0x108   : > { %v1699_v16 = vadd.f32 %v1683_v62, %v1651_v0  ;;  %v1364_v61 = vadd.f32 %v1348_v22, %v1316_v48  ;;  %v1589_v60 = vmul.f32 %v1573_v15, %v4726_v34  ;;  %v1493_v7 = vmul.f32 %v1620_v38, %v4714_v25 }
 0x109   : > { %v1604_v13 = vadd.f32 %v1588_v47, %v1555_v58  ;;  %v1508_v5 = vadd.f32 %v1492_v6, %v1460_v28  ;;  %v1637_v24 = vmul.f32 %v1621_v30, %v4740_v43  ;;  %v1541_v56 = vmul.f32 %v1668_v21, %v4722_v32 }
 0x10a   : > { %v1412_v27 = vadd.f32 %v1396_v36, %v1364_v61  ;;  %v1685_v53 = vmul.f32 %v1669_v59, %v4746_v45  ;;  %v1590_v42 = vmul.f32 %v1574_v52, %v4726_v34  ;;  %v1638_v10 = vmul.f32 %v1622_v1, %v4740_v43  ;;  %v5712_v59 = vld [vmem:[#allocation3] sm:$0xff] }
 0x10b   : > { %v1652_v17 = vadd.f32 %v1636_v4, %v1604_v13  ;;  %v1556_v50 = vadd.f32 %v1540_v49, %v1508_v5  ;;  %v1686_v47 = vmul.f32 %v1670_v54, %v4746_v45 }
 0x10c   : > { %v1461_v35 = vadd.f32 %v1445_v44, %v1412_v27 }
 0x10d   : > { %3996 = vmatmul.msk.f32.gmra.mxu1 %vm571_vm0, %v1699_v16  ;;  %v1700_v12 = vadd.f32 %v1684_v8, %v1652_v17  ;;  %v1605_v3 = vadd.f32 %v1589_v60, %v1556_v50 }
 0x10e   : > { %v1509_v19 = vadd.f32 %v1493_v7, %v1461_v35 }
 0x10f   : > { %v1210_v46 = vpop.f32.mrf.mxu0  ;;  %v1653_v11 = vadd.f32 %v1637_v24, %v1605_v3 }
 0x110   : > { %v1211_v57 = vadd.f32 %v5586_v40, %v1210_v46  ;;  %v1557_v25 = vadd.f32 %v1541_v56, %v1509_v19 }
 0x111   : > { %v1701_v20 = vadd.f32 %v1685_v53, %v1653_v11 }
 0x112   : > { %1254 = vst.msk [vmem:[#allocation3 + $0x10] sm:$0xff] %vm571_vm0, %v1211_v57  ;;  %v1606_v62 = vadd.f32 %v1590_v42, %v1557_v25  ;;  %v1933_v57 = vmul.f32 %v5712_v59, %v5712_v59  ;;  %v1864_v25 = vsel %vm571_vm0, %v5712_v59, 0.0 }
 0x114   : > { %v1654_v14 = vadd.f32 %v1638_v10, %v1606_v62 }
 0x115   : > { %3997 = vmatmul.msk.f32.gmra.mxu1 %vm571_vm0, %v1700_v12  ;;  %v5709_v12 = vld [vmem:[#allocation3 + $0x8] sm:$0xff] }
 0x116   : > { %v1702_v31 = vadd.f32 %v1686_v47, %v1654_v14  ;;  %v1934_v46 = vmul.f32 %v5709_v12, %v5709_v12  ;;  %v1865_v53 = vsel %vm571_vm0, %v5709_v12, 0.0  ;;  %v1965_v14 = vsel %vm571_vm0, %v1933_v57, 0.0 }
 0x117   : > { %v1866_v54 = vadd.f32 %v1865_v53, %v1864_v25 }
 0x119   : > { %v1213_v32 = vpop.f32.mrf.mxu0  ;;  %v5714_v19 = vld [vmem:[#allocation3 + $0x10] sm:$0xff] }
 0x11a   : > { %v1214_v9 = vadd.f32 %v5586_v40, %v1213_v32  ;;  %v1935_v11 = vmul.f32 %v5714_v19, %v5714_v19  ;;  %v1867_v62 = vsel %vm571_vm0, %v5714_v19, 0.0 }
 0x11c   : > { %1255 = vst.msk [vmem:[#allocation3 + $0x18] sm:$0xff] %vm571_vm0, %v1214_v9  ;;  %v1968_v47 = vsel %vm571_vm0, %v1935_v11, 0.0 }
 0x11d   : > { %3998 = vmatmul.msk.f32.gmra.mxu1 %vm571_vm0, %v1701_v20  ;;  %v1966_v20 = vsel %vm571_vm0, %v1934_v46, 0.0 }
 0x121   : > { %v1216_v23 = vpop.f32.mrf.mxu0 }
 0x122   : > { %v1217_v34 = vadd.f32 %v5586_v40, %v1216_v23 }
 0x123   : > { %v5719_v52 = vld [vmem:[#allocation3 + $0x18] sm:$0xff] }
 0x124   : > { %v1768_v41 = vpop.f32.mrf.mxu1  ;;  %1256 = vst.msk [vmem:[#allocation3 + $0x20] sm:$0xff] %vm571_vm0, %v1217_v34  ;;  %v1936_v10 = vmul.f32 %v5719_v52, %v5719_v52  ;;  %v1868_v34 = vadd.f32 %v1867_v62, %v1866_v54 }
 0x125   : > { %v1769_v2 = vadd.f32 %v5586_v40, %v1768_v41  ;;  %3999 = vmatmul.msk.f32.gmra.mxu1 %vm571_vm0, %v1702_v31  ;;  %v1869_v31 = vsel %vm571_vm0, %v5719_v52, 0.0  ;;  %v1967_v41 = vadd.f32 %v1966_v20, %v1965_v14 }
 0x127   : > { %1816 = vst.msk [vmem:[#allocation3 + $0x80] sm:$0xff] %vm571_vm0, %v1769_v2 }
 0x12a   : > { %v1219_v43 = vpop.f32.mrf.mxu0 }
 0x12b   : > { %v1220_v63 = vadd.f32 %v5586_v40, %v1219_v43  ;;  %v5730_v42 = vld [vmem:[#allocation3 + $0x20] sm:$0xff] }
 0x12c   : > { %v1771_v38 = vpop.f32.mrf.mxu1  ;;  %v1937_v23 = vmul.f32 %v5730_v42, %v5730_v42 }
 0x12d   : > { %v1772_v22 = vadd.f32 %v5586_v40, %v1771_v38  ;;  %1257 = vst.msk [vmem:[#allocation3 + $0x28] sm:$0xff] %vm571_vm0, %v1220_v63  ;;  %v1970_v38 = vsel %vm571_vm0, %v1936_v10, 0.0  ;;  %v1871_v63 = vsel %vm571_vm0, %v5730_v42, 0.0 }
 0x12f   : > { %1817 = vst.msk [vmem:[#allocation3 + $0x88] sm:$0xff] %vm571_vm0, %v1772_v22 }
 0x132   : > { %v1222_v45 = vpop.f32.mrf.mxu0 }
 0x133   : > { %v1223_v33 = vadd.f32 %v5586_v40, %v1222_v45 }
 0x134   : > { %v1774_v0 = vpop.f32.mrf.mxu1  ;;  %v5738_v9 = vld [vmem:[#allocation3 + $0x28] sm:$0xff] }
 0x135   : > { %v1775_v6 = vadd.f32 %v5586_v40, %v1774_v0  ;;  %1258 = vst.msk [vmem:[#allocation3 + $0x30] sm:$0xff] %vm571_vm0, %v1223_v33  ;;  %v1938_v22 = vmul.f32 %v5738_v9, %v5738_v9  ;;  %v1969_v0 = vadd.f32 %v1968_v47, %v1967_v41  ;;  %v1870_v33 = vadd.f32 %v1869_v31, %v1868_v34 }
 0x137   : > { %1818 = vst.msk [vmem:[#allocation3 + $0x90] sm:$0xff] %vm571_vm0, %v1775_v6 }
 0x13a   : > { %v1225_v58 = vpop.f32.mrf.mxu0 }
 0x13b   : > { %v1226_v36 = vadd.f32 %v5586_v40, %v1225_v58  ;;  %v1972_v58 = vsel %vm571_vm0, %v1937_v23, 0.0 }
 0x13c   : > { %v1777_v48 = vpop.f32.mrf.mxu1  ;;  %v5747_v2 = vld [vmem:[#allocation3 + $0x30] sm:$0xff] }
 0x13d   : > { %v1778_v4 = vadd.f32 %v5586_v40, %v1777_v48  ;;  %1259 = vst.msk [vmem:[#allocation3 + $0x38] sm:$0xff] %vm571_vm0, %v1226_v36  ;;  %v1873_v48 = vsel %vm571_vm0, %v5738_v9, 0.0  ;;  %v1939_v36 = vmul.f32 %v5747_v2, %v5747_v2 }
 0x13f   : > { %1819 = vst.msk [vmem:[#allocation3 + $0x98] sm:$0xff] %vm571_vm0, %v1778_v4  ;;  %v1971_v4 = vadd.f32 %v1970_v38, %v1969_v0 }
 0x142   : > { %v1228_v28 = vpop.f32.mrf.mxu0 }
 0x143   : > { %v1229_v49 = vadd.f32 %v5586_v40, %v1228_v28  ;;  %v1872_v28 = vadd.f32 %v1871_v63, %v1870_v33 }
 0x144   : > { %v1780_v16 = vpop.f32.mrf.mxu1  ;;  %v5755_v6 = vld [vmem:[#allocation3 + $0x38] sm:$0xff] }
 0x145   : > { %v1781_v13 = vadd.f32 %v5586_v40, %v1780_v16  ;;  %1260 = vst.msk [vmem:[#allocation3 + $0x40] sm:$0xff] %vm571_vm0, %v1229_v49  ;;  %v1974_v16 = vsel %vm571_vm0, %v1938_v22, 0.0 }
 0x147   : > { %1820 = vst.msk [vmem:[#allocation3 + $0xa0] sm:$0xff] %vm571_vm0, %v1781_v13  ;;  %v1875_v13 = vsel %vm571_vm0, %v5747_v2, 0.0 }
 0x14a   : > { %v1231_v21 = vpop.f32.mrf.mxu0 }
 0x14b   : > { %v1232_v15 = vadd.f32 %v5586_v40, %v1231_v21  ;;  %v1940_v21 = vmul.f32 %v5755_v6, %v5755_v6 }
 0x14c   : > { %v1783_v61 = vpop.f32.mrf.mxu1  ;;  %v5763_v49 = vld [vmem:[#allocation3 + $0x40] sm:$0xff] }
 0x14d   : > { %1261 = vst.msk [vmem:[#allocation3 + $0x48] sm:$0xff] %vm571_vm0, %v1232_v15  ;;  %v1784_v44 = vadd.f32 %v5586_v40, %v1783_v61  ;;  %v1973_v61 = vadd.f32 %v1972_v58, %v1971_v4 }
 0x14f   : > { %1821 = vst.msk [vmem:[#allocation3 + $0xa8] sm:$0xff] %vm571_vm0, %v1784_v44  ;;  %v1874_v44 = vadd.f32 %v1873_v48, %v1872_v28 }
 0x152   : > { %v1234_v5 = vpop.f32.mrf.mxu0 }
 0x153   : > { %v1235_v27 = vadd.f32 %v5586_v40, %v1234_v5 }
 0x154   : > { %v5770_v5 = vld [vmem:[#allocation3 + $0x48] sm:$0xff] }
 0x155   : > { %1262 = vst.msk [vmem:[#allocation3 + $0x50] sm:$0xff] %vm571_vm0, %v1235_v27  ;;  %v1786_v8 = vpop.f32.mrf.mxu1 }
 0x156   : > { %v1787_v60 = vadd.f32 %v5586_v40, %v1786_v8  ;;  %v1976_v8 = vsel %vm571_vm0, %v1939_v36, 0.0 }
 0x158   : > { %1822 = vst.msk [vmem:[#allocation3 + $0xb0] sm:$0xff] %vm571_vm0, %v1787_v60  ;;  %v1877_v60 = vsel %vm571_vm0, %v5755_v6, 0.0 }
 0x15a   : > { %v1237_v17 = vpop.f32.mrf.mxu0 }
 0x15b   : > { %v1238_v50 = vadd.f32 %v5586_v40, %v1237_v17  ;;  %v1941_v17 = vmul.f32 %v5763_v49, %v5763_v49 }
 0x15d   : > { %1263 = vst.msk [vmem:[#allocation3 + $0x58] sm:$0xff] %vm571_vm0, %v1238_v50  ;;  %v1975_v50 = vadd.f32 %v1974_v16, %v1973_v61  ;;  %v1980_v25 = vsel %vm571_vm0, %v1941_v17, 0.0  ;;  %v617_v17 = vld [vmem:[#allocation13 + $0x18] sm:$0xff] }
 0x15e   : > { %v1789_v30 = vpop.f32.mrf.mxu1  ;;  %2049 = vmatpush.msra.mxu2 %v617_v17  ;;  %2072 = vmatpush.msra.mxu3 %v617_v17 }
 0x15f   : > { %v1790_v35 = vadd.f32 %v5586_v40, %v1789_v30  ;;  %v1876_v30 = vadd.f32 %v1875_v13, %v1874_v44  ;;  %v1977_v46 = vadd.f32 %v1976_v8, %v1975_v50  ;;  %v616_v50 = vld [vmem:[#allocation13 + $0x10] sm:$0xff]  ;;  %3596 = vmatpush.msrb.mxu0 %v617_v17  ;;  %3619 = vmatpush.msrb.mxu1 %v617_v17 }
 0x160   : > { %2050 = vmatpush.msra.mxu2 %v616_v50  ;;  %2073 = vmatpush.msra.mxu3 %v616_v50 }
 0x161   : > { %1823 = vst.msk [vmem:[#allocation3 + $0xb8] sm:$0xff] %vm571_vm0, %v1790_v35  ;;  %v5778_v35 = vld [vmem:[#allocation3 + $0x50] sm:$0xff]  ;;  %v1878_v57 = vadd.f32 %v1877_v60, %v1876_v30  ;;  %v5828_v30 = vld [vmem:[#allocation3 + $0x80] sm:$0xff]  ;;  %3597 = vmatpush.msrb.mxu0 %v616_v50  ;;  %3620 = vmatpush.msrb.mxu1 %v616_v50 }
 0x162   : > { %v1943_v20 = vmul.f32 %v5778_v35, %v5778_v35  ;;  %v1883_v14 = vsel %vm571_vm0, %v5778_v35, 0.0  ;;  %v5871_v50 = vld [vmem:[#allocation3 + $0xb0] sm:$0xff] }
 0x163   : > { %v1240_v7 = vpop.f32.mrf.mxu0 }
 0x164   : > { %v1241_v24 = vadd.f32 %v5586_v40, %v1240_v7  ;;  %v1978_v7 = vsel %vm571_vm0, %v1940_v21, 0.0  ;;  %v5786_v53 = vld [vmem:[#allocation3 + $0x58] sm:$0xff] }
 0x165   : > { %v1979_v62 = vadd.f32 %v1978_v7, %v1977_v46  ;;  %v1944_v47 = vmul.f32 %v5786_v53, %v5786_v53  ;;  %v1885_v38 = vsel %vm571_vm0, %v5786_v53, 0.0  ;;  %v5831_v46 = vld [vmem:[#allocation3 + $0x88] sm:$0xff] }
 0x166   : > { %1264 = vst.msk [vmem:[#allocation3 + $0x60] sm:$0xff] %vm571_vm0, %v1241_v24  ;;  %v1879_v24 = vsel %vm571_vm0, %v5763_v49, 0.0 }
 0x167   : > { %v1792_v3 = vpop.f32.mrf.mxu1  ;;  %v1880_v10 = vadd.f32 %v1879_v24, %v1878_v57  ;;  %v1981_v31 = vadd.f32 %v1980_v25, %v1979_v62  ;;  %v1986_v58 = vsel %vm571_vm0, %v1944_v47, 0.0 }
 0x168   : > { %v1793_v56 = vadd.f32 %v5586_v40, %v1792_v3  ;;  %v1942_v3 = vmul.f32 %v5770_v5, %v5770_v5 }
 0x16a   : > { %1824 = vst.msk [vmem:[#allocation3 + $0xc0] sm:$0xff] %vm571_vm0, %v1793_v56  ;;  %v1982_v54 = vsel %vm571_vm0, %v1942_v3, 0.0 }
 0x16c   : > { %v1243_v1 = vpop.f32.mrf.mxu0 }
 0x16d   : > { %v1244_v32 = vadd.f32 %v5586_v40, %v1243_v1  ;;  %v1881_v1 = vsel %vm571_vm0, %v5770_v5, 0.0 }
 0x16e   : > { %v1882_v23 = vadd.f32 %v1881_v1, %v1880_v10  ;;  %v1949_v1 = vmul.f32 %v5828_v30, %v5828_v30  ;;  %v614_v10 = vld [vmem:[#allocation13] sm:$0xff] }
 0x16f   : > { %1265 = vst.msk [vmem:[#allocation3 + $0x68] sm:$0xff] %vm571_vm0, %v1244_v32  ;;  %v5794_v32 = vld [vmem:[#allocation3 + $0x60] sm:$0xff] }
 0x170   : > { %v1795_v43 = vpop.f32.mrf.mxu1  ;;  %v1945_v63 = vmul.f32 %v5794_v32, %v5794_v32  ;;  %v1884_v0 = vadd.f32 %v1883_v14, %v1882_v23  ;;  %v1887_v48 = vsel %vm571_vm0, %v5794_v32, 0.0 }
 0x171   : > { %v1796_v45 = vadd.f32 %v5586_v40, %v1795_v43  ;;  %v1984_v43 = vsel %vm571_vm0, %v1943_v20, 0.0 }
 0x172   : > { %v1886_v28 = vadd.f32 %v1885_v38, %v1884_v0  ;;  %v1988_v13 = vsel %vm571_vm0, %v1945_v63, 0.0  ;;  %v5849_v63 = vld [vmem:[#allocation3 + $0x98] sm:$0xff]  ;;  %v1897_v0 = vsel %vm571_vm0, %v5831_v46, 0.0 }
 0x173   : > { %1825 = vst.msk [vmem:[#allocation3 + $0xc8] sm:$0xff] %vm571_vm0, %v1796_v45  ;;  %v1983_v45 = vadd.f32 %v1982_v54, %v1981_v31  ;;  %v5841_v54 = vld [vmem:[#allocation3 + $0x90] sm:$0xff] }
 0x175   : > { %v1246_v15 = vpop.f32.mrf.mxu0  ;;  %v1985_v4 = vadd.f32 %v1984_v43, %v1983_v45  ;;  %v1950_v43 = vmul.f32 %v5831_v46, %v5831_v46 }
 0x176   : > { %v1247_v27 = vadd.f32 %v5586_v40, %v1246_v15  ;;  %v5802_v41 = vld [vmem:[#allocation3 + $0x68] sm:$0xff] }
 0x177   : > { %v1946_v36 = vmul.f32 %v5802_v41, %v5802_v41  ;;  %v1889_v21 = vsel %vm571_vm0, %v5802_v41, 0.0  ;;  %v1987_v44 = vadd.f32 %v1986_v58, %v1985_v4  ;;  %v1951_v58 = vmul.f32 %v5841_v54, %v5841_v54 }
 0x178   : > { %1266 = vst.msk [vmem:[#allocation3 + $0x70] sm:$0xff] %vm571_vm0, %v1247_v27  ;;  %v1888_v27 = vadd.f32 %v1887_v48, %v1886_v28  ;;  %v1996_v48 = vsel %vm571_vm0, %v1949_v1, 0.0  ;;  %v5879_v1 = vld [vmem:[#allocation3 + $0xb8] sm:$0xff] }
 0x179   : > { %v1798_v56 = vpop.f32.mrf.mxu1  ;;  %v1990_v8 = vsel %vm571_vm0, %v1946_v36, 0.0  ;;  %v1989_v7 = vadd.f32 %v1988_v13, %v1987_v44  ;;  %v5857_v36 = vld [vmem:[#allocation3 + $0xa0] sm:$0xff]  ;;  %v1952_v13 = vmul.f32 %v5849_v63, %v5849_v63 }
 0x17a   : > { %v1799_v11 = vadd.f32 %v5586_v40, %v1798_v56  ;;  %v1890_v24 = vadd.f32 %v1889_v21, %v1888_v27  ;;  %v615_v56 = vld [vmem:[#allocation13 + $0x8] sm:$0xff]  ;;  %v1998_v21 = vsel %vm571_vm0, %v1950_v43, 0.0  ;;  %v1901_v27 = vsel %vm571_vm0, %v5849_v63, 0.0 }
 0x17b   : > { %v1991_v57 = vadd.f32 %v1990_v8, %v1989_v7  ;;  %2051 = vmatpush.msra.mxu2 %v615_v56  ;;  %2074 = vmatpush.msra.mxu3 %v615_v56  ;;  %v1953_v8 = vmul.f32 %v5857_v36, %v5857_v36  ;;  %v1907_v43 = vsel %vm571_vm0, %v5871_v50, 0.0 }
 0x17c   : > { %1826 = vst.msk [vmem:[#allocation3 + $0xd0] sm:$0xff] %vm571_vm0, %v1799_v11  ;;  %3598 = vmatpush.msrb.mxu0 %v615_v56  ;;  %3621 = vmatpush.msrb.mxu1 %v615_v56  ;;  %v1903_v56 = vsel %vm571_vm0, %v5857_v36, 0.0 }
 0x17d   : > { %2052 = vmatpush.msra.mxu2 %v614_v10  ;;  %2075 = vmatpush.msra.mxu3 %v614_v10 }
 0x17e   : > { %v1249_v34 = vpop.f32.mrf.mxu0  ;;  %3599 = vmatpush.msrb.mxu0 %v614_v10  ;;  %3622 = vmatpush.msrb.mxu1 %v614_v10 }
 0x17f   : > { %v1250_v22 = vadd.f32 %v5586_v40, %v1249_v34  ;;  %v5810_v33 = vld [vmem:[#allocation3 + $0x70] sm:$0xff]  ;;  %v1895_v34 = vsel %vm571_vm0, %v5828_v30, 0.0 }
 0x180   : > { %v1947_v15 = vmul.f32 %v5810_v33, %v5810_v33  ;;  %v1891_v60 = vsel %vm571_vm0, %v5810_v33, 0.0 }
 0x181   : > { %1267 = vst.msk [vmem:[#allocation3 + $0x78] sm:$0xff] %vm571_vm0, %v1250_v22  ;;  %v1892_v11 = vadd.f32 %v1891_v60, %v1890_v24  ;;  %v2000_v60 = vsel %vm571_vm0, %v1951_v58, 0.0 }
 0x182   : > { %v1801_v16 = vpop.f32.mrf.mxu1  ;;  %v1992_v3 = vsel %vm571_vm0, %v1947_v15, 0.0  ;;  %v5864_v15 = vld [vmem:[#allocation3 + $0xa8] sm:$0xff] }
 0x183   : > { %v1802_v61 = vadd.f32 %v5586_v40, %v1801_v16  ;;  %v1993_v31 = vadd.f32 %v1992_v3, %v1991_v57  ;;  %v1899_v16 = vsel %vm571_vm0, %v5841_v54, 0.0  ;;  %v1954_v57 = vmul.f32 %v5864_v15, %v5864_v15 }
 0x184   : > { %v1905_v10 = vsel %vm571_vm0, %v5864_v15, 0.0 }
 0x185   : > { %1827 = vst.msk [vmem:[#allocation3 + $0xd8] sm:$0xff] %vm571_vm0, %v1802_v61 }
 0x188   : > { %v5833_v25 = vld [vmem:[#allocation3 + $0x78] sm:$0xff] }
 0x189   : > { %v1893_v20 = vsel %vm571_vm0, %v5833_v25, 0.0  ;;  %v1948_v62 = vmul.f32 %v5833_v25, %v5833_v25 }
 0x18a   : > { %v1804_v14 = vpop.f32.mrf.mxu1  ;;  %v1894_v47 = vadd.f32 %v1893_v20, %v1892_v11  ;;  %v2002_v11 = vsel %vm571_vm0, %v1952_v13, 0.0  ;;  %v5901_v13 = vld [vmem:[#allocation3 + $0xd0] sm:$0xff] }
 0x18b   : > { %v1805_v23 = vadd.f32 %v5586_v40, %v1804_v14  ;;  %v1994_v38 = vsel %vm571_vm0, %v1948_v62, 0.0  ;;  %v1955_v14 = vmul.f32 %v5871_v50, %v5871_v50 }
 0x18c   : > { %v1896_v22 = vadd.f32 %v1895_v34, %v1894_v47  ;;  %v1995_v45 = vadd.f32 %v1994_v38, %v1993_v31  ;;  %v2004_v47 = vsel %vm571_vm0, %v1953_v8, 0.0  ;;  %v5887_v31 = vld [vmem:[#allocation3 + $0xc0] sm:$0xff]  ;;  %v1956_v38 = vmul.f32 %v5879_v1, %v5879_v1 }
 0x18d   : > { %1828 = vst.msk [vmem:[#allocation3 + $0xe0] sm:$0xff] %vm571_vm0, %v1805_v23 }
 0x18e   : > { %v1898_v4 = vadd.f32 %v1897_v0, %v1896_v22  ;;  %v1997_v28 = vadd.f32 %v1996_v48, %v1995_v45  ;;  %v2006_v22 = vsel %vm571_vm0, %v1954_v57, 0.0  ;;  %v5894_v45 = vld [vmem:[#allocation3 + $0xc8] sm:$0xff]  ;;  %v1909_v48 = vsel %vm571_vm0, %v5879_v1, 0.0 }
 0x18f   : > { %v1958_v8 = vmul.f32 %v5894_v45, %v5894_v45 }
 0x190   : > { %v1900_v61 = vadd.f32 %v1899_v16, %v1898_v4  ;;  %v1999_v44 = vadd.f32 %v1998_v21, %v1997_v28  ;;  %v1957_v4 = vmul.f32 %v5887_v31, %v5887_v31  ;;  %v2008_v28 = vsel %vm571_vm0, %v1955_v14, 0.0 }
 0x192   : > { %v1807_v17 = vpop.f32.mrf.mxu1  ;;  %v1902_v7 = vadd.f32 %v1901_v27, %v1900_v61  ;;  %v2001_v24 = vadd.f32 %v2000_v60, %v1999_v44  ;;  %v1911_v27 = vsel %vm571_vm0, %v5887_v31, 0.0  ;;  %v2010_v60 = vsel %vm571_vm0, %v1956_v38, 0.0 }
 0x193   : > { %v1808_v3 = vadd.f32 %v5586_v40, %v1807_v17  ;;  %v5909_v17 = vld [vmem:[#allocation3 + $0xd8] sm:$0xff]  ;;  %v2012_v57 = vsel %vm571_vm0, %v1957_v4, 0.0 }
 0x194   : > { %v1904_v20 = vadd.f32 %v1903_v56, %v1902_v7  ;;  %v2003_v62 = vadd.f32 %v2002_v11, %v2001_v24  ;;  %v1959_v56 = vmul.f32 %v5901_v13, %v5901_v13  ;;  %v5917_v11 = vld [vmem:[#allocation3 + $0xe0] sm:$0xff]  ;;  %v1960_v14 = vmul.f32 %v5909_v17, %v5909_v17 }
 0x195   : > { %1829 = vst.msk [vmem:[#allocation3 + $0xe8] sm:$0xff] %vm571_vm0, %v1808_v3  ;;  %v1913_v3 = vsel %vm571_vm0, %v5894_v45, 0.0  ;;  %v1917_v38 = vsel %vm571_vm0, %v5909_v17, 0.0 }
 0x196   : > { %v1906_v23 = vadd.f32 %v1905_v10, %v1904_v20  ;;  %v2005_v34 = vadd.f32 %v2004_v47, %v2003_v62  ;;  %v1915_v10 = vsel %vm571_vm0, %v5901_v13, 0.0  ;;  %v2014_v47 = vsel %vm571_vm0, %v1958_v8, 0.0 }
 0x198   : > { %v1908_v0 = vadd.f32 %v1907_v43, %v1906_v23  ;;  %v2007_v58 = vadd.f32 %v2006_v22, %v2005_v34  ;;  %v1961_v22 = vmul.f32 %v5917_v11, %v5917_v11 }
 0x19a   : > { %v1810_v16 = vpop.f32.mrf.mxu1  ;;  %v1910_v21 = vadd.f32 %v1909_v48, %v1908_v0  ;;  %v2009_v61 = vadd.f32 %v2008_v28, %v2007_v58  ;;  %v2016_v0 = vsel %vm571_vm0, %v1959_v56, 0.0 }
 0x19b   : > { %v1811_v44 = vadd.f32 %v5586_v40, %v1810_v16  ;;  %v1919_v16 = vsel %vm571_vm0, %v5917_v11, 0.0 }
 0x19c   : > { %v1912_v7 = vadd.f32 %v1911_v27, %v1910_v21  ;;  %v2011_v24 = vadd.f32 %v2010_v60, %v2009_v61  ;;  %v5924_v23 = vld [vmem:[#allocation3 + $0xe8] sm:$0xff]  ;;  %v2018_v61 = vsel %vm571_vm0, %v1960_v14, 0.0 }
 0x19d   : > { %1830 = vst.msk [vmem:[#allocation3 + $0xf0] sm:$0xff] %vm571_vm0, %v1811_v44  ;;  %v1962_v21 = vmul.f32 %v5924_v23, %v5924_v23  ;;  %v1921_v60 = vsel %vm571_vm0, %v5924_v23, 0.0 }
 0x19e   : > { %v1914_v20 = vadd.f32 %v1913_v3, %v1912_v7  ;;  %v2013_v62 = vadd.f32 %v2012_v57, %v2011_v24  ;;  %v2020_v7 = vsel %vm571_vm0, %v1961_v22, 0.0 }
 0x19f   : > { %v2022_v56 = vsel %vm571_vm0, %v1962_v21, 0.0 }
 0x1a0   : > { %v1916_v34 = vadd.f32 %v1915_v10, %v1914_v20  ;;  %v2015_v43 = vadd.f32 %v2014_v47, %v2013_v62 }
 0x1a2   : > { %v1813_v58 = vpop.f32.mrf.mxu1  ;;  %v1918_v48 = vadd.f32 %v1917_v38, %v1916_v34  ;;  %v2017_v4 = vadd.f32 %v2016_v0, %v2015_v43 }
 0x1a3   : > { %v1814_v28 = vadd.f32 %v5586_v40, %v1813_v58 }
 0x1a4   : > { %v5937_v44 = vld [vmem:[#allocation3 + $0xf0] sm:$0xff]  ;;  %v1920_v27 = vadd.f32 %v1919_v16, %v1918_v48  ;;  %v2019_v8 = vadd.f32 %v2018_v61, %v2017_v4 }
 0x1a5   : > { %1831 = vst.msk [vmem:[#allocation3 + $0xf8] sm:$0xff] %vm571_vm0, %v1814_v28  ;;  %v1963_v3 = vmul.f32 %v5937_v44, %v5937_v44  ;;  %v1923_v20 = vsel %vm571_vm0, %v5937_v44, 0.0 }
 0x1a6   : > { %v1922_v40 = vadd.f32 %v1921_v60, %v1920_v27  ;;  %v2021_v24 = vadd.f32 %v2020_v7, %v2019_v8 }
 0x1a7   : > { %v2024_v10 = vsel %vm571_vm0, %v1963_v3, 0.0 }
 0x1a8   : > { %v2023_v57 = vadd.f32 %v2022_v56, %v2021_v24  ;;  %v1924_v62 = vadd.f32 %v1923_v20, %v1922_v40 }
 0x1aa   : > { %v2025_v47 = vadd.f32 %v2024_v10, %v2023_v57 }
 0x1ac   : > { %v5949_v14 = vld [vmem:[#allocation3 + $0xf8] sm:$0xff] }
 0x1ad   : > { %v1925_v34 = vsel %vm571_vm0, %v5949_v14, 0.0  ;;  %v1964_v43 = vmul.f32 %v5949_v14, %v5949_v14 }
 0x1ae   : > { %v1926_v38 = vadd.f32 %v1925_v34, %v1924_v62 }
 0x1af   : > { %v2026_v22 = vsel %vm571_vm0, %v1964_v43, 0.0 }
 0x1b0   : > { %v1927_v0 = vrot.slane %v1926_v38, 4  ;;  %v2027_v58 = vadd.f32 %v2026_v22, %v2025_v47 }
 0x1b2   : > { %v1928_v48 = vadd.f32 %v1927_v0, %v1926_v38  ;;  %v2028_v4 = vrot.slane %v2027_v58, 4 }
 0x1b4   : > { %v1929_v28 = vrot.slane %v1928_v48, 2  ;;  %v2029_v16 = vadd.f32 %v2028_v4, %v2027_v58  ;;  %v2240_v58 = vld [vmem:[#allocation12 + $0x18] sm:$0xff]  ;;  %v2096_v4 = vld [vmem:[%s7548_s5] sm:$0x1] }
 0x1b5   : > { %2749 = vmatpush.msrb.mxu2 %v2240_v58  ;;  %3310 = vmatpush.msrb.mxu3 %v2240_v58 }
 0x1b6   : > { %v1930_v21 = vadd.f32 %v1929_v28, %v1928_v48  ;;  %v2030_v61 = vrot.slane %v2029_v16, 2 }
 0x1b8   : > { %v1931_v27 = vrot.slane %v1930_v21, 1  ;;  %v2031_v8 = vadd.f32 %v2030_v61, %v2029_v16 }
 0x1ba   : > { %v1932_v60 = vadd.f32 %v1931_v27, %v1930_v21  ;;  %v2032_v7 = vrot.slane %v2031_v8, 1  ;;  %v2098_v21 = vld [vmem:[%s7549_s6] sm:$0x1] }
 0x1bc   : > { %4000 = vmatmul.msk.f32.vlgmr.msra.gmra.mxu2 %vm571_vm0, %v1932_v60  ;;  %v2033_v40 = vadd.f32 %v2032_v7, %v2031_v8 }
 0x1be   : > { %4001 = vmatmul.msk.f32.vlgmr.msra.gmra.mxu3 %vm571_vm0, %v2033_v40 }
 0x23f   : > { %v2054_v24 = vpop.f32.mrf.mxu2 }
 0x240   : > { %v2080_v3 = vmul.f32 0.001953125, %v2054_v24 }
 0x241   : > { %v2077_v56 = vpop.f32.mrf.mxu3 }
 0x242   : > { %v2082_v57 = vmul.f32 %v2080_v3, %v2080_v3  ;;  %v2081_v20 = vmul.f32 0.001953125, %v2077_v56 }
 0x244   : > { %v2083_v62 = vsub.f32 %v2081_v20, %v2082_v57 }
 0x246   : > { %v2084_v10 = vmax.f32 %v2083_v62, 0.0 }
 0x248   : > { %v2085_v47 = vadd.f32 1e-05, %v2084_v10 }
 0x24a   : > { %4151 = vrsqrt.f32 %v2085_v47  ;;  %vm2092_vm2 = vweird.f32 %v2085_v47 }
 0x250   : > { %v4152_v34 = vpop.eup %4151 }
 0x251   : > { %v2087_v43 = vmul.f32 %v4152_v34, %v2085_v47  ;;  %vm2093_vm1 = vweird.f32 %v4152_v34 }
 0x252   : > { %vm2094_vm3 = vmor %vm2092_vm2, %vm2093_vm1 }
 0x253   : > { %v2088_v38 = vmul.f32 %v4152_v34, %v2087_v43 }
 0x255   : > { %v2089_v22 = vmul.f32 0.5, %v2088_v38 }
 0x257   : > { %v2090_v0 = vsub.f32 1.5, %v2089_v22 }
 0x259   : > { %v2091_v48 = vmul.f32 %v4152_v34, %v2090_v0 }
 0x25b   : > { %v2095_v28 = vsel %vm2094_vm3, %v4152_v34, %v2091_v48 }
 0x25c   : > { %v2097_v16 = vmul.f32 %v2096_v4, %v2095_v28 }
 0x25e   : > { %v2099_v61 = vmul.f32 %v2097_v16, %v2080_v3  ;;  %v2101_v27 = vperm.slane %v2097_v16, 0 }
 0x260   : > { %v2100_v8 = vsub.f32 %v2098_v21, %v2099_v61  ;;  %v2102_v60 = vmul.f32 %v2101_v27, %v5712_v59  ;;  %v2103_v7 = vmul.f32 %v2101_v27, %v5709_v12  ;;  %v2104_v40 = vmul.f32 %v2101_v27, %v5714_v19 }
 0x261   : > { %v2105_v24 = vmul.f32 %v2101_v27, %v5719_v52  ;;  %v2106_v56 = vmul.f32 %v2101_v27, %v5730_v42  ;;  %v2107_v57 = vmul.f32 %v2101_v27, %v5738_v9  ;;  %v2108_v62 = vmul.f32 %v2101_v27, %v5747_v2 }
 0x262   : > { %v5970_v20 = vperm.slane %v2100_v8, 0  ;;  %v2109_v3 = vmul.f32 %v2101_v27, %v5755_v6  ;;  %v2110_v10 = vmul.f32 %v2101_v27, %v5763_v49  ;;  %v2111_v59 = vmul.f32 %v2101_v27, %v5770_v5 }
 0x263   : > { %v2112_v12 = vmul.f32 %v2101_v27, %v5778_v35  ;;  %v2113_v19 = vmul.f32 %v2101_v27, %v5786_v53  ;;  %v2114_v52 = vmul.f32 %v2101_v27, %v5794_v32  ;;  %v2115_v42 = vmul.f32 %v2101_v27, %v5802_v41 }
 0x264   : > { %v2116_v9 = vmul.f32 %v2101_v27, %v5810_v33  ;;  %v2117_v47 = vmul.f32 %v2101_v27, %v5833_v25  ;;  %v2118_v2 = vmul.f32 %v2101_v27, %v5828_v30  ;;  %v2119_v6 = vmul.f32 %v2101_v27, %v5831_v46 }
 0x265   : > { %v2120_v49 = vmul.f32 %v2101_v27, %v5841_v54  ;;  %v2121_v5 = vmul.f32 %v2101_v27, %v5849_v63  ;;  %v2122_v35 = vmul.f32 %v2101_v27, %v5857_v36  ;;  %v2123_v53 = vmul.f32 %v2101_v27, %v5864_v15 }
 0x266   : > { %v2124_v32 = vmul.f32 %v2101_v27, %v5871_v50  ;;  %v2125_v41 = vmul.f32 %v2101_v27, %v5879_v1  ;;  %v2126_v33 = vmul.f32 %v2101_v27, %v5887_v31  ;;  %v2127_v25 = vmul.f32 %v2101_v27, %v5894_v45 }
 0x267   : > { %v2128_v30 = vmul.f32 %v2101_v27, %v5901_v13  ;;  %v2129_v46 = vmul.f32 %v2101_v27, %v5909_v17  ;;  %v5995_v54 = vmul.f32 %v2101_v27, %v5917_v11  ;;  %v5998_v63 = vmul.f32 %v2101_v27, %v5924_v23 }
 0x268   : > { %v6001_v36 = vmul.f32 %v2101_v27, %v5937_v44  ;;  %v6004_v15 = vmul.f32 %v2101_v27, %v5949_v14  ;;  %v2137_v50 = vadd.f32 %v5970_v20, %v2102_v60  ;;  %v2138_v1 = vadd.f32 %v5970_v20, %v2103_v7  ;;  %v2239_v7 = vld [vmem:[#allocation12 + $0x10] sm:$0xff] }
 0x269   : > { %v2139_v31 = vadd.f32 %v5970_v20, %v2104_v40  ;;  %v2140_v45 = vadd.f32 %v5970_v20, %v2105_v24  ;;  %v2141_v13 = vadd.f32 %v5970_v20, %v2106_v56  ;;  %v2142_v17 = vadd.f32 %v5970_v20, %v2107_v57  ;;  %v2238_v40 = vld [vmem:[#allocation12 + $0x8] sm:$0xff]  ;;  %2750 = vmatpush.msrb.mxu2 %v2239_v7 }
 0x26a   : > { %v6013_v11 = vadd.f32 %v5970_v20, %v2108_v62  ;;  %v6016_v23 = vadd.f32 %v5970_v20, %v2109_v3  ;;  %v6019_v44 = vadd.f32 %v5970_v20, %v2110_v10  ;;  %v6022_v14 = vadd.f32 %v5970_v20, %v2111_v59  ;;  %3311 = vmatpush.msrb.mxu3 %v2239_v7 }
 0x26b   : > { %v6025_v34 = vadd.f32 %v5970_v20, %v2112_v12  ;;  %v6028_v43 = vadd.f32 %v5970_v20, %v2113_v19  ;;  %v6031_v38 = vadd.f32 %v5970_v20, %v2114_v52  ;;  %v6034_v22 = vadd.f32 %v5970_v20, %v2115_v42  ;;  %v2237_v12 = vld [vmem:[#allocation12] sm:$0xff]  ;;  %2751 = vmatpush.msrb.mxu2 %v2238_v40 }
 0x26c   : > { %v6037_v0 = vadd.f32 %v5970_v20, %v2116_v9  ;;  %v6040_v58 = vadd.f32 %v5970_v20, %v2117_v47  ;;  %v6043_v48 = vadd.f32 %v5970_v20, %v2118_v2  ;;  %v6046_v4 = vadd.f32 %v5970_v20, %v2119_v6  ;;  %v2233_v47 = vld [vmem:[#allocation10] sm:$0x7]  ;;  %3312 = vmatpush.msrb.mxu3 %v2238_v40 }
 0x26d   : > { %v6049_v28 = vadd.f32 %v5970_v20, %v2120_v49  ;;  %v2169_v16 = vmax.f32 %v2137_v50, 0.0  ;;  %v2170_v21 = vmax.f32 %v2138_v1, 0.0  ;;  %v6052_v61 = vadd.f32 %v5970_v20, %v2121_v5  ;;  %2752 = vmatpush.msrb.mxu2 %v2237_v12  ;;  %v2294_v1 = vld [vmem:[#allocation2 + $0x8] sm:$0xff] }
 0x26e   : > { %v6055_v27 = vadd.f32 %v5970_v20, %v2122_v35  ;;  %v2171_v8 = vmax.f32 %v2139_v31, 0.0  ;;  %v2172_v60 = vmax.f32 %v2140_v45, 0.0  ;;  %v6058_v24 = vadd.f32 %v5970_v20, %v2123_v53  ;;  %3313 = vmatpush.msrb.mxu3 %v2237_v12 }
 0x26f   : > { %v6061_v56 = vadd.f32 %v5970_v20, %v2124_v32  ;;  %v2173_v57 = vmax.f32 %v2141_v13, 0.0  ;;  %2201 = vst.msk [vmem:[#allocation2 + $0x28] sm:$0xff] %vm571_vm0, %v2169_v16  ;;  %v6065_v62 = vadd.f32 %v5970_v20, %v2125_v41  ;;  %v6068_v3 = vadd.f32 %v5970_v20, %v2126_v33  ;;  %v2245_v33 = vld [vmem:[#allocation2 + $0x7] sm:$0xff] }
 0x270   : > { %v6071_v10 = vadd.f32 %v5970_v20, %v2127_v25  ;;  %v2174_v59 = vmax.f32 %v2142_v17, 0.0  ;;  %2202 = vst.msk [vmem:[#allocation2 + $0x30] sm:$0xff] %vm571_vm0, %v2170_v21  ;;  %v6075_v19 = vadd.f32 %v5970_v20, %v2128_v30  ;;  %v6078_v52 = vadd.f32 %v5970_v20, %v2129_v46  ;;  %v2234_v17 = vld [vmem:[#allocation10 + $0x4] sm:$0x7] }
 0x271   : > { %v2175_v42 = vmax.f32 %v6013_v11, 0.0  ;;  %v2176_v9 = vmax.f32 %v6016_v23, 0.0  ;;  %2203 = vst.msk [vmem:[#allocation2 + $0x48] sm:$0xff] %vm571_vm0, %v2171_v8  ;;  %v2177_v2 = vmax.f32 %v6019_v44, 0.0  ;;  %v2178_v6 = vmax.f32 %v6022_v14, 0.0  ;;  %v2246_v23 = vld [vmem:[#allocation2 + $0xf] sm:$0xff] }
 0x272   : > { %v2179_v49 = vmax.f32 %v6025_v34, 0.0  ;;  %v2180_v5 = vmax.f32 %v6028_v43, 0.0  ;;  %2204 = vst.msk [vmem:[#allocation2 + $0x50] sm:$0xff] %vm571_vm0, %v2172_v60  ;;  %v2181_v35 = vmax.f32 %v6031_v38, 0.0  ;;  %v2182_v53 = vmax.f32 %v6034_v22, 0.0  ;;  %v2343_v43 = vld [vmem:[#allocation2 + $0x9] sm:$0xff] }
 0x273   : > { %v2183_v32 = vmax.f32 %v6037_v0, 0.0  ;;  %v2184_v41 = vmax.f32 %v6040_v58, 0.0  ;;  %2205 = vst.msk [vmem:[#allocation2 + $0x68] sm:$0xff] %vm571_vm0, %v2173_v57  ;;  %v2185_v25 = vmax.f32 %v6043_v48, 0.0  ;;  %v2186_v30 = vmax.f32 %v6046_v4, 0.0  ;;  %v2295_v60 = vld [vmem:[#allocation2 + $0x10] sm:$0xff] }
 0x274   : > { %v2187_v46 = vmax.f32 %v6049_v28, 0.0  ;;  %v2188_v50 = vmax.f32 %v6052_v61, 0.0  ;;  %2206 = vst.msk [vmem:[#allocation2 + $0x70] sm:$0xff] %vm571_vm0, %v2174_v59  ;;  %v6100_v31 = vadd.f32 %v5970_v20, %v5995_v54  ;;  %v6104_v45 = vadd.f32 %v5970_v20, %v5998_v63  ;;  %v6123_v63 = vld [vmem:[%s7551_s8] ss:$0 sm:$0xff] }
 0x275   : > { %v2189_v13 = vmax.f32 %v6055_v27, 0.0  ;;  %2207 = vst.msk [vmem:[#allocation2 + $0x88] sm:$0xff] %vm571_vm0, %v2175_v42  ;;  %v6108_v11 = vperm.slane %v2233_v47, 0  ;;  %v6112_v44 = vadd.f32 %v5970_v20, %v6001_v36  ;;  %v6116_v54 = vadd.f32 %v5970_v20, %v6004_v15  ;;  %v2235_v57 = vld [vmem:[#allocation10 + $0x8] sm:$0x7] }
 0x276   : > { %v2190_v14 = vmax.f32 %v6058_v24, 0.0  ;;  %2208 = vst.msk [vmem:[#allocation2 + $0x90] sm:$0xff] %vm571_vm0, %v2176_v9  ;;  %v6125_v34 = vperm.slane %v2233_v47, 1  ;;  %v2191_v38 = vmax.f32 %v6061_v56, 0.0  ;;  %v6130_v20 = vperm.slane %v2233_v47, 2  ;;  %v2392_v15 = vld [vmem:[#allocation2 + $0x27] sm:$0xff] }
 0x277   : > { %2209 = vst.msk [vmem:[#allocation2 + $0xa8] sm:$0xff] %vm571_vm0, %v2177_v2  ;;  %v2262_v36 = vmul.f32 %v6108_v11, %v2245_v33  ;;  %v6132_v22 = vperm.slane %v2234_v17, 0  ;;  %v2192_v0 = vmax.f32 %v6065_v62, 0.0  ;;  %v2263_v8 = vmul.f32 %v6108_v11, %v2246_v23  ;;  %v2344_v42 = vld [vmem:[#allocation2 + $0x11] sm:$0xff]  ;;  %v2490_v9 = vld [vmem:[#allocation2 + $0x29] sm:$0xff] }
 0x278   : > { %2210 = vst.msk [vmem:[#allocation2 + $0xb0] sm:$0xff] %vm571_vm0, %v2178_v6  ;;  %v2311_v21 = vmul.f32 %v6125_v34, %v2294_v1  ;;  %v2360_v12 = vmul.f32 %v6130_v20, %v2343_v43  ;;  %v6147_v2 = vperm.slane %v2234_v17, 1  ;;  %v6149_v6 = vperm.slane %v2234_v17, 2  ;;  %v6151_v33 = vld [vmem:[#allocation2 + $0x2f] sm:$0xff] }
 0x279   : > { %2211 = vst.msk [vmem:[#allocation2 + $0xc8] sm:$0xff] %vm571_vm0, %v2179_v49  ;;  %v2278_v59 = vadd.f32 %v6123_v63, %v2262_v36  ;;  %v2409_v47 = vmul.f32 %v6132_v22, %v2392_v15  ;;  %v2279_v1 = vadd.f32 %v6123_v63, %v2263_v8  ;;  %v2312_v23 = vmul.f32 %v6125_v34, %v2295_v60  ;;  %v6166_v8 = vld [vmem:[#allocation2 + $0x48] sm:$0xff]  ;;  %v2491_v7 = vld [vmem:[#allocation2 + $0x31] sm:$0xff] }
 0x27a   : > { %2212 = vst.msk [vmem:[#allocation2 + $0xd0] sm:$0xff] %vm571_vm0, %v2180_v5  ;;  %v2361_v43 = vmul.f32 %v6130_v20, %v2344_v42  ;;  %v2441_v5 = vld [vmem:[#allocation2 + $0x28] sm:$0xff]  ;;  %v6159_v40 = vperm.slane %v2235_v57, 0  ;;  %v6161_v17 = vperm.slane %v2235_v57, 1  ;;  %v6168_v60 = vperm.slane %v2235_v57, 2  ;;  %v6188_v58 = vld [vmem:[#allocation2 + $0x50] sm:$0xff] }
 0x27b   : > { %2213 = vst.msk [vmem:[#allocation2 + $0xe8] sm:$0xff] %vm571_vm0, %v2181_v35  ;;  %v2327_v49 = vadd.f32 %v2311_v21, %v2278_v59  ;;  %v6164_v21 = vld [vmem:[#allocation2 + $0x47] sm:$0xff]  ;;  %v2328_v59 = vadd.f32 %v2312_v23, %v2279_v1  ;;  %v2410_v42 = vmul.f32 %v6132_v22, %v6151_v33  ;;  %v2264_v57 = vmul.f32 %v2392_v15, %v6108_v11 }
 0x27c   : > { %2214 = vst.msk [vmem:[#allocation2 + $0xf0] sm:$0xff] %vm571_vm0, %v2182_v53  ;;  %v2458_v1 = vmul.f32 %v6147_v2, %v2441_v5  ;;  %v2507_v23 = vmul.f32 %v6149_v6, %v2490_v9  ;;  %v6186_v53 = vld [vmem:[#allocation2 + $0x4f] sm:$0xff]  ;;  %v2556_v48 = vmul.f32 %v6159_v40, %v6164_v21 }
 0x27d   : > { %2215 = vst.msk [vmem:[#allocation2 + $0x108] sm:$0xff] %vm571_vm0, %v2183_v32  ;;  %v2376_v35 = vadd.f32 %v2360_v12, %v2327_v49  ;;  %v6178_v32 = vld [vmem:[#allocation2 + $0x49] sm:$0xff]  ;;  %v2377_v36 = vadd.f32 %v2361_v43, %v2328_v59  ;;  %v2280_v15 = vadd.f32 %v6123_v63, %v2264_v57  ;;  %v2508_v57 = vmul.f32 %v6149_v6, %v2491_v7 }
 0x27e   : > { %2216 = vst.msk [vmem:[#allocation2 + $0x110] sm:$0xff] %vm571_vm0, %v2184_v41  ;;  %v2442_v12 = vld [vmem:[#allocation2 + $0x30] sm:$0xff]  ;;  %v2605_v41 = vmul.f32 %v6161_v17, %v6166_v8  ;;  %v2654_v4 = vmul.f32 %v6168_v60, %v6178_v32  ;;  %v6207_v59 = vld [vmem:[#allocation2 + $0x67] sm:$0xff]  ;;  %v2557_v28 = vmul.f32 %v6159_v40, %v6186_v53 }
 0x27f   : > { %2217 = vst.msk [vmem:[#allocation2 + $0x128] sm:$0xff] %vm571_vm0, %v2185_v25  ;;  %v2425_v49 = vadd.f32 %v2409_v47, %v2376_v35  ;;  %v6197_v25 = vld [vmem:[#allocation2 + $0x51] sm:$0xff]  ;;  %v2313_v47 = vmul.f32 %v2441_v5, %v6125_v34  ;;  %v2459_v35 = vmul.f32 %v6147_v2, %v2442_v12 }
 0x280   : > { %2218 = vst.msk [vmem:[#allocation2 + $0x130] sm:$0xff] %vm571_vm0, %v2186_v30  ;;  %v2426_v30 = vadd.f32 %v2410_v42, %v2377_v36  ;;  %v6222_v61 = vmul.f32 %v6168_v60, %v6197_v25 }
 0x281   : > { %2219 = vst.msk [vmem:[#allocation2 + $0x148] sm:$0xff] %vm571_vm0, %v2187_v46  ;;  %v2474_v43 = vadd.f32 %v2458_v1, %v2425_v49  ;;  %v2606_v46 = vmul.f32 %v6161_v17, %v6188_v58  ;;  %v2329_v5 = vadd.f32 %v2313_v47, %v2280_v15  ;;  %v6225_v49 = vld [vmem:[#allocation2 + $0x68] sm:$0xff]  ;;  %v6238_v47 = vmul.f32 %v6178_v32, %v6149_v6 }
 0x282   : > { %2220 = vst.msk [vmem:[#allocation2 + $0x150] sm:$0xff] %vm571_vm0, %v2188_v50  ;;  %v2475_v42 = vadd.f32 %v2459_v35, %v2426_v30  ;;  %v2362_v50 = vmul.f32 %v2490_v9, %v6130_v20  ;;  %v6227_v1 = vld [vmem:[#allocation2 + $0x69] sm:$0xff]  ;;  %v6242_v9 = vmul.f32 %v6159_v40, %v6207_v59  ;;  %v6254_v51 = vmul.f32 %v6161_v17, %v6225_v49 }
 0x283   : > { %2221 = vst.msk [vmem:[#allocation2 + $0x168] sm:$0xff] %vm571_vm0, %v2189_v13  ;;  %v2523_v36 = vadd.f32 %v2507_v23, %v2474_v43  ;;  %v2411_v13 = vmul.f32 %v6164_v21, %v6132_v22  ;;  %v2460_v23 = vmul.f32 %v6166_v8, %v6147_v2  ;;  %v6258_v56 = vmul.f32 %v6168_v60, %v6227_v1 }
 0x284   : > { %2222 = vst.msk [vmem:[#allocation2 + $0x170] sm:$0xff] %vm571_vm0, %v2190_v14  ;;  %v2818_v15 = vld [vmem:[#allocation2 + $0x107] sm:$0xff]  ;;  %v2524_v43 = vadd.f32 %v2508_v57, %v2475_v42  ;;  %v2378_v16 = vadd.f32 %v2362_v50, %v2329_v5  ;;  %v7645_v42 = vmax.f32 %v6071_v10, 0.0 }
 0x285   : > { %v2866_v27 = vld [vmem:[#allocation2 + $0x108] sm:$0xff]  ;;  %2223 = vst.msk [vmem:[#allocation2 + $0x188] sm:$0xff] %vm571_vm0, %v2191_v38  ;;  %v2572_v24 = vadd.f32 %v2556_v48, %v2523_v36  ;;  %v2834_v14 = vmul.f32 %v2818_v15, %v6108_v11  ;;  %v2867_v35 = vld [vmem:[#allocation2 + $0x110] sm:$0xff]  ;;  %v2265_v38 = vmul.f32 %v6151_v33, %v6108_v11  ;;  %v7644_v48 = vmax.f32 %v6068_v3, 0.0 }
 0x286   : > { %v2819_v30 = vld [vmem:[#allocation2 + $0x10f] sm:$0xff]  ;;  %2224 = vst.msk [vmem:[#allocation2 + $0x190] sm:$0xff] %vm571_vm0, %v2192_v0  ;;  %v2882_v57 = vmul.f32 %v2866_v27, %v6125_v34  ;;  %v2314_v36 = vmul.f32 %v2442_v12, %v6125_v34  ;;  %v2962_v50 = vld [vmem:[#allocation2 + $0x127] sm:$0xff]  ;;  %v2573_v15 = vadd.f32 %v2557_v28, %v2524_v43  ;;  %v2883_v3 = vmul.f32 %v2867_v35, %v6125_v34 }
 0x287   : > { %v2914_v26 = vld [vmem:[#allocation2 + $0x109] sm:$0xff]  ;;  %v2835_v29 = vmul.f32 %v2819_v30, %v6108_v11  ;;  %2225 = vst.msk [vmem:[#allocation2 + $0x1a8] sm:$0xff] %vm571_vm0, %v7644_v48  ;;  %v2621_v62 = vadd.f32 %v2605_v41, %v2572_v24  ;;  %v2850_v0 = vadd.f32 %v6123_v63, %v2834_v14  ;;  %v2915_v5 = vld [vmem:[#allocation2 + $0x111] sm:$0xff]  ;;  %v6274_v30 = vmul.f32 %v2491_v7, %v6130_v20 }
 0x288   : > { %2226 = vst.msk [vmem:[#allocation2 + $0x1b0] sm:$0xff] %vm571_vm0, %v7645_v42  ;;  %v7646_v41 = vmax.f32 %v6075_v19, 0.0  ;;  %v2930_v12 = vmul.f32 %v2914_v26, %v6130_v20  ;;  %v2963_v10 = vld [vmem:[#allocation2 + $0x12f] sm:$0xff]  ;;  %v2427_v14 = vadd.f32 %v2411_v13, %v2378_v16  ;;  %v7647_v48 = vmax.f32 %v6078_v52, 0.0 }
 0x289   : > { %v2851_v33 = vadd.f32 %v6123_v63, %v2835_v29  ;;  %v2670_v27 = vadd.f32 %v2654_v4, %v2621_v62  ;;  %v2898_v24 = vadd.f32 %v2882_v57, %v2850_v0  ;;  %v3010_v29 = vld [vmem:[#allocation2 + $0x128] sm:$0xff]  ;;  %v2931_v43 = vmul.f32 %v2915_v5, %v6130_v20  ;;  %v3011_v13 = vld [vmem:[#allocation2 + $0x130] sm:$0xff] }
 0x28a   : > { %2227 = vst.msk [vmem:[#allocation2 + $0x1c8] sm:$0xff] %vm571_vm0, %v7646_v41  ;;  %v6286_v7 = vmul.f32 %v6186_v53, %v6132_v22  ;;  %v6290_v19 = vmul.f32 %v6188_v58, %v6147_v2  ;;  %v7648_v26 = vmax.f32 %v6100_v31, 0.0  ;;  %v2978_v16 = vmul.f32 %v2962_v50, %v6132_v22  ;;  %v3058_v4 = vld [vmem:[#allocation2 + $0x129] sm:$0xff] }
 0x28b   : > { %2228 = vst.msk [vmem:[#allocation2 + $0x1d0] sm:$0xff] %vm571_vm0, %v7647_v48  ;;  %v2899_v28 = vadd.f32 %v2883_v3, %v2851_v33  ;;  %4002 = vmatmul.msk.f32.vlgmr.msrb.gmra.mxu2 %vm571_vm0, %v2670_v27  ;;  %v2946_v52 = vadd.f32 %v2930_v12, %v2898_v24  ;;  %v2281_v35 = vadd.f32 %v6123_v63, %v2265_v38  ;;  %v6298_v62 = vld [vmem:[#allocation2 + $0x6f] sm:$0xff]  ;;  %v7649_v0 = vmax.f32 %v6104_v45, 0.0  ;;  %v6312_v41 = vld [vmem:[#allocation2 + $0x147] sm:$0xff] }
 0x28c   : > { %2229 = vst.msk [vmem:[#allocation2 + $0x1e8] sm:$0xff] %vm571_vm0, %v7648_v26  ;;  %v2622_v57 = vadd.f32 %v2606_v46, %v2573_v15  ;;  %v2979_v31 = vmul.f32 %v2963_v10, %v6132_v22  ;;  %v6306_v42 = vmul.f32 %v6197_v25, %v6149_v6  ;;  %v7650_v33 = vmax.f32 %v6112_v44, 0.0  ;;  %v3059_v45 = vld [vmem:[#allocation2 + $0x131] sm:$0xff]  ;;  %v6326_v26 = vld [vmem:[#allocation2 + $0x149] sm:$0xff] }
 0x28d   : > { %2230 = vst.msk [vmem:[#allocation2 + $0x1f0] sm:$0xff] %vm571_vm0, %v7649_v0  ;;  %v2947_v5 = vadd.f32 %v2931_v43, %v2899_v28  ;;  %v2994_v3 = vadd.f32 %v2978_v16, %v2946_v52  ;;  %v3026_v38 = vmul.f32 %v3010_v29, %v6147_v2  ;;  %v2476_v27 = vadd.f32 %v2460_v23, %v2427_v14  ;;  %v6324_v43 = vld [vmem:[#allocation2 + $0x148] sm:$0xff] }
 0x28e   : > { %2231 = vst.msk [vmem:[#allocation2 + $0x208] sm:$0xff] %vm571_vm0, %v7650_v33  ;;  %v2836_v46 = vmul.f32 %v2962_v50, %v6108_v11  ;;  %v7651_v15 = vmax.f32 %v6116_v54, 0.0  ;;  %v3074_v24 = vmul.f32 %v3058_v4, %v6149_v6  ;;  %v3027_v44 = vmul.f32 %v3011_v13, %v6147_v2 }
 0x28f   : > { %v2995_v12 = vadd.f32 %v2979_v31, %v2947_v5  ;;  %v6322_v48 = vmul.f32 %v6159_v40, %v6298_v62  ;;  %v3042_v28 = vadd.f32 %v3026_v38, %v2994_v3  ;;  %v2525_v23 = vadd.f32 %v6238_v47, %v2476_v27  ;;  %v6335_v31 = vld [vmem:[#allocation2 + $0x14f] sm:$0xff] }
 0x290   : > { %2232 = vst.msk [vmem:[#allocation2 + $0x210] sm:$0xff] %vm571_vm0, %v7651_v15  ;;  %v2852_v54 = vadd.f32 %v6123_v63, %v2836_v46  ;;  %v2884_v50 = vmul.f32 %v3010_v29, %v6125_v34  ;;  %v3122_v14 = vmul.f32 %v6312_v41, %v6159_v40  ;;  %v2671_v52 = vadd.f32 %v6222_v61, %v2622_v57  ;;  %v6344_v57 = vld [vmem:[#allocation2 + $0x150] sm:$0xff] }
 0x291   : > { %v3043_v16 = vadd.f32 %v3027_v44, %v2995_v12  ;;  %v3075_v0 = vmul.f32 %v3059_v45, %v6149_v6  ;;  %v3090_v5 = vadd.f32 %v3074_v24, %v3042_v28  ;;  %v2574_v33 = vadd.f32 %v6242_v9, %v2525_v23  ;;  %v6355_v28 = vld [vmem:[#allocation2 + $0x151] sm:$0xff] }
 0x292   : > { %v2900_v3 = vadd.f32 %v2884_v50, %v2852_v54  ;;  %v2932_v47 = vmul.f32 %v3058_v4, %v6130_v20  ;;  %v3170_v38 = vmul.f32 %v6324_v43, %v6161_v17  ;;  %v3218_v29 = vmul.f32 %v6326_v26, %v6168_v60  ;;  %v6357_v54 = vld [vmem:[#allocation2 + $0x167] sm:$0xff] }
 0x293   : > { %v3091_v27 = vadd.f32 %v3075_v0, %v3043_v16  ;;  %v2330_v46 = vadd.f32 %v2314_v36, %v2281_v35  ;;  %v3138_v61 = vadd.f32 %v3122_v14, %v3090_v5  ;;  %4003 = vmatmul.msk.f32.gmra.mxu2 %vm571_vm0, %v2671_v52  ;;  %v2980_v9 = vmul.f32 %v6312_v41, %v6132_v22  ;;  %v6366_v5 = vld [vmem:[#allocation2 + $0x168] sm:$0xff] }
 0x294   : > { %v2948_v15 = vadd.f32 %v2932_v47, %v2900_v3  ;;  %v2837_v24 = vmul.f32 %v2963_v10, %v6108_v11  ;;  %v3123_v4 = vmul.f32 %v6335_v31, %v6159_v40  ;;  %v2623_v12 = vadd.f32 %v6254_v51, %v2574_v33  ;;  %v6368_v33 = vld [vmem:[#allocation2 + $0x169] sm:$0xff] }
 0x295   : > { %v3028_v44 = vmul.f32 %v6324_v43, %v6147_v2  ;;  %v2379_v36 = vadd.f32 %v6274_v30, %v2330_v46  ;;  %v3186_v35 = vadd.f32 %v3170_v38, %v3138_v61  ;;  %v2885_v10 = vmul.f32 %v3011_v13, %v6125_v34  ;;  %v6380_v61 = vld [vmem:[#allocation2 + $0x71] sm:$0xff] }
 0x296   : > { %v2996_v23 = vadd.f32 %v2980_v9, %v2948_v15  ;;  %v2853_v50 = vadd.f32 %v6123_v63, %v2837_v24  ;;  %v3139_v14 = vadd.f32 %v3123_v4, %v3091_v27  ;;  %v3171_v52 = vmul.f32 %v6344_v57, %v6161_v17 }
 0x297   : > { %v3076_v51 = vmul.f32 %v6326_v26, %v6149_v6  ;;  %v2428_v16 = vadd.f32 %v6286_v7, %v2379_v36  ;;  %v3234_v30 = vadd.f32 %v3218_v29, %v3186_v35  ;;  %v2933_v47 = vmul.f32 %v3059_v45, %v6130_v20  ;;  %v6378_v29 = vld [vmem:[#allocation2 + $0x70] sm:$0xff] }
 0x298   : > { %v3044_v0 = vadd.f32 %v3028_v44, %v2996_v23  ;;  %v2901_v3 = vadd.f32 %v2885_v10, %v2853_v50  ;;  %v3219_v13 = vmul.f32 %v6355_v28, %v6168_v60  ;;  %v2672_v38 = vadd.f32 %v6258_v56, %v2623_v12  ;;  %v6394_v36 = vld [vmem:[#allocation2 + $0x16f] sm:$0xff] }
 0x299   : > { %v3124_v27 = vmul.f32 %v6357_v54, %v6159_v40  ;;  %v2477_v46 = vadd.f32 %v6290_v19, %v2428_v16  ;;  %4018 = vmatmul.msk.f32.vlgmr.msrb.gmra.mxu3 %vm571_vm0, %v3234_v30  ;;  %v2981_v45 = vmul.f32 %v6335_v31, %v6132_v22  ;;  %v2266_v9 = vmul.f32 %v6164_v21, %v6108_v11  ;;  %v6408_v16 = vld [vmem:[#allocation2 + $0x171] sm:$0xff] }
 0x29a   : > { %v3092_v7 = vadd.f32 %v3076_v51, %v3044_v0  ;;  %v2949_v15 = vadd.f32 %v2933_v47, %v2901_v3  ;;  %v3187_v56 = vadd.f32 %v3171_v52, %v3139_v14  ;;  %v3172_v24 = vmul.f32 %v6366_v5, %v6161_v17  ;;  %v6406_v14 = vld [vmem:[#allocation2 + $0x170] sm:$0xff] }
 0x29b   : > { %v3220_v19 = vmul.f32 %v6368_v33, %v6168_v60  ;;  %v2526_v4 = vadd.f32 %v6306_v42, %v2477_v46  ;;  %4004 = vmatmul.msk.f32.gmra.mxu2 %vm571_vm0, %v2672_v38  ;;  %v3029_v44 = vmul.f32 %v6344_v57, %v6147_v2  ;;  %v2282_v35 = vadd.f32 %v6123_v63, %v2266_v9  ;;  %v6428_v9 = vld [vmem:[#allocation2 + $0x89] sm:$0xff] }
 0x29c   : > { %v2997_v12 = vadd.f32 %v2981_v45, %v2949_v15  ;;  %v2315_v21 = vmul.f32 %v6166_v8, %v6125_v34  ;;  %v2608_v50 = vmul.f32 %v6161_v17, %v6378_v29  ;;  %v2657_v42 = vmul.f32 %v6168_v60, %v6380_v61  ;;  %v6420_v15 = vld [vmem:[#allocation2 + $0x87] sm:$0xff] }
 0x29d   : > { %v2575_v23 = vadd.f32 %v6322_v48, %v2526_v4  ;;  %v3077_v10 = vmul.f32 %v6355_v28, %v6149_v6  ;;  %v3140_v52 = vadd.f32 %v3124_v27, %v3092_v7  ;;  %v2364_v8 = vmul.f32 %v6178_v32, %v6130_v20  ;;  %v6426_v45 = vld [vmem:[#allocation2 + $0x88] sm:$0xff] }
 0x29e   : > { %v3045_v51 = vadd.f32 %v3029_v44, %v2997_v12  ;;  %v2331_v30 = vadd.f32 %v2315_v21, %v2282_v35  ;;  %v3235_v48 = vadd.f32 %v3219_v13, %v3187_v56  ;;  %v3125_v3 = vmul.f32 %v6394_v36, %v6159_v40 }
 0x29f   : > { %v2624_v0 = vadd.f32 %v2608_v50, %v2575_v23  ;;  %v2838_v47 = vmul.f32 %v6312_v41, %v6108_v11  ;;  %v3173_v46 = vmul.f32 %v6406_v14, %v6161_v17  ;;  %v2413_v7 = vmul.f32 %v6207_v59, %v6132_v22 }
 0x2a0   : > { %v3093_v38 = vadd.f32 %v3077_v10, %v3045_v51  ;;  %v2380_v27 = vadd.f32 %v2364_v8, %v2331_v30  ;;  %v3221_v32 = vmul.f32 %v6408_v16, %v6168_v60  ;;  %v2462_v13 = vmul.f32 %v6225_v49, %v6147_v2  ;;  %v6449_v8 = vld [vmem:[#allocation2 + $0x187] sm:$0xff] }
 0x2a1   : > { %v2854_v41 = vadd.f32 %v6123_v63, %v2838_v47  ;;  %v2886_v56 = vmul.f32 %v6324_v43, %v6125_v34  ;;  %4019 = vmatmul.msk.f32.gmra.mxu3 %vm571_vm0, %v3235_v48  ;;  %v3188_v4 = vadd.f32 %v3172_v24, %v3140_v52  ;;  %v2673_v12 = vadd.f32 %v2657_v42, %v2624_v0 }
 0x2a2   : > { %v2429_v44 = vadd.f32 %v2413_v7, %v2380_v27  ;;  %v2511_v35 = vmul.f32 %v6227_v1, %v6149_v6  ;;  %v2560_v21 = vmul.f32 %v6159_v40, %v6420_v15  ;;  %v2934_v50 = vmul.f32 %v6326_v26, %v6130_v20  ;;  %v6458_v27 = vld [vmem:[#allocation2 + $0x188] sm:$0xff] }
 0x2a3   : > { %v2902_v23 = vadd.f32 %v2886_v56, %v2854_v41  ;;  %v2267_v10 = vmul.f32 %v6186_v53, %v6108_v11  ;;  %4005 = vmatmul.msk.f32.gmra.mxu2 %vm571_vm0, %v2673_v12  ;;  %v3141_v43 = vadd.f32 %v3125_v3, %v3093_v38  ;;  %v2609_v24 = vmul.f32 %v6161_v17, %v6426_v45  ;;  %v6460_v7 = vld [vmem:[#allocation2 + $0x189] sm:$0xff] }
 0x2a4   : > { %v2478_v51 = vadd.f32 %v2462_v13, %v2429_v44  ;;  %v2658_v42 = vmul.f32 %v6168_v60, %v6428_v9  ;;  %v2982_v30 = vmul.f32 %v6357_v54, %v6132_v22  ;;  %v2316_v53 = vmul.f32 %v6188_v58, %v6125_v34 }
 0x2a5   : > { %v2950_v52 = vadd.f32 %v2934_v50, %v2902_v23  ;;  %v2283_v26 = vadd.f32 %v6123_v63, %v2267_v10  ;;  %v3236_v48 = vadd.f32 %v3220_v19, %v3188_v4  ;;  %v3030_v3 = vmul.f32 %v6366_v5, %v6147_v2  ;;  %v6480_v10 = vld [vmem:[#allocation2 + $0x8f] sm:$0xff] }
 0x2a6   : > { %v2527_v0 = vadd.f32 %v2511_v35, %v2478_v51  ;;  %v3078_v47 = vmul.f32 %v6368_v33, %v6149_v6  ;;  %v2365_v41 = vmul.f32 %v6197_v25, %v6130_v20  ;;  %v2839_v58 = vmul.f32 %v6335_v31, %v6108_v11 }
 0x2a7   : > { %v2998_v38 = vadd.f32 %v2982_v30, %v2950_v52  ;;  %v2332_v13 = vadd.f32 %v2316_v53, %v2283_v26  ;;  %v3189_v19 = vadd.f32 %v3173_v46, %v3141_v43  ;;  %v3126_v4 = vmul.f32 %v6449_v8, %v6159_v40  ;;  %v6482_v52 = vld [vmem:[#allocation2 + $0x90] sm:$0xff] }
 0x2a8   : > { %v2576_v56 = vadd.f32 %v2560_v21, %v2527_v0  ;;  %v2414_v12 = vmul.f32 %v6298_v62, %v6132_v22  ;;  %v2855_v23 = vadd.f32 %v6123_v63, %v2839_v58  ;;  %v2887_v50 = vmul.f32 %v6344_v57, %v6125_v34  ;;  %v6484_v30 = vld [vmem:[#allocation2 + $0x91] sm:$0xff] }
 0x2a9   : > { %v3046_v44 = vadd.f32 %v3030_v3, %v2998_v38  ;;  %v2381_v35 = vadd.f32 %v2365_v41, %v2332_v13  ;;  %4020 = vmatmul.msk.f32.gmra.mxu3 %vm571_vm0, %v3236_v48  ;;  %v3174_v31 = vmul.f32 %v6458_v27, %v6161_v17  ;;  %v3222_v46 = vmul.f32 %v6460_v7, %v6168_v60  ;;  %v6503_v41 = vld [vmem:[#allocation2 + $0x190] sm:$0xff] }
 0x2aa   : > { %v2625_v25 = vadd.f32 %v2609_v24, %v2576_v56  ;;  %v2463_v21 = vmul.f32 %v6378_v29, %v6147_v2  ;;  %v2903_v57 = vadd.f32 %v2887_v50, %v2855_v23  ;;  %v2935_v24 = vmul.f32 %v6355_v28, %v6130_v20  ;;  %v6512_v23 = vld [vmem:[#allocation2 + $0x191] sm:$0xff] }
 0x2ab   : > { %v3094_v43 = vadd.f32 %v3078_v47, %v3046_v44  ;;  %v2430_v51 = vadd.f32 %v2414_v12, %v2381_v35  ;;  %v3237_v26 = vadd.f32 %v3221_v32, %v3189_v19  ;;  %v2512_v48 = vmul.f32 %v6380_v61, %v6149_v6 }
 0x2ac   : > { %v2674_v53 = vadd.f32 %v2658_v42, %v2625_v25  ;;  %v2268_v0 = vmul.f32 %v6207_v59, %v6108_v11  ;;  %v2561_v47 = vmul.f32 %v6159_v40, %v6480_v10  ;;  %v2951_v38 = vadd.f32 %v2935_v24, %v2903_v57  ;;  %v6501_v42 = vld [vmem:[#allocation2 + $0x18f] sm:$0xff] }
 0x2ad   : > { %v2479_v3 = vadd.f32 %v2463_v21, %v2430_v51  ;;  %v2983_v13 = vmul.f32 %v6394_v36, %v6132_v22  ;;  %v2610_v28 = vmul.f32 %v6161_v17, %v6482_v52  ;;  %v2659_v32 = vmul.f32 %v6168_v60, %v6484_v30 }
 0x2ae   : > { %4006 = vmatmul.msk.f32.gmra.mxu2 %vm571_vm0, %v2674_v53  ;;  %v2284_v59 = vadd.f32 %v6123_v63, %v2268_v0  ;;  %v2317_v58 = vmul.f32 %v6225_v49, %v6125_v34  ;;  %v3142_v19 = vadd.f32 %v3126_v4, %v3094_v43  ;;  %v3031_v44 = vmul.f32 %v6406_v14, %v6147_v2  ;;  %v6525_v53 = vld [vmem:[#allocation2 + $0xa7] sm:$0xff] }
 0x2af   : > { %v2528_v56 = vadd.f32 %v2512_v48, %v2479_v3  ;;  %v2999_v12 = vadd.f32 %v2983_v13, %v2951_v38  ;;  %v3079_v35 = vmul.f32 %v6408_v16, %v6149_v6  ;;  %v2366_v25 = vmul.f32 %v6227_v1, %v6130_v20 }
 0x2b0   : > { %v2333_v50 = vadd.f32 %v2317_v58, %v2284_v59  ;;  %v2840_v21 = vmul.f32 %v6357_v54, %v6108_v11  ;;  %v3127_v4 = vmul.f32 %v6501_v42, %v6159_v40  ;;  %v3175_v43 = vmul.f32 %v6503_v41, %v6161_v17  ;;  %v6536_v59 = vld [vmem:[#allocation2 + $0xa9] sm:$0xff] }
 0x2b1   : > { %v2577_v51 = vadd.f32 %v2561_v47, %v2528_v56  ;;  %v3047_v49 = vadd.f32 %v3031_v44, %v2999_v12  ;;  %4021 = vmatmul.msk.f32.gmra.mxu3 %vm571_vm0, %v3237_v26  ;;  %v2415_v24 = vmul.f32 %v6420_v15, %v6132_v22  ;;  %v2888_v54 = vmul.f32 %v6366_v5, %v6125_v34  ;;  %v6534_v26 = vld [vmem:[#allocation2 + $0xa8] sm:$0xff] }
 0x2b2   : > { %v2382_v57 = vadd.f32 %v2366_v25, %v2333_v50  ;;  %v2856_v1 = vadd.f32 %v6123_v63, %v2840_v21  ;;  %v3190_v48 = vadd.f32 %v3174_v31, %v3142_v19  ;;  %v3223_v3 = vmul.f32 %v6512_v23, %v6168_v60  ;;  %v6555_v21 = vld [vmem:[#allocation2 + $0x1a8] sm:$0xff] }
 0x2b3   : > { %v2626_v0 = vadd.f32 %v2610_v28, %v2577_v51  ;;  %v2464_v47 = vmul.f32 %v6426_v45, %v6147_v2  ;;  %v3095_v38 = vadd.f32 %v3079_v35, %v3047_v49  ;;  %v2936_v56 = vmul.f32 %v6368_v33, %v6130_v20 }
 0x2b4   : > { %v2431_v13 = vadd.f32 %v2415_v24, %v2382_v57  ;;  %v2904_v58 = vadd.f32 %v2888_v54, %v2856_v1  ;;  %v2513_v5 = vmul.f32 %v6428_v9, %v6149_v6  ;;  %v2562_v31 = vmul.f32 %v6159_v40, %v6525_v53  ;;  %v6564_v54 = vld [vmem:[#allocation2 + $0x1a9] sm:$0xff] }
 0x2b5   : > { %v2675_v12 = vadd.f32 %v2659_v32, %v2626_v0  ;;  %v2269_v28 = vmul.f32 %v6298_v62, %v6108_v11  ;;  %v2611_v44 = vmul.f32 %v6161_v17, %v6534_v26  ;;  %v2984_v50 = vmul.f32 %v6449_v8, %v6132_v22  ;;  %v6553_v32 = vld [vmem:[#allocation2 + $0x1a7] sm:$0xff] }
 0x2b6   : > { %v2480_v19 = vadd.f32 %v2464_v47, %v2431_v13  ;;  %v2952_v35 = vadd.f32 %v2936_v56, %v2904_v58  ;;  %v3238_v25 = vadd.f32 %v3222_v46, %v3190_v48  ;;  %v2660_v33 = vmul.f32 %v6168_v60, %v6536_v59 }
 0x2b7   : > { %4007 = vmatmul.msk.f32.gmra.mxu2 %vm571_vm0, %v2675_v12  ;;  %v2285_v62 = vadd.f32 %v6123_v63, %v2269_v28  ;;  %v2318_v51 = vmul.f32 %v6378_v29, %v6125_v34  ;;  %v3143_v49 = vadd.f32 %v3127_v4, %v3095_v38  ;;  %v3032_v46 = vmul.f32 %v6458_v27, %v6147_v2  ;;  %v6577_v12 = vld [vmem:[#allocation2 + $0xaf] sm:$0xff] }
 0x2b8   : > { %v2529_v57 = vadd.f32 %v2513_v5, %v2480_v19  ;;  %v3000_v24 = vadd.f32 %v2984_v50, %v2952_v35  ;;  %v3080_v1 = vmul.f32 %v6460_v7, %v6149_v6  ;;  %v2367_v0 = vmul.f32 %v6380_v61, %v6130_v20 }
 0x2b9   : > { %v2334_v48 = vadd.f32 %v2318_v51, %v2285_v62  ;;  %v2841_v47 = vmul.f32 %v6394_v36, %v6108_v11  ;;  %4022 = vmatmul.msk.f32.gmra.mxu3 %vm571_vm0, %v3238_v25  ;;  %v3128_v38 = vmul.f32 %v6553_v32, %v6159_v40  ;;  %v3176_v13 = vmul.f32 %v6555_v21, %v6161_v17  ;;  %v6586_v25 = vld [vmem:[#allocation2 + $0xb0] sm:$0xff] }
 0x2ba   : > { %v2578_v29 = vadd.f32 %v2562_v31, %v2529_v57  ;;  %v3048_v4 = vadd.f32 %v3032_v46, %v3000_v24  ;;  %v2416_v56 = vmul.f32 %v6480_v10, %v6132_v22  ;;  %v2889_v36 = vmul.f32 %v6406_v14, %v6125_v34 }
 0x2bb   : > { %v2383_v58 = vadd.f32 %v2367_v0, %v2334_v48  ;;  %v2857_v61 = vadd.f32 %v6123_v63, %v2841_v47  ;;  %v3191_v5 = vadd.f32 %v3175_v43, %v3143_v49  ;;  %v3224_v19 = vmul.f32 %v6564_v54, %v6168_v60 }
 0x2bc   : > { %v2627_v31 = vadd.f32 %v2611_v44, %v2578_v29  ;;  %v3096_v28 = vadd.f32 %v3080_v1, %v3048_v4  ;;  %v2465_v50 = vmul.f32 %v6482_v52, %v6147_v2  ;;  %v2937_v51 = vmul.f32 %v6408_v16, %v6130_v20  ;;  %v6594_v44 = vld [vmem:[#allocation2 + $0xb1] sm:$0xff] }
 0x2bd   : > { %v2432_v35 = vadd.f32 %v2416_v56, %v2383_v58  ;;  %v2905_v62 = vadd.f32 %v2889_v36, %v2857_v61  ;;  %v2514_v14 = vmul.f32 %v6484_v30, %v6149_v6  ;;  %v2563_v43 = vmul.f32 %v6159_v40, %v6577_v12  ;;  %v6615_v56 = vld [vmem:[#allocation2 + $0x1b0] sm:$0xff] }
 0x2be   : > { %v2676_v57 = vadd.f32 %v2660_v33, %v2627_v31  ;;  %v2270_v49 = vmul.f32 %v6420_v15, %v6108_v11  ;;  %v3144_v24 = vadd.f32 %v3128_v38, %v3096_v28  ;;  %v2985_v48 = vmul.f32 %v6501_v42, %v6132_v22  ;;  %v6603_v33 = vld [vmem:[#allocation2 + $0x1af] sm:$0xff] }
 0x2bf   : > { %v2481_v46 = vadd.f32 %v2465_v50, %v2432_v35  ;;  %v2953_v1 = vadd.f32 %v2937_v51, %v2905_v62  ;;  %v3239_v0 = vadd.f32 %v3223_v3, %v3191_v5  ;;  %v2612_v16 = vmul.f32 %v6161_v17, %v6586_v25  ;;  %v6617_v61 = vld [vmem:[#allocation2 + $0x1b1] sm:$0xff] }
 0x2c0   : > { %4008 = vmatmul.msk.f32.gmra.mxu2 %vm571_vm0, %v2676_v57  ;;  %v2286_v47 = vadd.f32 %v6123_v63, %v2270_v49  ;;  %v2319_v29 = vmul.f32 %v6426_v45, %v6125_v34  ;;  %v2661_v4 = vmul.f32 %v6168_v60, %v6594_v44  ;;  %v3033_v3 = vmul.f32 %v6503_v41, %v6147_v2 }
 0x2c1   : > { %v2530_v15 = vadd.f32 %v2514_v14, %v2481_v46  ;;  %v3001_v38 = vadd.f32 %v2985_v48, %v2953_v1  ;;  %4023 = vmatmul.msk.f32.gmra.mxu3 %vm571_vm0, %v3239_v0  ;;  %v3081_v58 = vmul.f32 %v6512_v23, %v6149_v6  ;;  %v2368_v45 = vmul.f32 %v6428_v9, %v6130_v20  ;;  %v6636_v46 = vld [vmem:[#allocation2 + $0xc7] sm:$0xff] }
 0x2c2   : > { %v2335_v36 = vadd.f32 %v2319_v29, %v2286_v47  ;;  %v2842_v5 = vmul.f32 %v6449_v8, %v6108_v11  ;;  %v3192_v31 = vadd.f32 %v3176_v13, %v3144_v24  ;;  %v3129_v50 = vmul.f32 %v6603_v33, %v6159_v40  ;;  %v6638_v1 = vld [vmem:[#allocation2 + $0xc8] sm:$0xff] }
 0x2c3   : > { %v2579_v28 = vadd.f32 %v2563_v43, %v2530_v15  ;;  %v3049_v35 = vadd.f32 %v3033_v3, %v3001_v38  ;;  %v2417_v51 = vmul.f32 %v6525_v53, %v6132_v22  ;;  %v2890_v14 = vmul.f32 %v6458_v27, %v6125_v34  ;;  %v6644_v29 = vld [vmem:[#allocation2 + $0xc9] sm:$0xff] }
 0x2c4   : > { %v2384_v62 = vadd.f32 %v2368_v45, %v2335_v36  ;;  %v2858_v57 = vadd.f32 %v6123_v63, %v2842_v5  ;;  %v3177_v8 = vmul.f32 %v6615_v56, %v6161_v17  ;;  %v3225_v13 = vmul.f32 %v6617_v61, %v6168_v60 }
 0x2c5   : > { %v2628_v49 = vadd.f32 %v2612_v16, %v2579_v28  ;;  %v3097_v9 = vadd.f32 %v3081_v58, %v3049_v35  ;;  %v2466_v24 = vmul.f32 %v6534_v26, %v6147_v2  ;;  %v2938_v27 = vmul.f32 %v6460_v7, %v6130_v20 }
 0x2c6   : > { %v2433_v43 = vadd.f32 %v2417_v51, %v2384_v62  ;;  %v2906_v48 = vadd.f32 %v2890_v14, %v2858_v57  ;;  %v3240_v0 = vadd.f32 %v3224_v19, %v3192_v31  ;;  %v2515_v47 = vmul.f32 %v6536_v59, %v6149_v6  ;;  %v6667_v62 = vld [vmem:[#allocation2 + $0x1c8] sm:$0xff] }
 0x2c7   : > { %v2677_v16 = vadd.f32 %v2661_v4, %v2628_v49  ;;  %v2271_v15 = vmul.f32 %v6480_v10, %v6108_v11  ;;  %v3145_v38 = vadd.f32 %v3129_v50, %v3097_v9  ;;  %v2986_v36 = vmul.f32 %v6553_v32, %v6132_v22  ;;  %v6655_v4 = vld [vmem:[#allocation2 + $0x1c7] sm:$0xff] }
 0x2c8   : > { %v2482_v3 = vadd.f32 %v2466_v24, %v2433_v43  ;;  %v2954_v58 = vadd.f32 %v2938_v27, %v2906_v48  ;;  %v2564_v7 = vmul.f32 %v6159_v40, %v6636_v46  ;;  %v2613_v19 = vmul.f32 %v6161_v17, %v6638_v1  ;;  %v6669_v51 = vld [vmem:[#allocation2 + $0x1c9] sm:$0xff] }
 0x2c9   : > { %4009 = vmatmul.msk.f32.gmra.mxu2 %vm571_vm0, %v2677_v16  ;;  %v2287_v45 = vadd.f32 %v6123_v63, %v2271_v15  ;;  %v2320_v10 = vmul.f32 %v6482_v52, %v6125_v34  ;;  %4024 = vmatmul.msk.f32.gmra.mxu3 %vm571_vm0, %v3240_v0  ;;  %v2662_v31 = vmul.f32 %v6168_v60, %v6644_v29 }
 0x2ca   : > { %v2531_v5 = vadd.f32 %v2515_v47, %v2482_v3  ;;  %v3002_v28 = vadd.f32 %v2986_v36, %v2954_v58  ;;  %v3034_v35 = vmul.f32 %v6555_v21, %v6147_v2  ;;  %v3082_v50 = vmul.f32 %v6564_v54, %v6149_v6  ;;  %v6688_v3 = vld [vmem:[#allocation2 + $0xcf] sm:$0xff] }
 0x2cb   : > { %v2336_v57 = vadd.f32 %v2320_v10, %v2287_v45  ;;  %v2369_v52 = vmul.f32 %v6484_v30, %v6130_v20  ;;  %v2843_v14 = vmul.f32 %v6501_v42, %v6108_v11  ;;  %v3193_v49 = vadd.f32 %v3177_v8, %v3145_v38  ;;  %v6692_v45 = vld [vmem:[#allocation2 + $0xd0] sm:$0xff] }
 0x2cc   : > { %v2580_v9 = vadd.f32 %v2564_v7, %v2531_v5  ;;  %v3050_v43 = vadd.f32 %v3034_v35, %v3002_v28  ;;  %v3130_v24 = vmul.f32 %v6655_v4, %v6159_v40  ;;  %v2418_v27 = vmul.f32 %v6577_v12, %v6132_v22  ;;  %v6698_v35 = vld [vmem:[#allocation2 + $0xd1] sm:$0xff] }
 0x2cd   : > { %v2385_v48 = vadd.f32 %v2369_v52, %v2336_v57  ;;  %v2859_v0 = vadd.f32 %v6123_v63, %v2843_v14  ;;  %v2891_v16 = vmul.f32 %v6503_v41, %v6125_v34  ;;  %v3178_v42 = vmul.f32 %v6667_v62, %v6161_v17 }
 0x2ce   : > { %v2629_v47 = vadd.f32 %v2613_v19, %v2580_v9  ;;  %v3098_v30 = vadd.f32 %v3082_v50, %v3050_v43  ;;  %v3226_v8 = vmul.f32 %v6669_v51, %v6168_v60  ;;  %v2467_v38 = vmul.f32 %v6586_v25, %v6147_v2  ;;  %v6713_v9 = vld [vmem:[#allocation2 + $0x1cf] sm:$0xff] }
 0x2cf   : > { %v2434_v15 = vadd.f32 %v2418_v27, %v2385_v48  ;;  %v2907_v58 = vadd.f32 %v2891_v16, %v2859_v0  ;;  %v2939_v36 = vmul.f32 %v6512_v23, %v6130_v20  ;;  %v3241_v7 = vadd.f32 %v3225_v13, %v3193_v49  ;;  %v6715_v43 = vld [vmem:[#allocation2 + $0x1d0] sm:$0xff] }
 0x2d0   : > { %v2678_v41 = vadd.f32 %v2662_v31, %v2629_v47  ;;  %v3146_v19 = vadd.f32 %v3130_v24, %v3098_v30  ;;  %v2272_v10 = vmul.f32 %v6525_v53, %v6108_v11  ;;  %v2516_v28 = vmul.f32 %v6594_v44, %v6149_v6 }
 0x2d1   : > { %v2483_v5 = vadd.f32 %v2467_v38, %v2434_v15  ;;  %v2955_v50 = vadd.f32 %v2939_v36, %v2907_v58  ;;  %v2987_v57 = vmul.f32 %v6603_v33, %v6132_v22  ;;  %4025 = vmatmul.msk.f32.gmra.mxu3 %vm571_vm0, %v3241_v7  ;;  %v2565_v23 = vmul.f32 %v6159_v40, %v6688_v3  ;;  %v6731_v7 = vld [vmem:[#allocation2 + $0x1d1] sm:$0xff] }
 0x2d2   : > { %4010 = vmatmul.msk.f32.gmra.mxu2 %vm571_vm0, %v2678_v41  ;;  %v2288_v13 = vadd.f32 %v6123_v63, %v2272_v10  ;;  %v2321_v53 = vmul.f32 %v6534_v26, %v6125_v34  ;;  %v2614_v52 = vmul.f32 %v6161_v17, %v6692_v45  ;;  %v3035_v49 = vmul.f32 %v6615_v56, %v6147_v2  ;;  %v6733_v41 = vld [vmem:[#allocation2 + $0xe7] sm:$0xff] }
 0x2d3   : > { %v2532_v31 = vadd.f32 %v2516_v28, %v2483_v5  ;;  %v3003_v14 = vadd.f32 %v2987_v57, %v2955_v50  ;;  %v3194_v24 = vadd.f32 %v3178_v42, %v3146_v19  ;;  %v2663_v48 = vmul.f32 %v6168_v60, %v6698_v35 }
 0x2d4   : > { %v2337_v27 = vadd.f32 %v2321_v53, %v2288_v13  ;;  %v2370_v26 = vmul.f32 %v6536_v59, %v6130_v20  ;;  %v3083_v47 = vmul.f32 %v6617_v61, %v6149_v6  ;;  %v2844_v30 = vmul.f32 %v6553_v32, %v6108_v11  ;;  %v6742_v13 = vld [vmem:[#allocation2 + $0xe8] sm:$0xff] }
 0x2d5   : > { %v2581_v0 = vadd.f32 %v2565_v23, %v2532_v31  ;;  %v3051_v16 = vadd.f32 %v3035_v49, %v3003_v14  ;;  %v3131_v15 = vmul.f32 %v6713_v9, %v6159_v40  ;;  %v3179_v42 = vmul.f32 %v6715_v43, %v6161_v17  ;;  %v6744_v53 = vld [vmem:[#allocation2 + $0xe9] sm:$0xff] }
 0x2d6   : > { %v2386_v38 = vadd.f32 %v2370_v26, %v2337_v27  ;;  %v2419_v58 = vmul.f32 %v6636_v46, %v6132_v22  ;;  %v2860_v19 = vadd.f32 %v6123_v63, %v2844_v30  ;;  %v2892_v32 = vmul.f32 %v6555_v21, %v6125_v34  ;;  %v6772_v30 = vld [vmem:[#allocation2 + $0x1e8] sm:$0xff] }
 0x2d7   : > { %v2630_v36 = vadd.f32 %v2614_v52, %v2581_v0  ;;  %v3099_v59 = vadd.f32 %v3083_v47, %v3051_v16  ;;  %v3242_v10 = vadd.f32 %v3226_v8, %v3194_v24  ;;  %v2468_v28 = vmul.f32 %v6638_v1, %v6147_v2  ;;  %v6758_v24 = vld [vmem:[#allocation2 + $0x1e7] sm:$0xff] }
 0x2d8   : > { %v2435_v5 = vadd.f32 %v2419_v58, %v2386_v38  ;;  %v2940_v50 = vmul.f32 %v6564_v54, %v6130_v20  ;;  %v2908_v31 = vadd.f32 %v2892_v32, %v2860_v19  ;;  %v2273_v63 = vmul.f32 %v6577_v12, %v6108_v11  ;;  %v6763_v12 = vld [vmem:[%s7551_s8] ss:$0 sm:$0xff]  ;;  %v6782_v19 = vld [vmem:[#allocation2 + $0x1e9] sm:$0xff] }
 0x2d9   : > { %v2679_v57 = vadd.f32 %v2663_v48, %v2630_v36  ;;  %v3147_v23 = vadd.f32 %v3131_v15, %v3099_v59  ;;  %4026 = vmatmul.msk.f32.gmra.mxu3 %vm571_vm0, %v3242_v10  ;;  %v3227_v21 = vmul.f32 %v6731_v7, %v6168_v60  ;;  %v2517_v52 = vmul.f32 %v6644_v29, %v6149_v6 }
 0x2da   : > { %v2484_v8 = vadd.f32 %v2468_v28, %v2435_v5  ;;  %v2566_v54 = vmul.f32 %v6159_v40, %v6733_v41  ;;  %v2956_v14 = vadd.f32 %v2940_v50, %v2908_v31  ;;  %v2988_v49 = vmul.f32 %v6655_v4, %v6132_v22 }
 0x2db   : > { %4011 = vmatmul.msk.f32.gmra.mxu2 %vm571_vm0, %v2679_v57  ;;  %v2289_v48 = vadd.f32 %v6763_v12, %v2273_v63  ;;  %v2322_v27 = vmul.f32 %v6586_v25, %v6125_v34  ;;  %v3195_v26 = vadd.f32 %v3179_v42, %v3147_v23  ;;  %v2615_v16 = vmul.f32 %v6161_v17, %v6742_v13  ;;  %v6790_v23 = vld [vmem:[#allocation2 + $0xef] sm:$0xff] }
 0x2dc   : > { %v2533_v0 = vadd.f32 %v2517_v52, %v2484_v8  ;;  %v2664_v47 = vmul.f32 %v6168_v60, %v6744_v53  ;;  %v3004_v15 = vadd.f32 %v2988_v49, %v2956_v14  ;;  %v3036_v38 = vmul.f32 %v6667_v62, %v6147_v2 }
 0x2dd   : > { %v2338_v58 = vadd.f32 %v2322_v27, %v2289_v48  ;;  %v2371_v36 = vmul.f32 %v6594_v44, %v6130_v20  ;;  %v3084_v25 = vmul.f32 %v6669_v51, %v6149_v6  ;;  %v3132_v42 = vmul.f32 %v6758_v24, %v6159_v40 }
 0x2de   : > { %v2582_v59 = vadd.f32 %v2566_v54, %v2533_v0  ;;  %v2845_v32 = vmul.f32 %v6603_v33, %v6108_v11  ;;  %v3052_v10 = vadd.f32 %v3036_v38, %v3004_v15  ;;  %v3180_v5 = vmul.f32 %v6772_v30, %v6161_v17 }
 0x2df   : > { %v2387_v28 = vadd.f32 %v2371_v36, %v2338_v58  ;;  %v2420_v44 = vmul.f32 %v6688_v3, %v6132_v22  ;;  %v3243_v50 = vadd.f32 %v3227_v21, %v3195_v26  ;;  %v2893_v63 = vmul.f32 %v6615_v56, %v6125_v34  ;;  %v6800_v21 = vld [vmem:[#allocation2 + $0xf0] sm:$0xff] }
 0x2e0   : > { %v2631_v57 = vadd.f32 %v2615_v16, %v2582_v59  ;;  %v2861_v31 = vadd.f32 %v6763_v12, %v2845_v32  ;;  %v3100_v8 = vadd.f32 %v3084_v25, %v3052_v10  ;;  %v3228_v33 = vmul.f32 %v6782_v19, %v6168_v60  ;;  %v6820_v25 = vld [vmem:[#allocation2 + $0xf1] sm:$0xff] }
 0x2e1   : > { %v2436_v52 = vadd.f32 %v2420_v44, %v2387_v28  ;;  %v2469_v54 = vmul.f32 %v6692_v45, %v6147_v2  ;;  %4027 = vmatmul.msk.f32.gmra.mxu3 %vm571_vm0, %v3243_v50  ;;  %v2941_v48 = vmul.f32 %v6617_v61, %v6130_v20  ;;  %v2274_v56 = vmul.f32 %v6636_v46, %v6108_v11  ;;  %v6822_v32 = vld [vmem:[#allocation2 + $0x1ef] sm:$0xff] }
 0x2e2   : > { %v2680_v14 = vadd.f32 %v2664_v47, %v2631_v57  ;;  %v2909_v49 = vadd.f32 %v2893_v63, %v2861_v31  ;;  %v3148_v27 = vadd.f32 %v3132_v42, %v3100_v8  ;;  %v2518_v0 = vmul.f32 %v6698_v35, %v6149_v6  ;;  %v6832_v63 = vld [vmem:[#allocation2 + $0x1f0] sm:$0xff] }
 0x2e3   : > { %v2485_v26 = vadd.f32 %v2469_v54, %v2436_v52  ;;  %v2567_v16 = vmul.f32 %v6159_v40, %v6790_v23  ;;  %v2989_v15 = vmul.f32 %v6713_v9, %v6132_v22  ;;  %v2290_v38 = vadd.f32 %v6763_v12, %v2274_v56 }
 0x2e4   : > { %4012 = vmatmul.msk.f32.gmra.mxu2 %vm571_vm0, %v2680_v14  ;;  %v2957_v47 = vadd.f32 %v2941_v48, %v2909_v49  ;;  %v2323_v61 = vmul.f32 %v6638_v1, %v6125_v34  ;;  %v3196_v46 = vadd.f32 %v3180_v5, %v3148_v27  ;;  %v2616_v36 = vmul.f32 %v6161_v17, %v6800_v21  ;;  %v6844_v48 = vld [vmem:[#allocation2 + $0x1f1] sm:$0xff]  ;;  %v6846_v27 = vld [vmem:[#allocation2 + $0x107] sm:$0xff] }
 0x2e5   : > { %v2534_v58 = vadd.f32 %v2518_v0, %v2485_v26  ;;  %v3037_v59 = vmul.f32 %v6715_v43, %v6147_v2  ;;  %v2372_v28 = vmul.f32 %v6644_v29, %v6130_v20  ;;  %v2846_v1 = vmul.f32 %v6655_v4, %v6108_v11 }
 0x2e6   : > { %v3005_v42 = vadd.f32 %v2989_v15, %v2957_v47  ;;  %v2339_v10 = vadd.f32 %v2323_v61, %v2290_v38  ;;  %v3244_v5 = vadd.f32 %v3228_v33, %v3196_v46  ;;  %v3085_v50 = vmul.f32 %v6731_v7, %v6149_v6  ;;  %v6856_v46 = vld [vmem:[#allocation2 + $0x108] sm:$0xff] }
 0x2e7   : > { %v2583_v44 = vadd.f32 %v2567_v16, %v2534_v58  ;;  %v2421_v57 = vmul.f32 %v6733_v41, %v6132_v22  ;;  %v2862_v52 = vadd.f32 %v6763_v12, %v2846_v1  ;;  %v2894_v29 = vmul.f32 %v6667_v62, %v6125_v34 }
 0x2e8   : > { %v3053_v31 = vadd.f32 %v3037_v59, %v3005_v42  ;;  %v2388_v8 = vadd.f32 %v2372_v28, %v2339_v10  ;;  %v2665_v4 = vmul.f32 %v6168_v60, %v6820_v25  ;;  %v3133_v33 = vmul.f32 %v6822_v32, %v6159_v40 }
 0x2e9   : > { %v2632_v54 = vadd.f32 %v2616_v36, %v2583_v44  ;;  %v2470_v14 = vmul.f32 %v6742_v13, %v6147_v2  ;;  %4028 = vmatmul.msk.f32.gmra.mxu3 %vm571_vm0, %v3244_v5  ;;  %v2910_v26 = vadd.f32 %v2894_v29, %v2862_v52  ;;  %v2942_v62 = vmul.f32 %v6669_v51, %v6130_v20 }
 0x2ea   : > { %v3101_v49 = vadd.f32 %v3085_v50, %v3053_v31  ;;  %v2437_v56 = vadd.f32 %v2421_v57, %v2388_v8  ;;  %v3181_v16 = vmul.f32 %v6832_v63, %v6161_v17  ;;  %v2519_v47 = vmul.f32 %v6744_v53, %v6149_v6  ;;  %v6872_v50 = vld [vmem:[#allocation2 + $0x109] sm:$0xff] }
 0x2eb   : > { %v2681_v0 = vadd.f32 %v2665_v4, %v2632_v54  ;;  %v2275_v15 = vmul.f32 %v6688_v3, %v6108_v11  ;;  %v2958_v58 = vadd.f32 %v2942_v62, %v2910_v26  ;;  %v2990_v36 = vmul.f32 %v6758_v24, %v6132_v22  ;;  %v6874_v57 = vld [vmem:[#allocation2 + $0x207] sm:$0xff] }
 0x2ec   : > { %v3149_v38 = vadd.f32 %v3133_v33, %v3101_v49  ;;  %v2486_v61 = vadd.f32 %v2470_v14, %v2437_v56  ;;  %v3229_v51 = vmul.f32 %v6844_v48, %v6168_v60  ;;  %v2568_v59 = vmul.f32 %v6159_v40, %v6846_v27  ;;  %v6882_v33 = vld [vmem:[#allocation2 + $0x208] sm:$0xff] }
 0x2ed   : > { %4013 = vmatmul.msk.f32.gmra.mxu2 %vm571_vm0, %v2681_v0  ;;  %v2291_v42 = vadd.f32 %v6763_v12, %v2275_v15  ;;  %v2324_v3 = vmul.f32 %v6692_v45, %v6125_v34  ;;  %v3006_v1 = vadd.f32 %v2990_v36, %v2958_v58  ;;  %v3038_v5 = vmul.f32 %v6772_v30, %v6147_v2 }
 0x2ee   : > { %v3197_v10 = vadd.f32 %v3181_v16, %v3149_v38  ;;  %v2535_v28 = vadd.f32 %v2519_v47, %v2486_v61  ;;  %v2617_v44 = vmul.f32 %v6161_v17, %v6856_v46  ;;  %v2373_v8 = vmul.f32 %v6698_v35, %v6130_v20  ;;  %v6894_v16 = vld [vmem:[#allocation2 + $0x209] sm:$0xff] }
 0x2ef   : > { %v2340_v31 = vadd.f32 %v2324_v3, %v2291_v42  ;;  %v2847_v45 = vmul.f32 %v6713_v9, %v6108_v11  ;;  %v3054_v54 = vadd.f32 %v3038_v5, %v3006_v1  ;;  %v3086_v4 = vmul.f32 %v6782_v19, %v6149_v6 }
 0x2f0   : > { %v3245_v52 = vadd.f32 %v3229_v51, %v3197_v10  ;;  %v2584_v29 = vadd.f32 %v2568_v59, %v2535_v28  ;;  %v2422_v49 = vmul.f32 %v6790_v23, %v6132_v22  ;;  %v2895_v35 = vmul.f32 %v6715_v43, %v6125_v34  ;;  %v6902_v51 = vld [vmem:[#allocation2 + $0x10f] sm:$0xff] }
 0x2f1   : > { %v2389_v14 = vadd.f32 %v2373_v8, %v2340_v31  ;;  %v2863_v56 = vadd.f32 %v6763_v12, %v2847_v45  ;;  %v2666_v26 = vmul.f32 %v6168_v60, %v6872_v50  ;;  %v3102_v62 = vadd.f32 %v3086_v4, %v3054_v54  ;;  %v6908_v10 = vld [vmem:[#allocation2 + $0x110] sm:$0xff] }
 0x2f2   : > { %4029 = vmatmul.msk.f32.gmra.mxu3 %vm571_vm0, %v3245_v52  ;;  %v2633_v9 = vadd.f32 %v2617_v44, %v2584_v29  ;;  %v3134_v0 = vmul.f32 %v6874_v57, %v6159_v40  ;;  %v2471_v15 = vmul.f32 %v6800_v21, %v6147_v2  ;;  %v2943_v43 = vmul.f32 %v6731_v7, %v6130_v20  ;;  %v6920_v45 = vld [vmem:[#allocation2 + $0x111] sm:$0xff] }
 0x2f3   : > { %v2438_v47 = vadd.f32 %v2422_v49, %v2389_v14  ;;  %v2911_v38 = vadd.f32 %v2895_v35, %v2863_v56  ;;  %v3182_v36 = vmul.f32 %v6882_v33, %v6161_v17  ;;  %v2276_v59 = vmul.f32 %v6733_v41, %v6108_v11  ;;  %v6924_v54 = vld [vmem:[#allocation2 + $0x20f] sm:$0xff] }
 0x2f4   : > { %v2682_v61 = vadd.f32 %v2666_v26, %v2633_v9  ;;  %v3150_v58 = vadd.f32 %v3134_v0, %v3102_v62  ;;  %v2520_v3 = vmul.f32 %v6820_v25, %v6149_v6  ;;  %v2991_v7 = vmul.f32 %v6822_v32, %v6132_v22  ;;  %v6932_v26 = vld [vmem:[#allocation2 + $0x210] sm:$0xff] }
 0x2f5   : > { %v2487_v42 = vadd.f32 %v2471_v15, %v2438_v47  ;;  %v2959_v28 = vadd.f32 %v2943_v43, %v2911_v38  ;;  %v3230_v5 = vmul.f32 %v6894_v16, %v6168_v60  ;;  %v2292_v44 = vadd.f32 %v6763_v12, %v2276_v59 }
 0x2f6   : > { %4014 = vmatmul.msk.f32.gmra.mxu2 %vm571_vm0, %v2682_v61  ;;  %v3198_v1 = vadd.f32 %v3182_v36, %v3150_v58  ;;  %v2325_v41 = vmul.f32 %v6742_v13, %v6125_v34  ;;  %v2569_v8 = vmul.f32 %v6159_v40, %v6902_v51  ;;  %v3039_v29 = vmul.f32 %v6832_v63, %v6147_v2  ;;  %v6943_v61 = vld [vmem:[#allocation2 + $0x211] sm:$0xff] }
 0x2f7   : > { %v2536_v31 = vadd.f32 %v2520_v3, %v2487_v42  ;;  %v3007_v52 = vadd.f32 %v2991_v7, %v2959_v28  ;;  %v2618_v14 = vmul.f32 %v6161_v17, %v6908_v10  ;;  %v2374_v13 = vmul.f32 %v6744_v53, %v6130_v20  ;;  %v2553_v7 = vld [vmem:[#allocation2 + $0x127] sm:$0xff] }
 0x2f8   : > { %v3246_v4 = vadd.f32 %v3230_v5, %v3198_v1  ;;  %v2341_v49 = vadd.f32 %v2325_v41, %v2292_v44  ;;  %v3087_v9 = vmul.f32 %v6844_v48, %v6149_v6  ;;  %v2848_v62 = vmul.f32 %v6758_v24, %v6108_v11 }
 0x2f9   : > { %v2585_v56 = vadd.f32 %v2569_v8, %v2536_v31  ;;  %v3055_v35 = vadd.f32 %v3039_v29, %v3007_v52  ;;  %v2667_v0 = vmul.f32 %v6168_v60, %v6920_v45  ;;  %v3135_v47 = vmul.f32 %v6924_v54, %v6159_v40  ;;  %v2602_v31 = vld [vmem:[#allocation2 + $0x128] sm:$0xff] }
 0x2fa   : > { %4030 = vmatmul.msk.f32.gmra.mxu3 %vm571_vm0, %v3246_v4  ;;  %v2390_v15 = vadd.f32 %v2374_v13, %v2341_v49  ;;  %v2423_v53 = vmul.f32 %v6846_v27, %v6132_v22  ;;  %v2864_v58 = vadd.f32 %v6763_v12, %v2848_v62  ;;  %v2896_v24 = vmul.f32 %v6772_v30, %v6125_v34  ;;  %v2651_v13 = vld [vmem:[#allocation2 + $0x129] sm:$0xff] }
 0x2fb   : > { %v2634_v38 = vadd.f32 %v2618_v14, %v2585_v56  ;;  %v3103_v43 = vadd.f32 %v3087_v9, %v3055_v35  ;;  %v3183_v36 = vmul.f32 %v6932_v26, %v6161_v17  ;;  %v2472_v42 = vmul.f32 %v6856_v46, %v6147_v2 }
 0x2fc   : > { %v2439_v59 = vadd.f32 %v2423_v53, %v2390_v15  ;;  %v2944_v3 = vmul.f32 %v6782_v19, %v6130_v20  ;;  %v2912_v1 = vadd.f32 %v2896_v24, %v2864_v58  ;;  %v2277_v5 = vmul.f32 %v6790_v23, %v6108_v11  ;;  %v3216_v58 = vld [vmem:[#allocation2 + $0x229] sm:$0xff] }
 0x2fd   : > { %v2683_v27 = vadd.f32 %v2667_v0, %v2634_v38  ;;  %v3151_v28 = vadd.f32 %v3135_v47, %v3103_v43  ;;  %v3231_v30 = vmul.f32 %v6943_v61, %v6168_v60  ;;  %v2521_v41 = vmul.f32 %v6872_v50, %v6149_v6  ;;  %v3120_v50 = vld [vmem:[#allocation2 + $0x227] sm:$0xff] }
 0x2fe   : > { %v2488_v44 = vadd.f32 %v2472_v42, %v2439_v59  ;;  %v2992_v46 = vmul.f32 %v6874_v57, %v6132_v22  ;;  %v2960_v8 = vadd.f32 %v2944_v3, %v2912_v1  ;;  %v2293_v52 = vadd.f32 %v6763_v12, %v2277_v5  ;;  %v3168_v0 = vld [vmem:[#allocation2 + $0x228] sm:$0xff] }
 0x2ff   : > { %4015 = vmatmul.msk.f32.gmra.mxu2 %vm571_vm0, %v2683_v27  ;;  %v3199_v19 = vadd.f32 %v3183_v36, %v3151_v28  ;;  %v2326_v23 = vmul.f32 %v6800_v21, %v6125_v34  ;;  %v2570_v4 = vmul.f32 %v6159_v40, %v2553_v7  ;;  %v3040_v14 = vmul.f32 %v6882_v33, %v6147_v2  ;;  %v2554_v3 = vld [vmem:[#allocation2 + $0x12f] sm:$0xff] }
 0x300   : > { %v2537_v29 = vadd.f32 %v2521_v41, %v2488_v44  ;;  %v3008_v57 = vadd.f32 %v2992_v46, %v2960_v8  ;;  %v2375_v35 = vmul.f32 %v6820_v25, %v6130_v20  ;;  %v2619_v62 = vmul.f32 %v6161_v17, %v2602_v31  ;;  %v3121_v41 = vld [vmem:[#allocation2 + $0x22f] sm:$0xff] }
 0x301   : > { %v3247_v49 = vadd.f32 %v3231_v30, %v3199_v19  ;;  %v2342_v56 = vadd.f32 %v2326_v23, %v2293_v52  ;;  %v3088_v21 = vmul.f32 %v6894_v16, %v6149_v6  ;;  %v2849_v47 = vmul.f32 %v6822_v32, %v6108_v11  ;;  %v3169_v8 = vld [vmem:[#allocation2 + $0x230] sm:$0xff] }
 0x302   : > { %v2586_v9 = vadd.f32 %v2570_v4, %v2537_v29  ;;  %v3056_v33 = vadd.f32 %v3040_v14, %v3008_v57  ;;  %v3136_v15 = vmul.f32 %v3120_v50, %v6159_v40  ;;  %v2424_v38 = vmul.f32 %v6902_v51, %v6132_v22 }
 0x303   : > { %4031 = vmatmul.msk.f32.gmra.mxu3 %vm571_vm0, %v3247_v49  ;;  %v2391_v53 = vadd.f32 %v2375_v35, %v2342_v56  ;;  %v2668_v43 = vmul.f32 %v6168_v60, %v2651_v13  ;;  %v2865_v24 = vadd.f32 %v6763_v12, %v2849_v47  ;;  %v2897_v16 = vmul.f32 %v6832_v63, %v6125_v34  ;;  %v2603_v63 = vld [vmem:[#allocation2 + $0x130] sm:$0xff] }
 0x304   : > { %v2635_v25 = vadd.f32 %v2619_v62, %v2586_v9  ;;  %v3104_v36 = vadd.f32 %v3088_v21, %v3056_v33  ;;  %v3184_v11 = vmul.f32 %v3168_v0, %v6161_v17  ;;  %v2473_v59 = vmul.f32 %v6908_v10, %v6147_v2 }
 0x305   : > { %v2440_v32 = vadd.f32 %v2424_v38, %v2391_v53  ;;  %v2913_v27 = vadd.f32 %v2897_v16, %v2865_v24  ;;  %v2945_v51 = vmul.f32 %v6844_v48, %v6130_v20  ;;  %v3232_v7 = vmul.f32 %v3216_v58, %v6168_v60  ;;  %v2652_v20 = vld [vmem:[#allocation2 + $0x131] sm:$0xff] }
 0x306   : > { %v2684_v42 = vadd.f32 %v2668_v43, %v2635_v25  ;;  %v3152_v28 = vadd.f32 %v3136_v15, %v3104_v36  ;;  %v2522_v34 = vmul.f32 %v6920_v45, %v6149_v6  ;;  %v2993_v10 = vmul.f32 %v6924_v54, %v6132_v22  ;;  %v7005_v54 = vld [vmem:[%s7553_s10] ss:$0 sm:$0xff] }
 0x307   : > { %v2489_v12 = vadd.f32 %v2473_v59, %v2440_v32  ;;  %v2961_v1 = vadd.f32 %v2945_v51, %v2913_v27  ;;  %v2571_v44 = vmul.f32 %v6159_v40, %v2554_v3  ;;  %v3041_v46 = vmul.f32 %v6932_v26, %v6147_v2  ;;  %v3217_v26 = vld [vmem:[#allocation2 + $0x231] sm:$0xff] }
 0x308   : > { %4016 = vmatmul.msk.f32.gmra.mxu2 %vm571_vm0, %v2684_v42  ;;  %v3200_v5 = vadd.f32 %v3184_v11, %v3152_v28  ;;  %v2620_v45 = vmul.f32 %v6161_v17, %v2603_v63  ;;  %v3089_v23 = vmul.f32 %v6943_v61, %v6149_v6  ;;  %v3137_v22 = vmul.f32 %v3121_v41, %v6159_v40 }
 0x309   : > { %v2538_v30 = vadd.f32 %v2522_v34, %v2489_v12  ;;  %v3009_v48 = vadd.f32 %v2993_v10, %v2961_v1  ;;  %v2669_v2 = vmul.f32 %v6168_v60, %v2652_v20  ;;  %v3185_v14 = vmul.f32 %v3169_v8, %v6161_v17 }
 0x30a   : > { %v3248_v19 = vadd.f32 %v3232_v7, %v3200_v5  ;;  %v3233_v6 = vmul.f32 %v3217_v26, %v6168_v60 }
 0x30b   : > { %v2587_v31 = vadd.f32 %v2571_v44, %v2538_v30  ;;  %v3057_v52 = vadd.f32 %v3041_v46, %v3009_v48 }
 0x30c   : > { %4032 = vmatmul.msk.f32.gmra.mxu3 %vm571_vm0, %v3248_v19 }
 0x30d   : > { %v2636_v29 = vadd.f32 %v2620_v45, %v2587_v31  ;;  %v3105_v4 = vadd.f32 %v3089_v23, %v3057_v52 }
 0x30e   : > { %v2754_v49 = vpop.f32.mrf.mxu2 }
 0x30f   : > { %v2685_v50 = vadd.f32 %v2669_v2, %v2636_v29  ;;  %v3153_v13 = vadd.f32 %v3137_v22, %v3105_v4  ;;  %v2755_v40 = vadd.f32 %v7005_v54, %v2754_v49 }
 0x311   : > { %4017 = vmatmul.msk.f32.gmra.mxu2 %vm571_vm0, %v2685_v50  ;;  %v3201_v61 = vadd.f32 %v3185_v14, %v3153_v13  ;;  %2802 = vst.msk [vmem:[#allocation3] sm:$0xff] %vm571_vm0, %v2755_v40 }
 0x313   : > { %v3249_v57 = vadd.f32 %v3233_v6, %v3201_v61 }
 0x315   : > { %4033 = vmatmul.msk.f32.gmra.mxu3 %vm571_vm0, %v3249_v57 }
 0x316   : > { %v2757_v56 = vpop.f32.mrf.mxu2 }
 0x317   : > { %v2758_v35 = vadd.f32 %v7005_v54, %v2757_v56 }
 0x318   : > { %v7066_v14 = vld [vmem:[#allocation3] sm:$0xff] }
 0x319   : > { %2803 = vst.msk [vmem:[#allocation3 + $0x8] sm:$0xff] %vm571_vm0, %v2758_v35  ;;  %v3411_v40 = vsel %vm571_vm0, %v7066_v14, 0.0 }
 0x31c   : > { %v3315_v17 = vpop.f32.mrf.mxu3 }
 0x31d   : > { %v3316_v9 = vadd.f32 %v7005_v54, %v3315_v17 }
 0x31e   : > { %v2760_v62 = vpop.f32.mrf.mxu2 }
 0x31f   : > { %3363 = vst.msk [vmem:[#allocation3 + $0x80] sm:$0xff] %vm571_vm0, %v3316_v9  ;;  %v2761_v60 = vadd.f32 %v7005_v54, %v2760_v62 }
 0x320   : > { %v7063_v26 = vld [vmem:[#allocation3 + $0x8] sm:$0xff] }
 0x321   : > { %2804 = vst.msk [vmem:[#allocation3 + $0x10] sm:$0xff] %vm571_vm0, %v2761_v60  ;;  %v3412_v49 = vsel %vm571_vm0, %v7063_v26, 0.0 }
 0x322   : > { %v3413_v56 = vadd.f32 %v3412_v49, %v3411_v40 }
 0x324   : > { %v3318_v21 = vpop.f32.mrf.mxu3 }
 0x325   : > { %v3319_v0 = vadd.f32 %v7005_v54, %v3318_v21 }
 0x326   : > { %v2763_v47 = vpop.f32.mrf.mxu2 }
 0x327   : > { %3364 = vst.msk [vmem:[#allocation3 + $0x88] sm:$0xff] %vm571_vm0, %v3319_v0  ;;  %v2764_v33 = vadd.f32 %v7005_v54, %v2763_v47 }
 0x328   : > { %v7068_v50 = vld [vmem:[#allocation3 + $0x10] sm:$0xff] }
 0x329   : > { %2805 = vst.msk [vmem:[#allocation3 + $0x18] sm:$0xff] %vm571_vm0, %v2764_v33  ;;  %v3414_v61 = vsel %vm571_vm0, %v7068_v50, 0.0 }
 0x32a   : > { %v3415_v9 = vadd.f32 %v3414_v61, %v3413_v56 }
 0x32c   : > { %v3321_v15 = vpop.f32.mrf.mxu3 }
 0x32d   : > { %v3322_v53 = vadd.f32 %v7005_v54, %v3321_v15 }
 0x32f   : > { %3365 = vst.msk [vmem:[#allocation3 + $0x90] sm:$0xff] %vm571_vm0, %v3322_v53 }
 0x330   : > { %v7073_v13 = vld [vmem:[#allocation3 + $0x18] sm:$0xff] }
 0x331   : > { %v2766_v38 = vpop.f32.mrf.mxu2  ;;  %v3416_v17 = vsel %vm571_vm0, %v7073_v13, 0.0 }
 0x332   : > { %v2767_v25 = vadd.f32 %v7005_v54, %v2766_v38  ;;  %v3417_v47 = vadd.f32 %v3416_v17, %v3415_v9 }
 0x334   : > { %2806 = vst.msk [vmem:[#allocation3 + $0x20] sm:$0xff] %vm571_vm0, %v2767_v25  ;;  %v3324_v43 = vpop.f32.mrf.mxu3 }
 0x335   : > { %v3325_v58 = vadd.f32 %v7005_v54, %v3324_v43 }
 0x337   : > { %3366 = vst.msk [vmem:[#allocation3 + $0x98] sm:$0xff] %vm571_vm0, %v3325_v58 }
 0x33a   : > { %v2769_v24 = vpop.f32.mrf.mxu2 }
 0x33b   : > { %v2770_v16 = vadd.f32 %v7005_v54, %v2769_v24  ;;  %v7080_v35 = vld [vmem:[#allocation3 + $0x20] sm:$0xff] }
 0x33c   : > { %v3327_v36 = vpop.f32.mrf.mxu3  ;;  %v3418_v21 = vsel %vm571_vm0, %v7080_v35, 0.0 }
 0x33d   : > { %2807 = vst.msk [vmem:[#allocation3 + $0x28] sm:$0xff] %vm571_vm0, %v2770_v16  ;;  %v3328_v11 = vadd.f32 %v7005_v54, %v3327_v36  ;;  %v3419_v53 = vadd.f32 %v3418_v21, %v3417_v47  ;;  %v7156_v47 = vld [vmem:[#allocation3 + $0x80] sm:$0xff] }
 0x33f   : > { %3367 = vst.msk [vmem:[#allocation3 + $0xa0] sm:$0xff] %vm571_vm0, %v3328_v11 }
 0x343   : > { %v2772_v32 = vpop.f32.mrf.mxu2 }
 0x344   : > { %v2773_v59 = vadd.f32 %v7005_v54, %v2772_v32  ;;  %v3330_v42 = vpop.f32.mrf.mxu3  ;;  %v7085_v62 = vld [vmem:[#allocation3 + $0x28] sm:$0xff] }
 0x345   : > { %v3331_v3 = vadd.f32 %v7005_v54, %v3330_v42  ;;  %v3420_v15 = vsel %vm571_vm0, %v7085_v62, 0.0  ;;  %v3485_v40 = vmul.f32 %v7085_v62, %v7085_v62 }
 0x346   : > { %2808 = vst.msk [vmem:[#allocation3 + $0x30] sm:$0xff] %vm571_vm0, %v2773_v59  ;;  %v3421_v58 = vadd.f32 %v3420_v15, %v3419_v53 }
 0x347   : > { %3368 = vst.msk [vmem:[#allocation3 + $0xa8] sm:$0xff] %vm571_vm0, %v3331_v3  ;;  %v3521_v15 = vsel %vm571_vm0, %v3485_v40, 0.0 }
 0x34c   : > { %v2775_v27 = vpop.f32.mrf.mxu2  ;;  %v3333_v51 = vpop.f32.mrf.mxu3 }
 0x34d   : > { %v2776_v28 = vadd.f32 %v7005_v54, %v2775_v27  ;;  %v3334_v7 = vadd.f32 %v7005_v54, %v3333_v51  ;;  %v7090_v33 = vld [vmem:[#allocation3 + $0x30] sm:$0xff] }
 0x34e   : > { %v3422_v25 = vsel %vm571_vm0, %v7090_v33, 0.0 }
 0x34f   : > { %2809 = vst.msk [vmem:[#allocation3 + $0x38] sm:$0xff] %vm571_vm0, %v2776_v28  ;;  %v3423_v11 = vadd.f32 %v3422_v25, %v3421_v58 }
 0x350   : > { %3369 = vst.msk [vmem:[#allocation3 + $0xb0] sm:$0xff] %vm571_vm0, %v3334_v7  ;;  %v3481_v7 = vmul.f32 %v7063_v26, %v7063_v26 }
 0x354   : > { %v3336_v12 = vpop.f32.mrf.mxu3 }
 0x355   : > { %v2778_v34 = vpop.f32.mrf.mxu2  ;;  %v3337_v63 = vadd.f32 %v7005_v54, %v3336_v12 }
 0x356   : > { %v2779_v1 = vadd.f32 %v7005_v54, %v2778_v34  ;;  %v7095_v38 = vld [vmem:[#allocation3 + $0x38] sm:$0xff] }
 0x357   : > { %3370 = vst.msk [vmem:[#allocation3 + $0xb8] sm:$0xff] %vm571_vm0, %v3337_v63  ;;  %v3424_v36 = vsel %vm571_vm0, %v7095_v38, 0.0 }
 0x358   : > { %2810 = vst.msk [vmem:[#allocation3 + $0x40] sm:$0xff] %vm571_vm0, %v2779_v1  ;;  %v3425_v42 = vadd.f32 %v3424_v36, %v3423_v11  ;;  %v3480_v1 = vmul.f32 %v7066_v14, %v7066_v14  ;;  %v7168_v11 = vld [vmem:[#allocation3 + $0x88] sm:$0xff] }
 0x35c   : > { %v3339_v10 = vpop.f32.mrf.mxu3 }
 0x35d   : > { %v3340_v5 = vadd.f32 %v7005_v54, %v3339_v10  ;;  %v3482_v10 = vmul.f32 %v7068_v50, %v7068_v50 }
 0x35e   : > { %v2781_v30 = vpop.f32.mrf.mxu2 }
 0x35f   : > { %v2782_v44 = vadd.f32 %v7005_v54, %v2781_v30  ;;  %3371 = vst.msk [vmem:[#allocation3 + $0xc0] sm:$0xff] %vm571_vm0, %v3340_v5  ;;  %v7099_v24 = vld [vmem:[#allocation3 + $0x40] sm:$0xff] }
 0x360   : > { %v3426_v59 = vsel %vm571_vm0, %v7099_v24, 0.0  ;;  %v3488_v36 = vmul.f32 %v7099_v24, %v7099_v24 }
 0x361   : > { %2811 = vst.msk [vmem:[#allocation3 + $0x48] sm:$0xff] %vm571_vm0, %v2782_v44  ;;  %v3427_v12 = vadd.f32 %v3426_v59, %v3425_v42 }
 0x364   : > { %v3342_v41 = vpop.f32.mrf.mxu3 }
 0x365   : > { %v3343_v20 = vadd.f32 %v7005_v54, %v3342_v41 }
 0x367   : > { %v2784_v48 = vpop.f32.mrf.mxu2  ;;  %3372 = vst.msk [vmem:[#allocation3 + $0xc8] sm:$0xff] %vm571_vm0, %v3343_v20 }
 0x368   : > { %v2785_v46 = vadd.f32 %v7005_v54, %v2784_v48  ;;  %v7104_v32 = vld [vmem:[#allocation3 + $0x48] sm:$0xff]  ;;  %v3513_v48 = vsel %vm571_vm0, %v3481_v7, 0.0  ;;  %v7175_v7 = vld [vmem:[#allocation3 + $0x90] sm:$0xff] }
 0x369   : > { %v3428_v51 = vsel %vm571_vm0, %v7104_v32, 0.0 }
 0x36a   : > { %2812 = vst.msk [vmem:[#allocation3 + $0x50] sm:$0xff] %vm571_vm0, %v2785_v46  ;;  %v3429_v5 = vadd.f32 %v3428_v51, %v3427_v12  ;;  %v3483_v46 = vmul.f32 %v7073_v13, %v7073_v13 }
 0x36c   : > { %v3345_v19 = vpop.f32.mrf.mxu3 }
 0x36d   : > { %v3346_v31 = vadd.f32 %v7005_v54, %v3345_v19 }
 0x36f   : > { %3373 = vst.msk [vmem:[#allocation3 + $0xd0] sm:$0xff] %vm571_vm0, %v3346_v31 }
 0x370   : > { %v2787_v45 = vpop.f32.mrf.mxu2 }
 0x371   : > { %v2788_v8 = vadd.f32 %v7005_v54, %v2787_v45  ;;  %v7109_v3 = vld [vmem:[#allocation3 + $0x50] sm:$0xff] }
 0x372   : > { %v3430_v63 = vsel %vm571_vm0, %v7109_v3, 0.0 }
 0x373   : > { %2813 = vst.msk [vmem:[#allocation3 + $0x58] sm:$0xff] %vm571_vm0, %v2788_v8  ;;  %v3431_v19 = vadd.f32 %v3430_v63, %v3429_v5  ;;  %v3512_v8 = vsel %vm571_vm0, %v3480_v1, 0.0  ;;  %v3444_v1 = vsel %vm571_vm0, %v7168_v11, 0.0  ;;  %v3490_v5 = vmul.f32 %v7109_v3, %v7109_v3 }
 0x375   : > { %v3348_v52 = vpop.f32.mrf.mxu3 }
 0x376   : > { %v3349_v23 = vadd.f32 %v7005_v54, %v3348_v52  ;;  %v3515_v52 = vsel %vm571_vm0, %v3482_v10, 0.0  ;;  %v3527_v10 = vsel %vm571_vm0, %v3488_v36, 0.0  ;;  %v7217_v36 = vld [vmem:[#allocation3 + $0xc0] sm:$0xff] }
 0x378   : > { %3374 = vst.msk [vmem:[#allocation3 + $0xd8] sm:$0xff] %vm571_vm0, %v3349_v23  ;;  %v3484_v23 = vmul.f32 %v7080_v35, %v7080_v35 }
 0x379   : > { %v2790_v22 = vpop.f32.mrf.mxu2 }
 0x37a   : > { %v2791_v29 = vadd.f32 %v7005_v54, %v2790_v22  ;;  %v7116_v34 = vld [vmem:[#allocation3 + $0x58] sm:$0xff]  ;;  %v3519_v9 = vsel %vm571_vm0, %v3484_v23, 0.0 }
 0x37b   : > { %v3432_v41 = vsel %vm571_vm0, %v7116_v34, 0.0 }
 0x37c   : > { %2814 = vst.msk [vmem:[#allocation3 + $0x60] sm:$0xff] %vm571_vm0, %v2791_v29  ;;  %v3433_v22 = vadd.f32 %v3432_v41, %v3431_v19  ;;  %v3491_v19 = vmul.f32 %v7116_v34, %v7116_v34 }
 0x37d   : > { %v3351_v2 = vpop.f32.mrf.mxu3 }
 0x37e   : > { %v3352_v4 = vadd.f32 %v7005_v54, %v3351_v2  ;;  %v3514_v2 = vadd.f32 %v3513_v48, %v3512_v8  ;;  %v3446_v48 = vsel %vm571_vm0, %v7175_v7, 0.0 }
 0x380   : > { %3375 = vst.msk [vmem:[#allocation3 + $0xe0] sm:$0xff] %vm571_vm0, %v3352_v4  ;;  %v3516_v56 = vadd.f32 %v3515_v52, %v3514_v2 }
 0x382   : > { %v2793_v6 = vpop.f32.mrf.mxu2 }
 0x383   : > { %v2794_v57 = vadd.f32 %v7005_v54, %v2793_v6  ;;  %v7125_v30 = vld [vmem:[#allocation3 + $0x60] sm:$0xff]  ;;  %v3517_v6 = vsel %vm571_vm0, %v3483_v46, 0.0 }
 0x384   : > { %v3434_v45 = vsel %vm571_vm0, %v7125_v30, 0.0  ;;  %v3492_v2 = vmul.f32 %v7125_v30, %v7125_v30 }
 0x385   : > { %2815 = vst.msk [vmem:[#allocation3 + $0x68] sm:$0xff] %vm571_vm0, %v2794_v57  ;;  %v3435_v61 = vadd.f32 %v3434_v45, %v3433_v22  ;;  %v7189_v45 = vld [vmem:[#allocation3 + $0xa0] sm:$0xff]  ;;  %v3531_v22 = vsel %vm571_vm0, %v3490_v5, 0.0 }
 0x386   : > { %v3354_v60 = vpop.f32.mrf.mxu3  ;;  %v3450_v40 = vsel %vm571_vm0, %v7189_v45, 0.0 }
 0x387   : > { %v3355_v0 = vadd.f32 %v7005_v54, %v3354_v60  ;;  %v3486_v60 = vmul.f32 %v7090_v33, %v7090_v33 }
 0x389   : > { %3376 = vst.msk [vmem:[#allocation3 + $0xe8] sm:$0xff] %vm571_vm0, %v3355_v0  ;;  %v3518_v0 = vadd.f32 %v3517_v6, %v3516_v56  ;;  %v7203_v56 = vld [vmem:[#allocation3 + $0xb0] sm:$0xff] }
 0x38b   : > { %v2796_v43 = vpop.f32.mrf.mxu2 }
 0x38c   : > { %v2797_v16 = vadd.f32 %v7005_v54, %v2796_v43  ;;  %v7133_v31 = vld [vmem:[#allocation3 + $0x68] sm:$0xff]  ;;  %v3520_v43 = vadd.f32 %v3519_v9, %v3518_v0  ;;  %v7208_v0 = vld [vmem:[#allocation3 + $0xb8] sm:$0xff] }
 0x38d   : > { %v3436_v4 = vsel %vm571_vm0, %v7133_v31, 0.0 }
 0x38e   : > { %2816 = vst.msk [vmem:[#allocation3 + $0x70] sm:$0xff] %vm571_vm0, %v2797_v16  ;;  %v3437_v21 = vadd.f32 %v3436_v4, %v3435_v61  ;;  %v3523_v16 = vsel %vm571_vm0, %v3486_v60, 0.0  ;;  %v3522_v42 = vadd.f32 %v3521_v15, %v3520_v43  ;;  %v7196_v4 = vld [vmem:[#allocation3 + $0xa8] sm:$0xff]  ;;  %v3533_v61 = vsel %vm571_vm0, %v3491_v19, 0.0  ;;  %v7233_v19 = vld [vmem:[#allocation3 + $0xd8] sm:$0xff] }
 0x38f   : > { %v3357_v27 = vpop.f32.mrf.mxu3  ;;  %v3452_v60 = vsel %vm571_vm0, %v7196_v4, 0.0  ;;  %v3454_v43 = vsel %vm571_vm0, %v7203_v56, 0.0 }
 0x390   : > { %v3358_v28 = vadd.f32 %v7005_v54, %v3357_v27  ;;  %v3442_v27 = vsel %vm571_vm0, %v7156_v47, 0.0  ;;  %v3524_v63 = vadd.f32 %v3523_v16, %v3522_v42 }
 0x392   : > { %3377 = vst.msk [vmem:[#allocation3 + $0xf0] sm:$0xff] %vm571_vm0, %v3358_v28  ;;  %v3489_v28 = vmul.f32 %v7104_v32, %v7104_v32 }
 0x394   : > { %v2799_v44 = vpop.f32.mrf.mxu2  ;;  %v3529_v46 = vsel %vm571_vm0, %v3489_v28, 0.0 }
 0x395   : > { %v2800_v20 = vadd.f32 %v7005_v54, %v2799_v44  ;;  %v7142_v29 = vld [vmem:[#allocation3 + $0x70] sm:$0xff]  ;;  %v7182_v44 = vld [vmem:[#allocation3 + $0x98] sm:$0xff] }
 0x396   : > { %v3438_v17 = vsel %vm571_vm0, %v7142_v29, 0.0  ;;  %v3448_v23 = vsel %vm571_vm0, %v7182_v44, 0.0 }
 0x397   : > { %2817 = vst.msk [vmem:[#allocation3 + $0x78] sm:$0xff] %vm571_vm0, %v2800_v20  ;;  %v3439_v25 = vadd.f32 %v3438_v17, %v3437_v21  ;;  %v3535_v21 = vsel %vm571_vm0, %v3492_v2, 0.0  ;;  %v7239_v2 = vld [vmem:[#allocation3 + $0xe0] sm:$0xff] }
 0x398   : > { %v3360_v49 = vpop.f32.mrf.mxu3 }
 0x399   : > { %v3361_v57 = vadd.f32 %v7005_v54, %v3360_v49  ;;  %v3487_v54 = vmul.f32 %v7095_v38, %v7095_v38 }
 0x39b   : > { %3378 = vst.msk [vmem:[#allocation3 + $0xf8] sm:$0xff] %vm571_vm0, %v3361_v57  ;;  %v3525_v51 = vsel %vm571_vm0, %v3487_v54, 0.0  ;;  %v3493_v57 = vmul.f32 %v7133_v31, %v7133_v31 }
 0x39c   : > { %v3526_v20 = vadd.f32 %v3525_v51, %v3524_v63  ;;  %v7221_v51 = vld [vmem:[#allocation3 + $0xc8] sm:$0xff] }
 0x39e   : > { %v7161_v53 = vld [vmem:[#allocation3 + $0x78] sm:$0xff]  ;;  %v3528_v52 = vadd.f32 %v3527_v10, %v3526_v20  ;;  %v7226_v10 = vld [vmem:[#allocation3 + $0xd0] sm:$0xff] }
 0x39f   : > { %v3440_v58 = vsel %vm571_vm0, %v7161_v53, 0.0  ;;  %v3495_v16 = vmul.f32 %v7161_v53, %v7161_v53 }
 0x3a0   : > { %v3441_v59 = vadd.f32 %v3440_v58, %v3439_v25  ;;  %v3530_v6 = vadd.f32 %v3529_v46, %v3528_v52  ;;  %v3494_v25 = vmul.f32 %v7142_v29, %v7142_v29  ;;  %v3537_v58 = vsel %vm571_vm0, %v3493_v57, 0.0 }
 0x3a1   : > { %v3541_v20 = vsel %vm571_vm0, %v3495_v16, 0.0  ;;  %v3497_v52 = vmul.f32 %v7168_v11, %v7168_v11 }
 0x3a2   : > { %v3443_v12 = vadd.f32 %v3442_v27, %v3441_v59  ;;  %v3532_v9 = vadd.f32 %v3531_v22, %v3530_v6  ;;  %v3456_v27 = vsel %vm571_vm0, %v7208_v0, 0.0  ;;  %v3498_v6 = vmul.f32 %v7175_v7, %v7175_v7 }
 0x3a4   : > { %v3445_v41 = vadd.f32 %v3444_v1, %v3443_v12  ;;  %v3534_v54 = vadd.f32 %v3533_v61, %v3532_v9  ;;  %v3458_v12 = vsel %vm571_vm0, %v7217_v36, 0.0  ;;  %v3539_v1 = vsel %vm571_vm0, %v3494_v25, 0.0  ;;  %v7253_v25 = vld [vmem:[#allocation3 + $0xf0] sm:$0xff] }
 0x3a5   : > { %v3464_v61 = vsel %vm571_vm0, %v7233_v19, 0.0  ;;  %v3547_v16 = vsel %vm571_vm0, %v3498_v6, 0.0 }
 0x3a6   : > { %v3447_v8 = vadd.f32 %v3446_v48, %v3445_v41  ;;  %v3536_v42 = vadd.f32 %v3535_v21, %v3534_v54  ;;  %v3496_v41 = vmul.f32 %v7156_v47, %v7156_v47  ;;  %v3460_v48 = vsel %vm571_vm0, %v7221_v51, 0.0 }
 0x3a7   : > { %v3545_v21 = vsel %vm571_vm0, %v3497_v52, 0.0 }
 0x3a8   : > { %v3449_v49 = vadd.f32 %v3448_v23, %v3447_v8  ;;  %v3538_v63 = vadd.f32 %v3537_v58, %v3536_v42  ;;  %v3462_v23 = vsel %vm571_vm0, %v7226_v10, 0.0  ;;  %v3500_v58 = vmul.f32 %v7189_v45, %v7189_v45 }
 0x3aa   : > { %v3451_v17 = vadd.f32 %v3450_v40, %v3449_v49  ;;  %v3540_v46 = vadd.f32 %v3539_v1, %v3538_v63  ;;  %v3543_v40 = vsel %vm571_vm0, %v3496_v41, 0.0  ;;  %v3470_v1 = vsel %vm571_vm0, %v7253_v25, 0.0 }
 0x3ac   : > { %v3453_v15 = vadd.f32 %v3452_v60, %v3451_v17  ;;  %v3542_v22 = vadd.f32 %v3541_v20, %v3540_v46  ;;  %v7246_v17 = vld [vmem:[#allocation3 + $0xe8] sm:$0xff]  ;;  %v3499_v60 = vmul.f32 %v7182_v44, %v7182_v44  ;;  %v3502_v20 = vmul.f32 %v7203_v56, %v7203_v56 }
 0x3ae   : > { %v3455_v59 = vadd.f32 %v3454_v43, %v3453_v15  ;;  %v3544_v57 = vadd.f32 %v3543_v40, %v3542_v22  ;;  %v3466_v15 = vsel %vm571_vm0, %v7239_v2, 0.0  ;;  %v3549_v63 = vsel %vm571_vm0, %v3499_v60, 0.0 }
 0x3af   : > { %v3504_v40 = vmul.f32 %v7217_v36, %v7217_v36  ;;  %v3505_v60 = vmul.f32 %v7221_v51, %v7221_v51 }
 0x3b0   : > { %v3457_v28 = vadd.f32 %v3456_v27, %v3455_v59  ;;  %v3546_v54 = vadd.f32 %v3545_v21, %v3544_v57  ;;  %v3468_v59 = vsel %vm571_vm0, %v7246_v17, 0.0  ;;  %v7260_v27 = vld [vmem:[#allocation3 + $0xf8] sm:$0xff] }
 0x3b1   : > { %v3472_v46 = vsel %vm571_vm0, %v7260_v27, 0.0 }
 0x3b2   : > { %v3459_v5 = vadd.f32 %v3458_v12, %v3457_v28  ;;  %v3548_v42 = vadd.f32 %v3547_v16, %v3546_v54  ;;  %v3501_v12 = vmul.f32 %v7196_v4, %v7196_v4 }
 0x3b4   : > { %v3461_v8 = vadd.f32 %v3460_v48, %v3459_v5  ;;  %v3550_v5 = vadd.f32 %v3549_v63, %v3548_v42  ;;  %v3551_v48 = vsel %vm571_vm0, %v3500_v58, 0.0  ;;  %v3553_v22 = vsel %vm571_vm0, %v3501_v12, 0.0 }
 0x3b5   : > { %v3559_v58 = vsel %vm571_vm0, %v3504_v40, 0.0  ;;  %v3507_v42 = vmul.f32 %v7233_v19, %v7233_v19 }
 0x3b6   : > { %v3463_v49 = vadd.f32 %v3462_v23, %v3461_v8  ;;  %v3552_v8 = vadd.f32 %v3551_v48, %v3550_v5  ;;  %v3503_v23 = vmul.f32 %v7208_v0, %v7208_v0  ;;  %v3509_v48 = vmul.f32 %v7246_v17, %v7246_v17 }
 0x3b8   : > { %v3465_v9 = vadd.f32 %v3464_v61, %v3463_v49  ;;  %v3554_v49 = vadd.f32 %v3553_v22, %v3552_v8  ;;  %v3555_v61 = vsel %vm571_vm0, %v3502_v20, 0.0  ;;  %v3557_v21 = vsel %vm571_vm0, %v3503_v23, 0.0 }
 0x3ba   : > { %v3467_v43 = vadd.f32 %v3466_v15, %v3465_v9  ;;  %v3556_v57 = vadd.f32 %v3555_v61, %v3554_v49  ;;  %v3511_v49 = vmul.f32 %v7260_v27, %v7260_v27 }
 0x3bc   : > { %v3469_v28 = vadd.f32 %v3468_v59, %v3467_v43  ;;  %v3558_v15 = vadd.f32 %v3557_v21, %v3556_v57  ;;  %v3506_v43 = vmul.f32 %v7226_v10, %v7226_v10 }
 0x3be   : > { %v3471_v41 = vadd.f32 %v3470_v1, %v3469_v28  ;;  %v3560_v16 = vadd.f32 %v3559_v58, %v3558_v15  ;;  %v3561_v28 = vsel %vm571_vm0, %v3505_v60, 0.0  ;;  %v3508_v1 = vmul.f32 %v7239_v2, %v7239_v2 }
 0x3bf   : > { %v3563_v5 = vsel %vm571_vm0, %v3506_v43, 0.0 }
 0x3c0   : > { %v3473_v52 = vadd.f32 %v3472_v46, %v3471_v41  ;;  %v3562_v12 = vadd.f32 %v3561_v28, %v3560_v16  ;;  %v3565_v46 = vsel %vm571_vm0, %v3507_v42, 0.0  ;;  %v3567_v23 = vsel %vm571_vm0, %v3508_v1, 0.0 }
 0x3c2   : > { %v3474_v6 = vrot.slane %v3473_v52, 4  ;;  %v3564_v41 = vadd.f32 %v3563_v5, %v3562_v12 }
 0x3c4   : > { %v3475_v9 = vadd.f32 %v3474_v6, %v3473_v52  ;;  %v3566_v8 = vadd.f32 %v3565_v46, %v3564_v41  ;;  %v3510_v52 = vmul.f32 %v7253_v25, %v7253_v25  ;;  %v3569_v6 = vsel %vm571_vm0, %v3509_v48, 0.0 }
 0x3c6   : > { %v3476_v54 = vrot.slane %v3475_v9, 2  ;;  %v3568_v22 = vadd.f32 %v3567_v23, %v3566_v8  ;;  %v3571_v61 = vsel %vm571_vm0, %v3510_v52, 0.0 }
 0x3c8   : > { %v3477_v59 = vadd.f32 %v3476_v54, %v3475_v9  ;;  %v3570_v40 = vadd.f32 %v3569_v6, %v3568_v22  ;;  %v3573_v9 = vsel %vm571_vm0, %v3511_v49, 0.0  ;;  %v3643_v49 = vld [vmem:[%s7652_s26] sm:$0x1] }
 0x3ca   : > { %v3478_v63 = vrot.slane %v3477_v59, 1  ;;  %v3572_v57 = vadd.f32 %v3571_v61, %v3570_v40  ;;  %v3645_v61 = vld [vmem:[%s7653_s23] sm:$0x1] }
 0x3cc   : > { %v3479_v20 = vadd.f32 %v3478_v63, %v3477_v59  ;;  %v3574_v60 = vadd.f32 %v3573_v9, %v3572_v57 }
 0x3ce   : > { %4034 = vmatmul.msk.f32.vlgmr.msrb.gmra.mxu0 %vm571_vm0, %v3479_v20  ;;  %v3575_v21 = vrot.slane %v3574_v60, 4 }
 0x3d0   : > { %v3576_v15 = vadd.f32 %v3575_v21, %v3574_v60 }
 0x3d2   : > { %v3577_v54 = vrot.slane %v3576_v15, 2 }
 0x3d4   : > { %v3578_v43 = vadd.f32 %v3577_v54, %v3576_v15 }
 0x3d6   : > { %v3579_v58 = vrot.slane %v3578_v43, 1 }
 0x3d8   : > { %v3580_v16 = vadd.f32 %v3579_v58, %v3578_v43 }
 0x3da   : > { %4035 = vmatmul.msk.f32.vlgmr.msrb.gmra.mxu1 %vm571_vm0, %v3580_v16 }
 0x44b   : > { %v3601_v59 = vpop.f32.mrf.mxu0 }
 0x44c   : > { %v3627_v42 = vmul.f32 0.001953125, %v3601_v59 }
 0x44e   : > { %v3629_v28 = vmul.f32 %v3627_v42, %v3627_v42 }
 0x457   : > { %v3624_v12 = vpop.f32.mrf.mxu1 }
 0x458   : > { %v3628_v63 = vmul.f32 0.001953125, %v3624_v12 }
 0x45a   : > { %v3630_v1 = vsub.f32 %v3628_v63, %v3629_v28 }
 0x45c   : > { %v3631_v5 = vmax.f32 %v3630_v1, 0.0 }
 0x45e   : > { %v3632_v41 = vadd.f32 1e-05, %v3631_v5  ;;  %v7655_v5 = vld [vmem:[#allocation22_spill] sm:$0xff] }
 0x460   : > { %4153 = vrsqrt.f32 %v3632_v41  ;;  %vm3639_vm5 = vweird.f32 %v3632_v41 }
 0x466   : > { %v4154_v20 = vpop.eup %4153 }
 0x467   : > { %v3634_v48 = vmul.f32 %v4154_v20, %v3632_v41  ;;  %vm3640_vm4 = vweird.f32 %v4154_v20 }
 0x468   : > { %vm3641_vm6 = vmor %vm3639_vm5, %vm3640_vm4 }
 0x469   : > { %v3635_v46 = vmul.f32 %v4154_v20, %v3634_v48  ;;  %v7656_v48 = vld [vmem:[#allocation23_spill] sm:$0xff] }
 0x46b   : > { %v3636_v8 = vmul.f32 0.5, %v3635_v46 }
 0x46d   : > { %v3637_v52 = vsub.f32 1.5, %v3636_v8  ;;  %v7657_v8 = vld [vmem:[#allocation24_spill] sm:$0xff] }
 0x46f   : > { %v3638_v23 = vmul.f32 %v4154_v20, %v3637_v52 }
 0x471   : > { %v3642_v22 = vsel %vm3641_vm6, %v4154_v20, %v3638_v23 }
 0x472   : > { %v3644_v6 = vmul.f32 %v3643_v49, %v3642_v22  ;;  %v7658_v22 = vld [vmem:[#allocation25_spill] sm:$0xff] }
 0x474   : > { %v3646_v40 = vmul.f32 %v3644_v6, %v3627_v42  ;;  %v7309_v9 = vperm.slane %v3644_v6, 0 }
 0x476   : > { %v3647_v57 = vsub.f32 %v3645_v61, %v3646_v40  ;;  %v3649_v21 = vmul.f32 %v7309_v9, %v7066_v14  ;;  %v3650_v15 = vmul.f32 %v7309_v9, %v7063_v26  ;;  %v3651_v54 = vmul.f32 %v7309_v9, %v7068_v50  ;;  %v7659_v61 = vld [vmem:[#allocation26_spill] sm:$0xff] }
 0x477   : > { %v3652_v43 = vmul.f32 %v7309_v9, %v7073_v13  ;;  %v3653_v58 = vmul.f32 %v7309_v9, %v7080_v35  ;;  %v3654_v42 = vmul.f32 %v7309_v9, %v7085_v62  ;;  %v3655_v50 = vmul.f32 %v7309_v9, %v7090_v33  ;;  %v7654_v62 = vld [vmem:[#allocation21_spill] sm:$0xff] }
 0x478   : > { %v7311_v60 = vperm.slane %v3647_v57, 0  ;;  %v3656_v13 = vmul.f32 %v7309_v9, %v7095_v38  ;;  %v3657_v12 = vmul.f32 %v7309_v9, %v7099_v24  ;;  %v3658_v20 = vmul.f32 %v7309_v9, %v7104_v32 }
 0x479   : > { %v3659_v52 = vmul.f32 %v7309_v9, %v7109_v3  ;;  %v3660_v24 = vmul.f32 %v7309_v9, %v7116_v34  ;;  %v3661_v6 = vmul.f32 %v7309_v9, %v7125_v30  ;;  %v3662_v32 = vmul.f32 %v7309_v9, %v7133_v31 }
 0x47a   : > { %v3684_v16 = vadd.f32 %v7311_v60, %v3649_v21  ;;  %v3685_v59 = vadd.f32 %v7311_v60, %v3650_v15  ;;  %v3686_v14 = vadd.f32 %v7311_v60, %v3651_v54  ;;  %v3687_v26 = vadd.f32 %v7311_v60, %v3652_v43  ;;  %v7660_v21 = vld [vmem:[#allocation27_spill] sm:$0xff] }
 0x47b   : > { %v3688_v28 = vadd.f32 %v7311_v60, %v3653_v58  ;;  %v3689_v35 = vadd.f32 %v7311_v60, %v3654_v42  ;;  %v3690_v63 = vadd.f32 %v7311_v60, %v3655_v50  ;;  %v3691_v33 = vadd.f32 %v7311_v60, %v3656_v13  ;;  %v7661_v58 = vld [vmem:[#allocation28_spill] sm:$0xff] }
 0x47c   : > { %v3716_v1 = vadd.f32 %v3684_v16, %v7654_v62  ;;  %v3717_v41 = vadd.f32 %v3685_v59, %v7655_v5  ;;  %v3718_v46 = vadd.f32 %v3686_v14, %v7656_v48  ;;  %v3719_v38 = vadd.f32 %v3687_v26, %v7657_v8  ;;  %v7662_v14 = vld [vmem:[#allocation35_spill] sm:$0xff] }
 0x47d   : > { %v3692_v23 = vadd.f32 %v7311_v60, %v3657_v12  ;;  %v3720_v49 = vadd.f32 %v3688_v28, %v7658_v22  ;;  %v3693_v40 = vadd.f32 %v7311_v60, %v3658_v20  ;;  %v3721_v57 = vadd.f32 %v3689_v35, %v7659_v61 }
 0x47e   : > { %v3694_v3 = vadd.f32 %v7311_v60, %v3659_v52  ;;  %v3722_v15 = vadd.f32 %v3690_v63, %v7660_v21  ;;  %v3748_v34 = vmax.f32 %v3716_v1, 0.0  ;;  %v3749_v54 = vmax.f32 %v3717_v41, 0.0  ;;  %v7664_v1 = vld [vmem:[#allocation41_spill] sm:$0xff]  ;;  %v7668_v21 = vld [vmem:[#allocation31_spill] sm:$0xff] }
 0x47f   : > { %v3695_v43 = vadd.f32 %v7311_v60, %v3660_v24  ;;  %v3723_v16 = vadd.f32 %v3691_v33, %v7661_v58  ;;  %v3750_v59 = vmax.f32 %v3718_v46, 0.0  ;;  %v3751_v30 = vmax.f32 %v3719_v38, 0.0  ;;  %v7665_v33 = vld [vmem:[#allocation42_spill] sm:$0xff] }
 0x480   : > { %v3663_v42 = vmul.f32 %v7309_v9, %v7142_v29  ;;  %v3696_v31 = vadd.f32 %v7311_v60, %v3661_v6  ;;  %v3724_v26 = vadd.f32 %v3692_v23, %v7662_v14  ;;  %v3752_v50 = vmax.f32 %v3720_v49, 0.0  ;;  %3780 = vst.msk [vmem:[%s7367_s12] sm:$0xff] %vm571_vm0, %v3748_v34  ;;  %v7663_v29 = vld [vmem:[#allocation36_spill] sm:$0xff]  ;;  %v7666_v49 = vld [vmem:[#allocation29_spill] sm:$0xff] }
 0x481   : > { %v3664_v28 = vmul.f32 %v7309_v9, %v7161_v53  ;;  %v3697_v13 = vadd.f32 %v7311_v60, %v3662_v32  ;;  %v3725_v35 = vadd.f32 %v3693_v40, %v7663_v29  ;;  %v3753_v12 = vmax.f32 %v3721_v57, 0.0  ;;  %3781 = vst.msk [vmem:[%s7367_s12 + $0x8] sm:$0xff] %vm571_vm0, %v3749_v54  ;;  %v7667_v40 = vld [vmem:[#allocation30_spill] sm:$0xff]  ;;  %v7672_v29 = vld [vmem:[#allocation37_spill] sm:$0xff] }
 0x482   : > { %v3665_v63 = vmul.f32 %v7309_v9, %v7156_v47  ;;  %v3698_v62 = vadd.f32 %v7311_v60, %v3663_v42  ;;  %v3726_v5 = vadd.f32 %v3694_v3, %v7664_v1  ;;  %v3754_v41 = vmax.f32 %v3722_v15, 0.0  ;;  %3782 = vst.msk [vmem:[%s7367_s12 + $0x10] sm:$0xff] %vm571_vm0, %v3750_v59 }
 0x483   : > { %v3666_v53 = vmul.f32 %v7309_v9, %v7168_v11  ;;  %v3699_v20 = vadd.f32 %v7311_v60, %v3664_v28  ;;  %v3727_v48 = vadd.f32 %v3695_v43, %v7665_v33  ;;  %v3755_v46 = vmax.f32 %v3723_v16, 0.0  ;;  %3783 = vst.msk [vmem:[%s7367_s12 + $0x18] sm:$0xff] %vm571_vm0, %v3751_v30  ;;  %v7669_v43 = vld [vmem:[#allocation32_spill] sm:$0xff]  ;;  %v7670_v30 = vld [vmem:[#allocation33_spill] sm:$0xff] }
 0x484   : > { %v3667_v47 = vmul.f32 %v7309_v9, %v7175_v7  ;;  %v3700_v8 = vadd.f32 %v7311_v60, %v3665_v63  ;;  %v3728_v38 = vadd.f32 %v3696_v31, %v5119_v18  ;;  %v3756_v52 = vmax.f32 %v3724_v26, 0.0  ;;  %3784 = vst.msk [vmem:[%s7367_s12 + $0x20] sm:$0xff] %vm571_vm0, %v3752_v50  ;;  %v7671_v26 = vld [vmem:[#allocation34_spill] sm:$0xff] }
 0x485   : > { %v3668_v11 = vmul.f32 %v7309_v9, %v7182_v44  ;;  %v3701_v24 = vadd.f32 %v7311_v60, %v3666_v53  ;;  %v3729_v23 = vadd.f32 %v3697_v13, %v5146_v39  ;;  %v3757_v22 = vmax.f32 %v3725_v35, 0.0  ;;  %3785 = vst.msk [vmem:[%s7367_s12 + $0x28] sm:$0xff] %vm571_vm0, %v3753_v12  ;;  %v7674_v53 = vld [vmem:[#allocation43_spill] sm:$0xff] }
 0x486   : > { %v3669_v7 = vmul.f32 %v7309_v9, %v7189_v45  ;;  %v3702_v18 = vadd.f32 %v7311_v60, %v3667_v47  ;;  %v3730_v6 = vadd.f32 %v3698_v62, %v7666_v49  ;;  %v3758_v32 = vmax.f32 %v3726_v5, 0.0  ;;  %3786 = vst.msk [vmem:[%s7367_s12 + $0x30] sm:$0xff] %vm571_vm0, %v3754_v41  ;;  %v7673_v62 = vld [vmem:[#allocation38_spill] sm:$0xff] }
 0x487   : > { %v3670_v44 = vmul.f32 %v7309_v9, %v7196_v4  ;;  %v3703_v39 = vadd.f32 %v7311_v60, %v3668_v11  ;;  %v3731_v61 = vadd.f32 %v3699_v20, %v7667_v40  ;;  %v3759_v57 = vmax.f32 %v3727_v48, 0.0  ;;  %3787 = vst.msk [vmem:[%s7367_s12 + $0x38] sm:$0xff] %vm571_vm0, %v3755_v46  ;;  %v7675_v46 = vld [vmem:[#allocation44_spill] sm:$0xff] }
 0x488   : > { %v3671_v45 = vmul.f32 %v7309_v9, %v7203_v56  ;;  %v3704_v3 = vadd.f32 %v7311_v60, %v3669_v7  ;;  %v3732_v15 = vadd.f32 %v3700_v8, %v7668_v21  ;;  %v3760_v34 = vmax.f32 %v3728_v38, 0.0  ;;  %3788 = vst.msk [vmem:[%s7367_s12 + $0x40] sm:$0xff] %vm571_vm0, %v3756_v52  ;;  %v7679_v40 = vld [vmem:[#allocation48_spill] sm:$0xff] }
 0x489   : > { %v3672_v4 = vmul.f32 %v7309_v9, %v7208_v0  ;;  %v3705_v54 = vadd.f32 %v7311_v60, %v3670_v44  ;;  %v3733_v58 = vadd.f32 %v3701_v24, %v7669_v43  ;;  %v3761_v16 = vmax.f32 %v3729_v23, 0.0  ;;  %3789 = vst.msk [vmem:[%s7367_s12 + $0x48] sm:$0xff] %vm571_vm0, %v3757_v22  ;;  %v7676_v23 = vld [vmem:[#allocation45_spill] sm:$0xff] }
 0x48a   : > { %v3673_v56 = vmul.f32 %v7309_v9, %v7217_v36  ;;  %v3706_v59 = vadd.f32 %v7311_v60, %v3671_v45  ;;  %v3734_v42 = vadd.f32 %v3702_v18, %v7670_v30  ;;  %v3762_v31 = vmax.f32 %v3730_v6, 0.0  ;;  %3790 = vst.msk [vmem:[%s7367_s12 + $0x50] sm:$0xff] %vm571_vm0, %v3758_v32  ;;  %v7677_v18 = vld [vmem:[#allocation46_spill] sm:$0xff] }
 0x48b   : > { %v3674_v0 = vmul.f32 %v7309_v9, %v7221_v51  ;;  %v3707_v14 = vadd.f32 %v7311_v60, %v3672_v4  ;;  %v3735_v50 = vadd.f32 %v3703_v39, %v7671_v26  ;;  %v3763_v28 = vmax.f32 %v3731_v61, 0.0  ;;  %3791 = vst.msk [vmem:[%s7367_s12 + $0x58] sm:$0xff] %vm571_vm0, %v3759_v57 }
 0x48c   : > { %v3675_v36 = vmul.f32 %v7309_v9, %v7226_v10  ;;  %v3708_v13 = vadd.f32 %v7311_v60, %v3673_v56  ;;  %v3736_v35 = vadd.f32 %v3704_v3, %v7672_v29  ;;  %v3764_v12 = vmax.f32 %v3732_v15, 0.0  ;;  %3792 = vst.msk [vmem:[%s7367_s12 + $0x60] sm:$0xff] %vm571_vm0, %v3760_v34 }
 0x48d   : > { %v3676_v51 = vmul.f32 %v7309_v9, %v7233_v19  ;;  %v3709_v63 = vadd.f32 %v7311_v60, %v3674_v0  ;;  %v3737_v1 = vadd.f32 %v3705_v54, %v7673_v62  ;;  %v3765_v5 = vmax.f32 %v3733_v58, 0.0  ;;  %3793 = vst.msk [vmem:[%s7367_s12 + $0x68] sm:$0xff] %vm571_vm0, %v3761_v16 }
 0x48e   : > { %v3677_v10 = vmul.f32 %v7309_v9, %v7239_v2  ;;  %v3710_v41 = vadd.f32 %v7311_v60, %v3675_v36  ;;  %v3738_v20 = vadd.f32 %v3706_v59, %v7674_v53  ;;  %v3766_v33 = vmax.f32 %v3734_v42, 0.0  ;;  %3794 = vst.msk [vmem:[%s7367_s12 + $0x70] sm:$0xff] %vm571_vm0, %v3762_v31 }
 0x48f   : > { %v3678_v19 = vmul.f32 %v7309_v9, %v7246_v17  ;;  %v3711_v48 = vadd.f32 %v7311_v60, %v3676_v51  ;;  %v3739_v47 = vadd.f32 %v3707_v14, %v7675_v46  ;;  %v3767_v8 = vmax.f32 %v3735_v50, 0.0  ;;  %3795 = vst.msk [vmem:[%s7367_s12 + $0x78] sm:$0xff] %vm571_vm0, %v3763_v28 }
 0x490   : > { %v3679_v2 = vmul.f32 %v7309_v9, %v7253_v25  ;;  %v3712_v38 = vadd.f32 %v7311_v60, %v3677_v10  ;;  %v3740_v52 = vadd.f32 %v3708_v13, %v5122_v55  ;;  %v3768_v11 = vmax.f32 %v3736_v35, 0.0  ;;  %3796 = vst.msk [vmem:[%s7367_s12 + $0x80] sm:$0xff] %vm571_vm0, %v3764_v12 }
 0x491   : > { %v3680_v17 = vmul.f32 %v7309_v9, %v7260_v27  ;;  %v3713_v24 = vadd.f32 %v7311_v60, %v3678_v19  ;;  %v3741_v22 = vadd.f32 %v3709_v63, %v7676_v23  ;;  %v3769_v7 = vmax.f32 %v3737_v1, 0.0  ;;  %3797 = vst.msk [vmem:[%s7367_s12 + $0x88] sm:$0xff] %vm571_vm0, %v3765_v5  ;;  %v7678_v27 = vld [vmem:[#allocation47_spill] sm:$0xff] }
 0x492   : > { %v3714_v25 = vadd.f32 %v7311_v60, %v3679_v2  ;;  %v3742_v55 = vadd.f32 %v3710_v41, %v7677_v18  ;;  %v3770_v49 = vmax.f32 %v3738_v20, 0.0  ;;  %3798 = vst.msk [vmem:[%s7367_s12 + $0x90] sm:$0xff] %vm571_vm0, %v3766_v33  ;;  %v3743_v9 = vadd.f32 %v3711_v48, %v7678_v27 }
 0x493   : > { %v3715_v6 = vadd.f32 %v7311_v60, %v3680_v17  ;;  %v3771_v32 = vmax.f32 %v3739_v47, 0.0  ;;  %3799 = vst.msk [vmem:[%s7367_s12 + $0x98] sm:$0xff] %vm571_vm0, %v3767_v8  ;;  %v3744_v44 = vadd.f32 %v3712_v38, %v5349_v37  ;;  %v3772_v39 = vmax.f32 %v3740_v52, 0.0  ;;  %v7680_v60 = vld [vmem:[#allocation49_spill] sm:$0xff]  ;;  %v7682_v37 = vld [vmem:[#allocation50_spill] sm:$0xff] }
 0x494   : > { %3800 = vst.msk [vmem:[%s7367_s12 + $0xa0] sm:$0xff] %vm571_vm0, %v3768_v11  ;;  %v3745_v61 = vadd.f32 %v3713_v24, %v7679_v40  ;;  %v3773_v57 = vmax.f32 %v3741_v22, 0.0  ;;  %v3746_v45 = vadd.f32 %v3714_v25, %v7680_v60  ;;  %v3774_v3 = vmax.f32 %v3742_v55, 0.0 }
 0x495   : > { %3801 = vst.msk [vmem:[%s7367_s12 + $0xa8] sm:$0xff] %vm571_vm0, %v3769_v7  ;;  %v3747_v21 = vadd.f32 %v3715_v6, %v7682_v37  ;;  %v3775_v15 = vmax.f32 %v3743_v9, 0.0  ;;  %v3776_v34 = vmax.f32 %v3744_v44, 0.0 }
 0x496   : > { %3802 = vst.msk [vmem:[%s7367_s12 + $0xb0] sm:$0xff] %vm571_vm0, %v3770_v49  ;;  %v3777_v4 = vmax.f32 %v3745_v61, 0.0  ;;  %v3778_v54 = vmax.f32 %v3746_v45, 0.0 }
 0x497   : > { %3803 = vst.msk [vmem:[%s7367_s12 + $0xb8] sm:$0xff] %vm571_vm0, %v3771_v32  ;;  %v3779_v43 = vmax.f32 %v3747_v21, 0.0 }
 0x498   : > { %3804 = vst.msk [vmem:[%s7367_s12 + $0xc0] sm:$0xff] %vm571_vm0, %v3772_v39 }
 0x499   : > { %3805 = vst.msk [vmem:[%s7367_s12 + $0xc8] sm:$0xff] %vm571_vm0, %v3773_v57 }
 0x49a   : > { %3806 = vst.msk [vmem:[%s7367_s12 + $0xd0] sm:$0xff] %vm571_vm0, %v3774_v3 }
 0x49b   : > { %3807 = vst.msk [vmem:[%s7367_s12 + $0xd8] sm:$0xff] %vm571_vm0, %v3775_v15 }
 0x49c   : > { %3808 = vst.msk [vmem:[%s7367_s12 + $0xe0] sm:$0xff] %vm571_vm0, %v3776_v34 }
 0x49d   : > { %3809 = vst.msk [vmem:[%s7367_s12 + $0xe8] sm:$0xff] %vm571_vm0, %v3777_v4 }
 0x49e   : > { %3810 = vst.msk [vmem:[%s7367_s12 + $0xf0] sm:$0xff] %vm571_vm0, %v3778_v54 }
 0x49f   : > { %3811 = vst.msk [vmem:[%s7367_s12 + $0xf8] sm:$0xff] %vm571_vm0, %v3779_v43 }
 0x4a0   : > { %4364 = shalt.err (!%p4361_p9)
}
 0x4a1   : > { %s4427_s11 = smov 128   ;;  %s4428_s12 = smov 8  }
 0x4a2   : > { %4065 = dma.vmem_to_hbm [thread:$0]  (%p4599_p13), %s3826_s3, 4096, %s3828_s21, %s3813_s22, %s4427_s11, %s4427_s11, %s4428_s12  }
 0x4a3 PF: > { %s3842_s20 = sand.u32 1, %s4403_s29   ;;  %p7683_p10 = scmp.ge.s32.totalorder %s4415_s16, 2 }
 0x4a4   : > { %s3843_s24 = scalar_lea.sflag [#allocation6], %s3842_s20 }
 0x4a5   : > { %p4088_p11 = pnand %p7683_p10, %p4604_p4 }
 0x4a7   : > { %p4089_p0 = pneg %p4088_p11 }
 0x4a9   : > { %4398 = dma.done.wait (%p4089_p0), %s3843_s24, 4096  }
 0x4aa   : > { %4400 = vsyncadd (%p4089_p0), %s3843_s24, 4294963200  ;;  %p30_p2 = scmp.ge.s32.totalorder %s4579_s18, 4   ;;  %s7684_s29 = smov %s4407_s30 }
 0x4ab   : > { %s7685_s30 = smov %s4411_s15  ;;  %s7686_s15 = smov %s4591_s28 }
 0x4ac   : > { %s7687_s16 = smov %s4579_s18  ;;  %32 = sbr.rel (!%p30_p2) target bundleno = 17 (0x11), region = 147 }
 0x4b1   :  { %3849 = vsyncpa [#allocation5], 1 }
 0x4b2   :  { %3851 = vsyncpa [#allocation5 + $0x1], 1 }
 0x4b3   :  { %3852 = vsyncpa [#allocation8], 1 }
 0x4b4   :  { %3853 = vsyncpa [#allocation11], 1 }
 0x4b5   :  { %3854 = vsyncpa [#allocation14], 1 }
 0x4b6   :  { %3855 = vsyncpa [#allocation6], 1 }
 0x4b7   :  { %3857 = vsyncpa [#allocation6 + $0x1], 1 }

</bundles_post_ra>
